<compile_context>
chip_gen: v6e
topology: v6e:2x2x1
jax: 0.10.0
libtpu: 0.0.40
codegen_flags: <defaults>
</compile_context>

<pallas_src>
import functools
import math

import jax
import jax.numpy as jnp
from jax.experimental import pallas as pl
from jax.experimental.pallas import tpu as pltpu


# ---------------------------------------------------------------------------
# small helpers
# ---------------------------------------------------------------------------

def _round_up(x: int, m: int) -> int:
    return (x + m - 1) // m * m


def _cdiv(a: int, b: int) -> int:
    return -(-a // b)


def _silu(x):
    # x * sigmoid(x); the divide goes to the EUP reciprocal slot.
    return x * pl.reciprocal(1.0 + jnp.exp(-x), approx=True)


def _softplus(x):
    # numerically stable log(1 + exp(x))
    return jnp.maximum(x, 0.0) + jnp.log(1.0 + jnp.exp(-jnp.abs(x)))


# ---------------------------------------------------------------------------
# fused ResidualBlock kernel
# ---------------------------------------------------------------------------

def _residual_block_kernel(
    # inputs (blocked)
    x_ref,        # (l, Dp)        tokens, d_model padded to Dp, f32/x.dtype
    wn_ref,       # (1, Dp)        RMSNorm weight (zero padded), f32
    winx_ref,     # (Dp, ED)       in_proj x-branch, transposed, bf16
    winz_ref,     # (Dp, ED)       in_proj z-branch, transposed, bf16
    cw_ref,       # (dc, ED)       depthwise conv weight, time-major, f32
    cb_ref,       # (1, ED)        conv bias, f32
    wx_ref,       # (ED, R+2N)     fused x_proj (delta_r | B | C), bf16
    wdt_ref,      # (R, ED)        dt_proj weight, transposed, f32 (tiny)
    dtb_ref,      # (1, ED)        dt_proj bias, f32
    a_ref,        # (N, ED)        A = -exp(A_log), transposed, f32
    dvec_ref,     # (1, ED)        D, f32
    wout_ref,     # (ED, Dp)       out_proj, transposed (zero padded), bf16
    # outputs (blocked)
    out_ref,      # (l, Dp)        block output (+ residual), padded d_model
    hs_ref,       # (l, N, ED)     hidden states (kernel-internal layout), f32
    # scratch (persists across the L-chunk grid axis)
    h_s,          # (N, ED)        SSM state carry
    tail_s,       # (dc-1, ED)     conv context carry
    dlt_s,        # (l, ED)        delta
    xc_s,         # (l, ED)        conv+SiLU activations
    b_s,          # (l, N)         B coefficients
    c_s,          # (l, N)         C coefficients
    y_s,          # (l, ED)        scan readout
    *, eps: float, d_true: int, d_conv: int, dt_rank: int, t_sub: int):

    c = pl.program_id(1)

    @pl.when(c == 0)
    def _init():
        h_s[...] = jnp.zeros_like(h_s)
        tail_s[...] = jnp.zeros_like(tail_s)

    l = x_ref.shape[0]
    n_state = h_s.shape[0]
    r = dt_rank

    x = x_ref[...].astype(jnp.float32)                               # (l, Dp)

    # ---- RMSNorm (padded lanes are zero; divide by the true d_model) ------
    ms = jnp.sum(x * x, axis=-1, keepdims=True) * (1.0 / d_true)
    xn = x * jax.lax.rsqrt(ms + eps) * wn_ref[...]
    xnb = xn.astype(jnp.bfloat16)

    # ---- in_proj (bf16 MXU, f32 accumulate) --------------------------------
    xi = jnp.dot(xnb, winx_ref[...], preferred_element_type=jnp.float32)
    z = jnp.dot(xnb, winz_ref[...], preferred_element_type=jnp.float32)

    # ---- causal depthwise conv1d + SiLU (context carried across chunks) ---
    cat = jnp.concatenate([tail_s[...], xi], axis=0)                 # (l+dc-1, ED)
    cw = cw_ref[...]
    conv = cb_ref[...]
    for k in range(d_conv):                                          # static unroll
        conv = conv + cw[k:k + 1, :] * cat[k:k + l, :]
    xc = _silu(conv)                                                 # (l, ED)
    tail_s[...] = cat[l:l + d_conv - 1, :]
    xc_s[...] = xc

    # ---- fused x_proj (delta_r | B | C) + dt_proj ---------------------------
    dbc = jnp.dot(xc.astype(jnp.bfloat16), wx_ref[...],
                  preferred_element_type=jnp.float32)                # (l, R+2N)
    b_s[...] = dbc[:, r:r + n_state]
    c_s[...] = dbc[:, r + n_state:r + 2 * n_state]
    delta = _softplus(
        jnp.dot(dbc[:, :r], wdt_ref[...],
                preferred_element_type=jnp.float32) + dtb_ref[...])  # (l, ED)
    dlt_s[...] = delta

    a_mat = a_ref[...]                                               # (N, ED)
    n_sub = l // t_sub

    # ---- selective scan in time sub-tiles (coefficients computed on the fly,
    #      C-readout fused, inner steps statically unrolled) ------------------
    def sub_body(s, h):
        t0 = pl.multiple_of(s * t_sub, t_sub)
        dsub = dlt_s[pl.ds(t0, t_sub), :]                            # (ts, ED)
        xcsub = xc_s[pl.ds(t0, t_sub), :]                            # (ts, ED)
        bsub = b_s[pl.ds(t0, t_sub), :]                              # (ts, N)
        csub = c_s[pl.ds(t0, t_sub), :]                              # (ts, N)
        da = jnp.exp(dsub[:, None, :] * a_mat)                       # (ts, N, ED)
        bx = (dsub * xcsub)[:, None, :] * bsub[:, :, None]           # (ts, N, ED)
        hs_list = []
        for j in range(t_sub):                                       # static unroll
            h = da[j] * h + bx[j]
            hs_list.append(h)
        hs_blk = jnp.stack(hs_list, axis=0)                          # (ts, N, ED)
        hs_ref[pl.ds(t0, t_sub), :, :] = hs_blk.astype(hs_ref.dtype)
        y_s[pl.ds(t0, t_sub), :] = jnp.sum(hs_blk * csub[:, :, None], axis=1)
        return h

    h_s[...] = jax.lax.fori_loop(0, n_sub, sub_body, h_s[...])

    # ---- readout, gating, out_proj, fused residual add ---------------------
    y = y_s[...] + dvec_ref[...] * xc_s[...]
    gated = (y * _silu(z)).astype(jnp.bfloat16)
    out = jnp.dot(gated, wout_ref[...], preferred_element_type=jnp.float32) + x
    out_ref[...] = out.astype(out_ref.dtype)


# ---------------------------------------------------------------------------
# one-time weight preparation (hoist out of the hot path)
# ---------------------------------------------------------------------------

def prepare_params(params, *, matmul_dtype=jnp.bfloat16):
    f32 = jnp.float32
    ED, dc = params["conv_w"].shape
    N = params["A_log"].shape[1]
    R = params["dt_proj_w"].shape[1]
    D = params["norm_weight"].shape[0]
    assert dc >= 2, "d_conv must be >= 2"
    Dp = _round_up(D, 128)
    pad_d = Dp - D
    w_in = params["in_proj_w"].astype(f32)                           # (2*ED, D)
    return dict(
        wn=jnp.pad(params["norm_weight"].astype(f32), (0, pad_d)).reshape(1, Dp),
        winx=jnp.pad(w_in[:ED].T, ((0, pad_d), (0, 0))).astype(matmul_dtype),
        winz=jnp.pad(w_in[ED:].T, ((0, pad_d), (0, 0))).astype(matmul_dtype),
        cw=params["conv_w"].astype(f32).T,                           # (dc, ED)
        cb=params["conv_b"].astype(f32).reshape(1, ED),
        wx=params["x_proj_w"].astype(f32).T.astype(matmul_dtype),    # (ED, R+2N)
        wdt=params["dt_proj_w"].astype(f32).T,                       # (R, ED) f32
        dtb=params["dt_proj_b"].astype(f32).reshape(1, ED),
        a=(-jnp.exp(params["A_log"].astype(f32))).T,                 # (N, ED)
        dvec=params["D"].astype(f32).reshape(1, ED),
        wout=jnp.pad(params["out_proj_w"].astype(f32).T,
                     ((0, 0), (0, pad_d))).astype(matmul_dtype),     # (ED, Dp)
        meta=(int(D), int(Dp), int(ED), int(N), int(R), int(dc)),
    )


# ---------------------------------------------------------------------------
# wrapper
# ---------------------------------------------------------------------------

def residual_block(x, params, *, eps: float = 1e-5,
                   vmem_budget_bytes=None, vmem_limit_bytes=None):
    """Fused ResidualBlock forward (prefill, cache=None).

    Returns (output, hs, (cache_h, cache_inputs)) matching the PyTorch module:
    output (B, L, d_model), hs (B, L, d_inner, d_state),
    cache_h (B, d_inner, d_state), cache_inputs (B, d_inner, d_conv-1).
    """
    if "meta" not in params:
        params = prepare_params(params)
    D, Dp, ED, N, R, dc = params["meta"]
    B, L, Dx = x.shape
    assert Dx == D
    f32 = jnp.float32
    x_bytes = jnp.dtype(x.dtype).itemsize

    # ---- per-generation VMEM budget (v7x: 64 MiB/TC, v5e/v6e: 128 MiB) -----
    try:
        vmem_cap = int(pltpu.get_tpu_info().vmem_capacity_bytes)
    except Exception:
        vmem_cap = 64 * 1024 * 1024                      # conservative fallback
    budget = int(vmem_budget_bytes or 0.60 * vmem_cap)

    def est_vmem(lc):
        io = 2 * (2 * lc * Dp * x_bytes + lc * N * ED * 4)           # dbl-buffered blocks
        weights = 2 * (Dp * 4 + 2 * Dp * ED * 2 + dc * ED * 4 + 3 * ED * 4
                       + ED * (R + 2 * N) * 2 + R * ED * 4 + N * ED * 4
                       + ED * Dp * 2)
        scratch = 4 * (N * ED + (dc - 1) * ED + 3 * lc * ED + 2 * lc * 128)
        temps = 4 * (5 * lc * ED + 2 * lc * Dp) + 2 * 8 * N * ED * 4 + (2 << 20)
        return io + weights + scratch + temps

    # ---- chunk selection (fail loudly if nothing fits) ----------------------
    t_sub = 8 if L >= 8 else max(L, 1)
    max_chunk = min(_round_up(L, t_sub), 4096)
    cands = list(range(t_sub, max_chunk + 1, t_sub))
    fitting = [lc for lc in cands if est_vmem(lc) <= budget]
    if not fitting:
        raise ValueError(
            f"residual_block: no L-chunk fits the VMEM budget ({budget} B); "
            f"d_inner={ED} would need an ED-tiled kernel variant.")
    n_chunks = min(_cdiv(L, lc) for lc in fitting)
    l_chunk = min(lc for lc in fitting if _cdiv(L, lc) == n_chunks)
    Lp = n_chunks * l_chunk

    vmem_limit = int(vmem_limit_bytes or
                     min(0.78 * vmem_cap, max(2.0 * est_vmem(l_chunk), 32 << 20)))

    # ---- pad: lanes to Dp, time to Lp (zeros are inert for causal ops) -----
    xp = x
    if Lp != L or Dp != D:
        xp = jnp.pad(x, ((0, 0), (0, Lp - L), (0, Dp - D)))

    kernel = functools.partial(_residual_block_kernel, eps=eps, d_true=D,
                               d_conv=dc, dt_rank=R, t_sub=t_sub)

    cost = pl.CostEstimate(
        flops=int(2 * B * Lp * (2 * Dp * ED + ED * (R + 2 * N) + R * ED + ED * Dp)
                  + 10 * B * Lp * ED * N),
        transcendentals=int(B * Lp * (ED * N + 4 * ED)),
        bytes_accessed=int(2 * B * Lp * Dp * x_bytes + 4 * B * Lp * N * ED
                           + 2 * (3 * Dp * ED + ED * (R + 2 * N)) + 4 * R * ED
                           + 4 * (N + dc + 4) * ED + 4 * Dp))

    def make_call(single_buffered_weights):
        def wspec(shape):
            nd = len(shape)
            idx = lambda b, c, _nd=nd: (0,) * _nd
            if single_buffered_weights:
                # weights are grid-invariant -> one resident buffer is enough
                return pl.BlockSpec(shape, idx, pipeline_mode=pl.Buffered(1))
            return pl.BlockSpec(shape, idx)

        return pl.pallas_call(
            kernel,
            out_shape=(
                jax.ShapeDtypeStruct((B, Lp, Dp), x.dtype),
                jax.ShapeDtypeStruct((B, Lp, N, ED), f32),
            ),
            grid_spec=pltpu.PrefetchScalarGridSpec(
                num_scalar_prefetch=0,
                grid=(B, n_chunks),
                in_specs=[
                    pl.BlockSpec((None, l_chunk, Dp), lambda b, c: (b, c, 0)),
                    wspec((1, Dp)),            # norm weight
                    wspec((Dp, ED)),           # in_proj x
                    wspec((Dp, ED)),           # in_proj z
                    wspec((dc, ED)),           # conv weight
                    wspec((1, ED)),            # conv bias
                    wspec((ED, R + 2 * N)),    # fused x_proj
                    wspec((R, ED)),            # dt_proj weight
                    wspec((1, ED)),            # dt_proj bias
                    wspec((N, ED)),            # A
                    wspec((1, ED)),            # D
                    wspec((ED, Dp)),           # out_proj
                ],
                out_specs=(
                    pl.BlockSpec((None, l_chunk, Dp), lambda b, c: (b, c, 0)),
                    pl.BlockSpec((None, l_chunk, N, ED),
                                 lambda b, c: (b, c, 0, 0)),
                ),
                scratch_shapes=[
                    pltpu.VMEM((N, ED), f32),            # h carry
                    pltpu.VMEM((dc - 1, ED), f32),       # conv tail carry
                    pltpu.VMEM((l_chunk, ED), f32),      # delta
                    pltpu.VMEM((l_chunk, ED), f32),      # xc
                    pltpu.VMEM((l_chunk, N), f32),       # B coeffs
                    pltpu.VMEM((l_chunk, N), f32),       # C coeffs
                    pltpu.VMEM((l_chunk, ED), f32),      # y readout
                ],
            ),
            compiler_params=pltpu.CompilerParams(
                dimension_semantics=("parallel", "arbitrary"),
                vmem_limit_bytes=vmem_limit),
            cost_estimate=cost,
        )

    args = (xp, params["wn"], params["winx"], params["winz"], params["cw"],
            params["cb"], params["wx"], params["wdt"], params["dtb"],
            params["a"], params["dvec"], params["wout"])
    try:
        out_raw, hs_raw = make_call(True)(*args)
    except Exception:
        # pipeline_mode=pl.Buffered(1) not supported on this build: fall back
        # to default double-buffered weights (correctness identical).
        out_raw, hs_raw = make_call(False)(*args)

    output = out_raw[:, :L, :D]
    hs = jnp.swapaxes(hs_raw[:, :L], 2, 3)               # (B, L, ED, N)
    cache_h = hs[:, -1]                                  # (B, ED, N)

    # cache "inputs": last d_conv-1 pre-conv activations (tiny, done here)
    m = min(L, dc - 1)
    cache_inputs = jnp.zeros((B, ED, dc - 1), x.dtype)
    if m > 0:
        xt = x[:, L - m:, :].astype(f32)
        xnt = (xt * jax.lax.rsqrt(jnp.mean(xt * xt, axis=-1, keepdims=True) + eps)
               * params["wn"][0, :D])
        xi_t = jnp.dot(xnt.reshape(B * m, D), params["winx"][:D].astype(f32),
                       preferred_element_type=f32).reshape(B, m, ED)
        cache_inputs = cache_inputs.at[:, :, dc - 1 - m:].set(
            jnp.swapaxes(xi_t, 1, 2).astype(x.dtype))
    return output, hs, (cache_h, cache_inputs)


# ---------------------------------------------------------------------------
# pure-JAX reference (mirrors the PyTorch ResidualBlock.forward, cache=None)
# ---------------------------------------------------------------------------

def residual_block_ref(x, p, *, eps=1e-5):
    B, L, D = x.shape
    ED, dc = p["conv_w"].shape
    N = p["A_log"].shape[1]
    R = p["dt_proj_w"].shape[1]

    xn = x * jax.lax.rsqrt(jnp.mean(x * x, axis=-1, keepdims=True) + eps)
    xn = xn * p["norm_weight"]
    xz = xn @ p["in_proj_w"].T
    xi, z = xz[..., :ED], xz[..., ED:]

    xpad = jnp.pad(xi, ((0, 0), (dc - 1, 0), (0, 0)))
    conv = p["conv_b"] + sum(p["conv_w"][:, k] * xpad[:, k:k + L, :]
                             for k in range(dc))
    xc = jax.nn.silu(conv)

    dbc = xc @ p["x_proj_w"].T
    d_r, Bm, Cm = dbc[..., :R], dbc[..., R:R + N], dbc[..., R + N:]
    delta = jax.nn.softplus(d_r @ p["dt_proj_w"].T + p["dt_proj_b"])

    A = -jnp.exp(p["A_log"])
    dA = jnp.exp(delta[..., None] * A)                       # (B, L, ED, N)
    BX = (delta * xc)[..., None] * Bm[:, :, None, :]

    def step(h, ab):
        a, b = ab
        h = a * h + b
        return h, h

    h0 = jnp.zeros((B, ED, N), jnp.float32)
    _, hs = jax.lax.scan(step, h0,
                         (jnp.swapaxes(dA, 0, 1), jnp.swapaxes(BX, 0, 1)))
    hs = jnp.swapaxes(hs, 0, 1)                              # (B, L, ED, N)

    y = jnp.sum(hs * Cm[:, :, None, :], axis=-1) + p["D"] * xc
    out = (y * jax.nn.silu(z)) @ p["out_proj_w"].T + x

    mt = min(L, dc - 1)
    inputs = jnp.zeros((B, ED, dc - 1), x.dtype)
    inputs = inputs.at[:, :, dc - 1 - mt:].set(
        jnp.swapaxes(xi, 1, 2)[:, :, L - mt:])
    return out, hs, (hs[:, -1], inputs)


# ---------------------------------------------------------------------------
# demo / self-test
# ---------------------------------------------------------------------------

if __name__ == "__main__":
    key = jax.random.PRNGKey(0)
    batch, seq, d_model = 2, 8, 32
    d_state, d_conv, expand = 16, 4, 2
    d_inner = expand * d_model
    dt_rank = math.ceil(d_model / 16)

    ks = jax.random.split(key, 8)
    x = jax.random.normal(ks[0], (batch, seq, d_model), dtype=jnp.float32)

    dt_init_std = dt_rank ** -0.5
    dt = jnp.exp(jax.random.uniform(ks[6], (d_inner,))
                 * (math.log(0.1) - math.log(0.001)) + math.log(0.001))
    dt = jnp.maximum(dt, 1e-4)

    params = {
        "norm_weight": jnp.ones((d_model,), jnp.float32),
        "in_proj_w": jax.random.normal(ks[1], (2 * d_inner, d_model),
                                       jnp.float32) / math.sqrt(d_model),
        # torch conv1d weight is (ED, 1, d_conv); stored here squeezed as (ED, d_conv)
        "conv_w": jax.random.normal(ks[2], (d_inner, d_conv),
                                    jnp.float32) / math.sqrt(d_conv),
        "conv_b": 0.1 * jax.random.normal(ks[3], (d_inner,), jnp.float32),
        "x_proj_w": jax.random.normal(ks[4], (dt_rank + 2 * d_state, d_inner),
                                      jnp.float32) / math.sqrt(d_inner),
        "dt_proj_w": jax.random.uniform(ks[5], (d_inner, dt_rank), jnp.float32,
                                        minval=-dt_init_std, maxval=dt_init_std),
        "dt_proj_b": dt + jnp.log(-jnp.expm1(-dt)),
        "A_log": jnp.log(jnp.tile(jnp.arange(1, d_state + 1, dtype=jnp.float32),
                                  (d_inner, 1))),
        "D": jnp.ones((d_inner,), jnp.float32),
        "out_proj_w": jax.random.normal(ks[7], (d_model, d_inner),
                                        jnp.float32) / math.sqrt(d_inner),
    }

    prepped = prepare_params(params)            # one-time weight prep (hoisted)
    out, hs, (cache_h, cache_in) = residual_block(x, prepped, eps=1e-5)
    jax.block_until_ready(out)

    out_r, hs_r, (cache_h_r, cache_in_r) = residual_block_ref(x, params, eps=1e-5)

    assert out.shape == (batch, seq, d_model) and out.dtype == x.dtype
    assert hs.shape == (batch, seq, d_inner, d_state)
    assert cache_h.shape == (batch, d_inner, d_state)
    assert cache_in.shape == (batch, d_inner, d_conv - 1)

    def _relerr(a, b):
        a = jnp.asarray(a, jnp.float32).ravel()
        b = jnp.asarray(b, jnp.float32).ravel()
        return float(jnp.linalg.norm(a - b) / (jnp.linalg.norm(b) + 1e-12))

    # bf16 MXU path -> compare with aggregate relative error + loose elementwise
    assert _relerr(out, out_r) < 2e-2, _relerr(out, out_r)
    assert _relerr(hs, hs_r) < 2e-2, _relerr(hs, hs_r)
    assert _relerr(cache_h, cache_h_r) < 2e-2, _relerr(cache_h, cache_h_r)
    assert _relerr(cache_in, cache_in_r) < 2e-2, _relerr(cache_in, cache_in_r)
    assert jnp.allclose(out, out_r, atol=5e-2, rtol=5e-2), \
        float(jnp.max(jnp.abs(out - out_r)))
    assert jnp.allclose(hs, hs_r, atol=5e-2, rtol=5e-2)

    print("KERNEL_OK")
</pallas_src>

<mosaic_0001>
module attributes {stable_mosaic.version = 11 : i64} {
  func.func @_residual_block_kernel(%arg0: i32, %arg1: i32, %arg2: memref<1x8x128xf32, #tpu.memory_space<vmem>>, %arg3: memref<1x128xf32, #tpu.memory_space<vmem>>, %arg4: memref<128x64xbf16, #tpu.memory_space<vmem>>, %arg5: memref<128x64xbf16, #tpu.memory_space<vmem>>, %arg6: memref<4x64xf32, #tpu.memory_space<vmem>>, %arg7: memref<1x64xf32, #tpu.memory_space<vmem>>, %arg8: memref<64x34xbf16, #tpu.memory_space<vmem>>, %arg9: memref<2x64xf32, #tpu.memory_space<vmem>>, %arg10: memref<1x64xf32, #tpu.memory_space<vmem>>, %arg11: memref<16x64xf32, #tpu.memory_space<vmem>>, %arg12: memref<1x64xf32, #tpu.memory_space<vmem>>, %arg13: memref<64x128xbf16, #tpu.memory_space<vmem>>, %arg14: memref<1x8x128xf32, #tpu.memory_space<vmem>>, %arg15: memref<1x8x16x64xf32, #tpu.memory_space<vmem>>, %arg16: memref<16x64xf32, #tpu.memory_space<vmem>>, %arg17: memref<3x64xf32, #tpu.memory_space<vmem>>, %arg18: memref<8x64xf32, #tpu.memory_space<vmem>>, %arg19: memref<8x64xf32, #tpu.memory_space<vmem>>, %arg20: memref<8x16xf32, #tpu.memory_space<vmem>>, %arg21: memref<8x16xf32, #tpu.memory_space<vmem>>, %arg22: memref<8x64xf32, #tpu.memory_space<vmem>>) attributes {dimension_semantics = [#tpu.dimension_semantics<parallel>, #tpu.dimension_semantics<arbitrary>], iteration_bounds = array<i64: 2, 1>, scalar_prefetch = 0 : i64, scratch_operands = 7 : i64, tpu.core_type = #tpu.core_type<tc>, window_params = [{transform_indices = @transform_0, window_bounds = array<i64: 1, 8, 128>}, {pipeline_mode = #tpu.pipeline_mode<synchronous>, transform_indices = @transform_1, window_bounds = array<i64: 1, 128>}, {pipeline_mode = #tpu.pipeline_mode<synchronous>, transform_indices = @transform_2, window_bounds = array<i64: 128, 64>}, {pipeline_mode = #tpu.pipeline_mode<synchronous>, transform_indices = @transform_3, window_bounds = array<i64: 128, 64>}, {pipeline_mode = #tpu.pipeline_mode<synchronous>, transform_indices = @transform_4, window_bounds = array<i64: 4, 64>}, {pipeline_mode = #tpu.pipeline_mode<synchronous>, transform_indices = @transform_5, window_bounds = array<i64: 1, 64>}, {pipeline_mode = #tpu.pipeline_mode<synchronous>, transform_indices = @transform_6, window_bounds = array<i64: 64, 34>}, {pipeline_mode = #tpu.pipeline_mode<synchronous>, transform_indices = @transform_7, window_bounds = array<i64: 2, 64>}, {pipeline_mode = #tpu.pipeline_mode<synchronous>, transform_indices = @transform_8, window_bounds = array<i64: 1, 64>}, {pipeline_mode = #tpu.pipeline_mode<synchronous>, transform_indices = @transform_9, window_bounds = array<i64: 16, 64>}, {pipeline_mode = #tpu.pipeline_mode<synchronous>, transform_indices = @transform_10, window_bounds = array<i64: 1, 64>}, {pipeline_mode = #tpu.pipeline_mode<synchronous>, transform_indices = @transform_11, window_bounds = array<i64: 64, 128>}, {transform_indices = @transform_12, window_bounds = array<i64: 1, 8, 128>}, {transform_indices = @transform_13, window_bounds = array<i64: 1, 8, 16, 64>}]} {
    %c0_i32 = arith.constant 0 : i32
    %0 = arith.cmpi eq, %arg1, %c0_i32 : i32
    %1 = arith.extui %0 : i1 to i32
    %c0_i32_0 = arith.constant 0 : i32
    %2 = arith.cmpi ne, %1, %c0_i32_0 : i32
    scf.if %2 {
      %cst_72 = arith.constant 0.000000e+00 : f32
      %195 = vector.broadcast %cst_72 : f32 to vector<16x64xf32>
      %c0_73 = arith.constant 0 : index
      %c0_74 = arith.constant 0 : index
      %196 = vector.load %arg16[%c0_73, %c0_74] : memref<16x64xf32, #tpu.memory_space<vmem>>, vector<16x64xf32>
      tpu.vector_store %arg16[%c0_73, %c0_74], %195 {strides = array<i32>} : memref<16x64xf32, #tpu.memory_space<vmem>>, vector<16x64xf32>,
      %cst_75 = arith.constant 0.000000e+00 : f32
      %197 = vector.broadcast %cst_75 : f32 to vector<3x64xf32>
      %c0_76 = arith.constant 0 : index
      %c0_77 = arith.constant 0 : index
      %198 = vector.load %arg17[%c0_76, %c0_77] : memref<3x64xf32, #tpu.memory_space<vmem>>, vector<3x64xf32>
      tpu.vector_store %arg17[%c0_76, %c0_77], %197 {strides = array<i32>} : memref<3x64xf32, #tpu.memory_space<vmem>>, vector<3x64xf32>,
    } else {
    }
    %c0 = arith.constant 0 : index
    %c0_1 = arith.constant 0 : index
    %c0_2 = arith.constant 0 : index
    %3 = vector.load %arg2[%c0, %c0_1, %c0_2] : memref<1x8x128xf32, #tpu.memory_space<vmem>>, vector<1x8x128xf32>
    %4 = vector.shape_cast %3 : vector<1x8x128xf32> to vector<8x128xf32>
    %5 = arith.mulf %4, %4 : vector<8x128xf32>
    %cst = arith.constant dense<0.000000e+00> : vector<8xf32>
    %6 = vector.multi_reduction <add>, %5, %cst [1] : vector<8x128xf32> to vector<8xf32>
    %7 = vector.shape_cast %6 : vector<8xf32> to vector<8x1xf32>
    %cst_3 = arith.constant 3.125000e-02 : f32
    %8 = vector.broadcast %cst_3 : f32 to vector<8x1xf32>
    %9 = arith.mulf %7, %8 : vector<8x1xf32>
    %cst_4 = arith.constant 9.99999974E-6 : f32
    %10 = vector.broadcast %cst_4 : f32 to vector<8x1xf32>
    %11 = arith.addf %9, %10 : vector<8x1xf32>
    %12 = math.rsqrt %11 : vector<8x1xf32>
    %13 = vector.broadcast %12 : vector<8x1xf32> to vector<8x128xf32>
    %14 = arith.mulf %4, %13 : vector<8x128xf32>
    %c0_5 = arith.constant 0 : index
    %c0_6 = arith.constant 0 : index
    %15 = vector.load %arg3[%c0_5, %c0_6] : memref<1x128xf32, #tpu.memory_space<vmem>>, vector<1x128xf32>
    %16 = vector.broadcast %15 : vector<1x128xf32> to vector<8x128xf32>
    %17 = arith.mulf %14, %16 : vector<8x128xf32>
    %18 = arith.truncf %17 : vector<8x128xf32> to vector<8x128xbf16>
    %c0_7 = arith.constant 0 : index
    %c0_8 = arith.constant 0 : index
    %19 = vector.load %arg4[%c0_7, %c0_8] : memref<128x64xbf16, #tpu.memory_space<vmem>>, vector<128x64xbf16>
    %cst_9 = arith.constant dense<0.000000e+00> : vector<8x64xf32>
    %20 = tpu.matmul %18, %19, %cst_9 {dimension_numbers = #tpu.dot_dimension_numbers<[1], [0], [0], [1], [0, 0, 1, 1], [], []>} : vector<8x128xbf16>, vector<128x64xbf16>, vector<8x64xf32> -> vector<8x64xf32>
    %c0_10 = arith.constant 0 : index
    %c0_11 = arith.constant 0 : index
    %21 = vector.load %arg5[%c0_10, %c0_11] : memref<128x64xbf16, #tpu.memory_space<vmem>>, vector<128x64xbf16>
    %cst_12 = arith.constant dense<0.000000e+00> : vector<8x64xf32>
    %22 = tpu.matmul %18, %21, %cst_12 {dimension_numbers = #tpu.dot_dimension_numbers<[1], [0], [0], [1], [0, 0, 1, 1], [], []>} : vector<8x128xbf16>, vector<128x64xbf16>, vector<8x64xf32> -> vector<8x64xf32>
    %c0_13 = arith.constant 0 : index
    %c0_14 = arith.constant 0 : index
    %23 = vector.load %arg17[%c0_13, %c0_14] : memref<3x64xf32, #tpu.memory_space<vmem>>, vector<3x64xf32>
    %24 = tpu.concatenate %23, %20 in 0 : vector<3x64xf32>, vector<8x64xf32> -> vector<11x64xf32>
    %c0_15 = arith.constant 0 : index
    %c0_16 = arith.constant 0 : index
    %25 = vector.load %arg6[%c0_15, %c0_16] : memref<4x64xf32, #tpu.memory_space<vmem>>, vector<4x64xf32>
    %c0_17 = arith.constant 0 : index
    %c0_18 = arith.constant 0 : index
    %26 = vector.load %arg7[%c0_17, %c0_18] : memref<1x64xf32, #tpu.memory_space<vmem>>, vector<1x64xf32>
    %27 = vector.extract_strided_slice %25 {offsets = [0, 0], sizes = [1, 64], strides = [1, 1]} : vector<4x64xf32> to vector<1x64xf32>
    %28 = vector.extract_strided_slice %24 {offsets = [0, 0], sizes = [8, 64], strides = [1, 1]} : vector<11x64xf32> to vector<8x64xf32>
    %29 = vector.broadcast %27 : vector<1x64xf32> to vector<8x64xf32>
    %30 = arith.mulf %29, %28 : vector<8x64xf32>
    %31 = vector.broadcast %26 : vector<1x64xf32> to vector<8x64xf32>
    %32 = arith.addf %31, %30 : vector<8x64xf32>
    %33 = vector.extract_strided_slice %25 {offsets = [1, 0], sizes = [1, 64], strides = [1, 1]} : vector<4x64xf32> to vector<1x64xf32>
    %34 = vector.extract_strided_slice %24 {offsets = [1, 0], sizes = [8, 64], strides = [1, 1]} : vector<11x64xf32> to vector<8x64xf32>
    %35 = vector.broadcast %33 : vector<1x64xf32> to vector<8x64xf32>
    %36 = arith.mulf %35, %34 : vector<8x64xf32>
    %37 = arith.addf %32, %36 : vector<8x64xf32>
    %38 = vector.extract_strided_slice %25 {offsets = [2, 0], sizes = [1, 64], strides = [1, 1]} : vector<4x64xf32> to vector<1x64xf32>
    %39 = vector.extract_strided_slice %24 {offsets = [2, 0], sizes = [8, 64], strides = [1, 1]} : vector<11x64xf32> to vector<8x64xf32>
    %40 = vector.broadcast %38 : vector<1x64xf32> to vector<8x64xf32>
    %41 = arith.mulf %40, %39 : vector<8x64xf32>
    %42 = arith.addf %37, %41 : vector<8x64xf32>
    %43 = vector.extract_strided_slice %25 {offsets = [3, 0], sizes = [1, 64], strides = [1, 1]} : vector<4x64xf32> to vector<1x64xf32>
    %44 = vector.extract_strided_slice %24 {offsets = [3, 0], sizes = [8, 64], strides = [1, 1]} : vector<11x64xf32> to vector<8x64xf32>
    %45 = vector.broadcast %43 : vector<1x64xf32> to vector<8x64xf32>
    %46 = arith.mulf %45, %44 : vector<8x64xf32>
    %47 = arith.addf %42, %46 : vector<8x64xf32>
    %cst_19 = arith.constant 0.000000e+00 : f32
    %48 = vector.broadcast %cst_19 : f32 to vector<8x64xf32>
    %49 = arith.subf %48, %47 : vector<8x64xf32>
    %50 = math.exp %49 : vector<8x64xf32>
    %cst_20 = arith.constant 1.000000e+00 : f32
    %51 = vector.broadcast %cst_20 : f32 to vector<8x64xf32>
    %52 = arith.addf %51, %50 : vector<8x64xf32>
    %53 = tpu.reciprocal %52 {approx = true} : vector<8x64xf32> -> vector<8x64xf32>
    %54 = arith.mulf %47, %53 : vector<8x64xf32>
    %55 = vector.extract_strided_slice %24 {offsets = [8, 0], sizes = [3, 64], strides = [1, 1]} : vector<11x64xf32> to vector<3x64xf32>
    %c0_21 = arith.constant 0 : index
    %c0_22 = arith.constant 0 : index
    %56 = vector.load %arg17[%c0_21, %c0_22] : memref<3x64xf32, #tpu.memory_space<vmem>>, vector<3x64xf32>
    tpu.vector_store %arg17[%c0_21, %c0_22], %55 {strides = array<i32>} : memref<3x64xf32, #tpu.memory_space<vmem>>, vector<3x64xf32>,
    %c0_23 = arith.constant 0 : index
    %c0_24 = arith.constant 0 : index
    %57 = vector.load %arg19[%c0_23, %c0_24] : memref<8x64xf32, #tpu.memory_space<vmem>>, vector<8x64xf32>
    tpu.vector_store %arg19[%c0_23, %c0_24], %54 {strides = array<i32>} : memref<8x64xf32, #tpu.memory_space<vmem>>, vector<8x64xf32>,
    %58 = arith.truncf %54 : vector<8x64xf32> to vector<8x64xbf16>
    %c0_25 = arith.constant 0 : index
    %c0_26 = arith.constant 0 : index
    %59 = vector.load %arg8[%c0_25, %c0_26] : memref<64x34xbf16, #tpu.memory_space<vmem>>, vector<64x34xbf16>
    %cst_27 = arith.constant dense<0.000000e+00> : vector<8x34xf32>
    %60 = tpu.matmul %58, %59, %cst_27 {dimension_numbers = #tpu.dot_dimension_numbers<[1], [0], [0], [1], [0, 0, 1, 1], [], []>} : vector<8x64xbf16>, vector<64x34xbf16>, vector<8x34xf32> -> vector<8x34xf32>
    %61 = vector.extract_strided_slice %60 {offsets = [0, 2], sizes = [8, 16], strides = [1, 1]} : vector<8x34xf32> to vector<8x16xf32>
    %c0_28 = arith.constant 0 : index
    %c0_29 = arith.constant 0 : index
    %62 = vector.load %arg20[%c0_28, %c0_29] : memref<8x16xf32, #tpu.memory_space<vmem>>, vector<8x16xf32>
    tpu.vector_store %arg20[%c0_28, %c0_29], %61 {strides = array<i32>} : memref<8x16xf32, #tpu.memory_space<vmem>>, vector<8x16xf32>,
    %63 = vector.extract_strided_slice %60 {offsets = [0, 18], sizes = [8, 16], strides = [1, 1]} : vector<8x34xf32> to vector<8x16xf32>
    %c0_30 = arith.constant 0 : index
    %c0_31 = arith.constant 0 : index
    %64 = vector.load %arg21[%c0_30, %c0_31] : memref<8x16xf32, #tpu.memory_space<vmem>>, vector<8x16xf32>
    tpu.vector_store %arg21[%c0_30, %c0_31], %63 {strides = array<i32>} : memref<8x16xf32, #tpu.memory_space<vmem>>, vector<8x16xf32>,
    %65 = vector.extract_strided_slice %60 {offsets = [0, 0], sizes = [8, 2], strides = [1, 1]} : vector<8x34xf32> to vector<8x2xf32>
    %c0_32 = arith.constant 0 : index
    %c0_33 = arith.constant 0 : index
    %66 = vector.load %arg9[%c0_32, %c0_33] : memref<2x64xf32, #tpu.memory_space<vmem>>, vector<2x64xf32>
    %cst_34 = arith.constant dense<0.000000e+00> : vector<8x64xf32>
    %67 = tpu.matmul %65, %66, %cst_34 {dimension_numbers = #tpu.dot_dimension_numbers<[1], [0], [0], [1], [0, 0, 1, 1], [], []>} : vector<8x2xf32>, vector<2x64xf32>, vector<8x64xf32> -> vector<8x64xf32>
    %c0_35 = arith.constant 0 : index
    %c0_36 = arith.constant 0 : index
    %68 = vector.load %arg10[%c0_35, %c0_36] : memref<1x64xf32, #tpu.memory_space<vmem>>, vector<1x64xf32>
    %69 = vector.broadcast %68 : vector<1x64xf32> to vector<8x64xf32>
    %70 = arith.addf %67, %69 : vector<8x64xf32>
    %cst_37 = arith.constant 0.000000e+00 : f32
    %71 = vector.broadcast %cst_37 : f32 to vector<8x64xf32>
    %72 = arith.maximumf %70, %71 : vector<8x64xf32>
    %73 = math.absf %70 : vector<8x64xf32>
    %cst_38 = arith.constant 0.000000e+00 : f32
    %74 = vector.broadcast %cst_38 : f32 to vector<8x64xf32>
    %75 = arith.subf %74, %73 : vector<8x64xf32>
    %76 = math.exp %75 : vector<8x64xf32>
    %cst_39 = arith.constant 1.000000e+00 : f32
    %77 = vector.broadcast %cst_39 : f32 to vector<8x64xf32>
    %78 = arith.addf %77, %76 : vector<8x64xf32>
    %79 = math.log %78 : vector<8x64xf32>
    %80 = arith.addf %72, %79 : vector<8x64xf32>
    %c0_40 = arith.constant 0 : index
    %c0_41 = arith.constant 0 : index
    %81 = vector.load %arg18[%c0_40, %c0_41] : memref<8x64xf32, #tpu.memory_space<vmem>>, vector<8x64xf32>
    tpu.vector_store %arg18[%c0_40, %c0_41], %80 {strides = array<i32>} : memref<8x64xf32, #tpu.memory_space<vmem>>, vector<8x64xf32>,
    %c0_42 = arith.constant 0 : index
    %c0_43 = arith.constant 0 : index
    %82 = vector.load %arg11[%c0_42, %c0_43] : memref<16x64xf32, #tpu.memory_space<vmem>>, vector<16x64xf32>
    %c0_44 = arith.constant 0 : index
    %c0_45 = arith.constant 0 : index
    %83 = vector.load %arg16[%c0_44, %c0_45] : memref<16x64xf32, #tpu.memory_space<vmem>>, vector<16x64xf32>
    %c0_i32_46 = arith.constant 0 : i32
    %c8_i32 = arith.constant 8 : i32
    %84 = arith.muli %c0_i32_46, %c8_i32 : i32
    %85 = tpu.assume_multiple %84, 8 : i32
    %86 = arith.index_cast %85 : i32 to index
    %c0_47 = arith.constant 0 : index
    %87 = vector.load %arg18[%86, %c0_47] : memref<8x64xf32, #tpu.memory_space<vmem>>, vector<8x64xf32>
    %88 = arith.index_cast %85 : i32 to index
    %c0_48 = arith.constant 0 : index
    %89 = vector.load %arg19[%88, %c0_48] : memref<8x64xf32, #tpu.memory_space<vmem>>, vector<8x64xf32>
    %90 = arith.index_cast %85 : i32 to index
    %c0_49 = arith.constant 0 : index
    %91 = vector.load %arg20[%90, %c0_49] : memref<8x16xf32, #tpu.memory_space<vmem>>, vector<8x16xf32>
    %92 = arith.index_cast %85 : i32 to index
    %c0_50 = arith.constant 0 : index
    %93 = vector.load %arg21[%92, %c0_50] : memref<8x16xf32, #tpu.memory_space<vmem>>, vector<8x16xf32>
    %94 = vector.shape_cast %87 : vector<8x64xf32> to vector<8x1x64xf32>
    %95 = vector.shape_cast %82 : vector<16x64xf32> to vector<1x16x64xf32>
    %96 = vector.broadcast %94 : vector<8x1x64xf32> to vector<8x16x64xf32>
    %97 = vector.broadcast %95 : vector<1x16x64xf32> to vector<8x16x64xf32>
    %98 = arith.mulf %96, %97 : vector<8x16x64xf32>
    %99 = math.exp %98 : vector<8x16x64xf32>
    %100 = arith.mulf %87, %89 : vector<8x64xf32>
    %101 = vector.shape_cast %100 : vector<8x64xf32> to vector<8x1x64xf32>
    %102 = vector.shape_cast %91 : vector<8x16xf32> to vector<8x16x1xf32>
    %103 = vector.broadcast %101 : vector<8x1x64xf32> to vector<8x16x64xf32>
    %104 = vector.broadcast %102 : vector<8x16x1xf32> to vector<8x16x64xf32>
    %105 = arith.mulf %103, %104 : vector<8x16x64xf32>
    %106 = vector.extract_strided_slice %99 {offsets = [0, 0, 0], sizes = [1, 16, 64], strides = [1, 1, 1]} : vector<8x16x64xf32> to vector<1x16x64xf32>
    %107 = vector.shape_cast %106 : vector<1x16x64xf32> to vector<16x64xf32>
    %108 = arith.mulf %107, %83 : vector<16x64xf32>
    %109 = vector.extract_strided_slice %105 {offsets = [0, 0, 0], sizes = [1, 16, 64], strides = [1, 1, 1]} : vector<8x16x64xf32> to vector<1x16x64xf32>
    %110 = vector.shape_cast %109 : vector<1x16x64xf32> to vector<16x64xf32>
    %111 = arith.addf %108, %110 : vector<16x64xf32>
    %112 = vector.extract_strided_slice %99 {offsets = [1, 0, 0], sizes = [1, 16, 64], strides = [1, 1, 1]} : vector<8x16x64xf32> to vector<1x16x64xf32>
    %113 = vector.shape_cast %112 : vector<1x16x64xf32> to vector<16x64xf32>
    %114 = arith.mulf %113, %111 : vector<16x64xf32>
    %115 = vector.extract_strided_slice %105 {offsets = [1, 0, 0], sizes = [1, 16, 64], strides = [1, 1, 1]} : vector<8x16x64xf32> to vector<1x16x64xf32>
    %116 = vector.shape_cast %115 : vector<1x16x64xf32> to vector<16x64xf32>
    %117 = arith.addf %114, %116 : vector<16x64xf32>
    %118 = vector.extract_strided_slice %99 {offsets = [2, 0, 0], sizes = [1, 16, 64], strides = [1, 1, 1]} : vector<8x16x64xf32> to vector<1x16x64xf32>
    %119 = vector.shape_cast %118 : vector<1x16x64xf32> to vector<16x64xf32>
    %120 = arith.mulf %119, %117 : vector<16x64xf32>
    %121 = vector.extract_strided_slice %105 {offsets = [2, 0, 0], sizes = [1, 16, 64], strides = [1, 1, 1]} : vector<8x16x64xf32> to vector<1x16x64xf32>
    %122 = vector.shape_cast %121 : vector<1x16x64xf32> to vector<16x64xf32>
    %123 = arith.addf %120, %122 : vector<16x64xf32>
    %124 = vector.extract_strided_slice %99 {offsets = [3, 0, 0], sizes = [1, 16, 64], strides = [1, 1, 1]} : vector<8x16x64xf32> to vector<1x16x64xf32>
    %125 = vector.shape_cast %124 : vector<1x16x64xf32> to vector<16x64xf32>
    %126 = arith.mulf %125, %123 : vector<16x64xf32>
    %127 = vector.extract_strided_slice %105 {offsets = [3, 0, 0], sizes = [1, 16, 64], strides = [1, 1, 1]} : vector<8x16x64xf32> to vector<1x16x64xf32>
    %128 = vector.shape_cast %127 : vector<1x16x64xf32> to vector<16x64xf32>
    %129 = arith.addf %126, %128 : vector<16x64xf32>
    %130 = vector.extract_strided_slice %99 {offsets = [4, 0, 0], sizes = [1, 16, 64], strides = [1, 1, 1]} : vector<8x16x64xf32> to vector<1x16x64xf32>
    %131 = vector.shape_cast %130 : vector<1x16x64xf32> to vector<16x64xf32>
    %132 = arith.mulf %131, %129 : vector<16x64xf32>
    %133 = vector.extract_strided_slice %105 {offsets = [4, 0, 0], sizes = [1, 16, 64], strides = [1, 1, 1]} : vector<8x16x64xf32> to vector<1x16x64xf32>
    %134 = vector.shape_cast %133 : vector<1x16x64xf32> to vector<16x64xf32>
    %135 = arith.addf %132, %134 : vector<16x64xf32>
    %136 = vector.extract_strided_slice %99 {offsets = [5, 0, 0], sizes = [1, 16, 64], strides = [1, 1, 1]} : vector<8x16x64xf32> to vector<1x16x64xf32>
    %137 = vector.shape_cast %136 : vector<1x16x64xf32> to vector<16x64xf32>
    %138 = arith.mulf %137, %135 : vector<16x64xf32>
    %139 = vector.extract_strided_slice %105 {offsets = [5, 0, 0], sizes = [1, 16, 64], strides = [1, 1, 1]} : vector<8x16x64xf32> to vector<1x16x64xf32>
    %140 = vector.shape_cast %139 : vector<1x16x64xf32> to vector<16x64xf32>
    %141 = arith.addf %138, %140 : vector<16x64xf32>
    %142 = vector.extract_strided_slice %99 {offsets = [6, 0, 0], sizes = [1, 16, 64], strides = [1, 1, 1]} : vector<8x16x64xf32> to vector<1x16x64xf32>
    %143 = vector.shape_cast %142 : vector<1x16x64xf32> to vector<16x64xf32>
    %144 = arith.mulf %143, %141 : vector<16x64xf32>
    %145 = vector.extract_strided_slice %105 {offsets = [6, 0, 0], sizes = [1, 16, 64], strides = [1, 1, 1]} : vector<8x16x64xf32> to vector<1x16x64xf32>
    %146 = vector.shape_cast %145 : vector<1x16x64xf32> to vector<16x64xf32>
    %147 = arith.addf %144, %146 : vector<16x64xf32>
    %148 = vector.extract_strided_slice %99 {offsets = [7, 0, 0], sizes = [1, 16, 64], strides = [1, 1, 1]} : vector<8x16x64xf32> to vector<1x16x64xf32>
    %149 = vector.shape_cast %148 : vector<1x16x64xf32> to vector<16x64xf32>
    %150 = arith.mulf %149, %147 : vector<16x64xf32>
    %151 = vector.extract_strided_slice %105 {offsets = [7, 0, 0], sizes = [1, 16, 64], strides = [1, 1, 1]} : vector<8x16x64xf32> to vector<1x16x64xf32>
    %152 = vector.shape_cast %151 : vector<1x16x64xf32> to vector<16x64xf32>
    %153 = arith.addf %150, %152 : vector<16x64xf32>
    %154 = vector.shape_cast %111 : vector<16x64xf32> to vector<1x16x64xf32>
    %155 = vector.shape_cast %117 : vector<16x64xf32> to vector<1x16x64xf32>
    %156 = vector.shape_cast %123 : vector<16x64xf32> to vector<1x16x64xf32>
    %157 = vector.shape_cast %129 : vector<16x64xf32> to vector<1x16x64xf32>
    %158 = vector.shape_cast %135 : vector<16x64xf32> to vector<1x16x64xf32>
    %159 = vector.shape_cast %141 : vector<16x64xf32> to vector<1x16x64xf32>
    %160 = vector.shape_cast %147 : vector<16x64xf32> to vector<1x16x64xf32>
    %161 = vector.shape_cast %153 : vector<16x64xf32> to vector<1x16x64xf32>
    %162 = tpu.concatenate %154, %155, %156, %157, %158, %159, %160, %161 in 0 : vector<1x16x64xf32>, vector<1x16x64xf32>, vector<1x16x64xf32>, vector<1x16x64xf32>, vector<1x16x64xf32>, vector<1x16x64xf32>, vector<1x16x64xf32>, vector<1x16x64xf32> -> vector<8x16x64xf32>
    %c0_51 = arith.constant 0 : index
    %163 = arith.index_cast %85 : i32 to index
    %c0_52 = arith.constant 0 : index
    %c0_53 = arith.constant 0 : index
    %164 = vector.load %arg15[%c0_51, %163, %c0_52, %c0_53] : memref<1x8x16x64xf32, #tpu.memory_space<vmem>>, vector<1x8x16x64xf32>
    %165 = vector.shape_cast %164 : vector<1x8x16x64xf32> to vector<8x16x64xf32>
    %166 = vector.shape_cast %162 : vector<8x16x64xf32> to vector<1x8x16x64xf32>
    tpu.vector_store %arg15[%c0_51, %163, %c0_52, %c0_53], %166 {strides = array<i32>} : memref<1x8x16x64xf32, #tpu.memory_space<vmem>>, vector<1x8x16x64xf32>,
    %167 = vector.shape_cast %93 : vector<8x16xf32> to vector<8x16x1xf32>
    %168 = vector.broadcast %167 : vector<8x16x1xf32> to vector<8x16x64xf32>
    %169 = arith.mulf %162, %168 : vector<8x16x64xf32>
    %cst_54 = arith.constant dense<0.000000e+00> : vector<8x64xf32>
    %170 = vector.multi_reduction <add>, %169, %cst_54 [1] : vector<8x16x64xf32> to vector<8x64xf32>
    %171 = arith.index_cast %85 : i32 to index
    %c0_55 = arith.constant 0 : index
    %172 = vector.load %arg22[%171, %c0_55] : memref<8x64xf32, #tpu.memory_space<vmem>>, vector<8x64xf32>
    tpu.vector_store %arg22[%171, %c0_55], %170 {strides = array<i32>} : memref<8x64xf32, #tpu.memory_space<vmem>>, vector<8x64xf32>,
    %c1_i32 = arith.constant 1 : i32
    %c0_56 = arith.constant 0 : index
    %c0_57 = arith.constant 0 : index
    %173 = vector.load %arg16[%c0_56, %c0_57] : memref<16x64xf32, #tpu.memory_space<vmem>>, vector<16x64xf32>
    tpu.vector_store %arg16[%c0_56, %c0_57], %153 {strides = array<i32>} : memref<16x64xf32, #tpu.memory_space<vmem>>, vector<16x64xf32>,
    %c0_58 = arith.constant 0 : index
    %c0_59 = arith.constant 0 : index
    %174 = vector.load %arg22[%c0_58, %c0_59] : memref<8x64xf32, #tpu.memory_space<vmem>>, vector<8x64xf32>
    %c0_60 = arith.constant 0 : index
    %c0_61 = arith.constant 0 : index
    %175 = vector.load %arg12[%c0_60, %c0_61] : memref<1x64xf32, #tpu.memory_space<vmem>>, vector<1x64xf32>
    %c0_62 = arith.constant 0 : index
    %c0_63 = arith.constant 0 : index
    %176 = vector.load %arg19[%c0_62, %c0_63] : memref<8x64xf32, #tpu.memory_space<vmem>>, vector<8x64xf32>
    %177 = vector.broadcast %175 : vector<1x64xf32> to vector<8x64xf32>
    %178 = arith.mulf %177, %176 : vector<8x64xf32>
    %179 = arith.addf %174, %178 : vector<8x64xf32>
    %cst_64 = arith.constant 0.000000e+00 : f32
    %180 = vector.broadcast %cst_64 : f32 to vector<8x64xf32>
    %181 = arith.subf %180, %22 : vector<8x64xf32>
    %182 = math.exp %181 : vector<8x64xf32>
    %cst_65 = arith.constant 1.000000e+00 : f32
    %183 = vector.broadcast %cst_65 : f32 to vector<8x64xf32>
    %184 = arith.addf %183, %182 : vector<8x64xf32>
    %185 = tpu.reciprocal %184 {approx = true} : vector<8x64xf32> -> vector<8x64xf32>
    %186 = arith.mulf %22, %185 : vector<8x64xf32>
    %187 = arith.mulf %179, %186 : vector<8x64xf32>
    %188 = arith.truncf %187 : vector<8x64xf32> to vector<8x64xbf16>
    %c0_66 = arith.constant 0 : index
    %c0_67 = arith.constant 0 : index
    %189 = vector.load %arg13[%c0_66, %c0_67] : memref<64x128xbf16, #tpu.memory_space<vmem>>, vector<64x128xbf16>
    %cst_68 = arith.constant dense<0.000000e+00> : vector<8x128xf32>
    %190 = tpu.matmul %188, %189, %cst_68 {dimension_numbers = #tpu.dot_dimension_numbers<[1], [0], [0], [1], [0, 0, 1, 1], [], []>} : vector<8x64xbf16>, vector<64x128xbf16>, vector<8x128xf32> -> vector<8x128xf32>
    %191 = arith.addf %190, %4 : vector<8x128xf32>
    %c0_69 = arith.constant 0 : index
    %c0_70 = arith.constant 0 : index
    %c0_71 = arith.constant 0 : index
    %192 = vector.load %arg14[%c0_69, %c0_70, %c0_71] : memref<1x8x128xf32, #tpu.memory_space<vmem>>, vector<1x8x128xf32>
    %193 = vector.shape_cast %192 : vector<1x8x128xf32> to vector<8x128xf32>
    %194 = vector.shape_cast %191 : vector<8x128xf32> to vector<1x8x128xf32>
    tpu.vector_store %arg14[%c0_69, %c0_70, %c0_71], %194 {strides = array<i32>} : memref<1x8x128xf32, #tpu.memory_space<vmem>>, vector<1x8x128xf32>,
    return
  }
  func.func @transform_0(%arg0: i32, %arg1: i32) -> (i32, i32, i32) {
    %c0_i32 = arith.constant 0 : i32
    %c0_i32_0 = arith.constant 0 : i32
    return %arg0, %arg1, %c0_i32 : i32, i32, i32
  }
  func.func @transform_1(%arg0: i32, %arg1: i32) -> (i32, i32) {
    %c0_i32 = arith.constant 0 : i32
    %c0_i32_0 = arith.constant 0 : i32
    %c0_i32_1 = arith.constant 0 : i32
    return %c0_i32, %c0_i32_0 : i32, i32
  }
  func.func @transform_2(%arg0: i32, %arg1: i32) -> (i32, i32) {
    %c0_i32 = arith.constant 0 : i32
    %c0_i32_0 = arith.constant 0 : i32
    %c0_i32_1 = arith.constant 0 : i32
    return %c0_i32, %c0_i32_0 : i32, i32
  }
  func.func @transform_3(%arg0: i32, %arg1: i32) -> (i32, i32) {
    %c0_i32 = arith.constant 0 : i32
    %c0_i32_0 = arith.constant 0 : i32
    %c0_i32_1 = arith.constant 0 : i32
    return %c0_i32, %c0_i32_0 : i32, i32
  }
  func.func @transform_4(%arg0: i32, %arg1: i32) -> (i32, i32) {
    %c0_i32 = arith.constant 0 : i32
    %c0_i32_0 = arith.constant 0 : i32
    %c0_i32_1 = arith.constant 0 : i32
    return %c0_i32, %c0_i32_0 : i32, i32
  }
  func.func @transform_5(%arg0: i32, %arg1: i32) -> (i32, i32) {
    %c0_i32 = arith.constant 0 : i32
    %c0_i32_0 = arith.constant 0 : i32
    %c0_i32_1 = arith.constant 0 : i32
    return %c0_i32, %c0_i32_0 : i32, i32
  }
  func.func @transform_6(%arg0: i32, %arg1: i32) -> (i32, i32) {
    %c0_i32 = arith.constant 0 : i32
    %c0_i32_0 = arith.constant 0 : i32
    %c0_i32_1 = arith.constant 0 : i32
    return %c0_i32, %c0_i32_0 : i32, i32
  }
  func.func @transform_7(%arg0: i32, %arg1: i32) -> (i32, i32) {
    %c0_i32 = arith.constant 0 : i32
    %c0_i32_0 = arith.constant 0 : i32
    %c0_i32_1 = arith.constant 0 : i32
    return %c0_i32, %c0_i32_0 : i32, i32
  }
  func.func @transform_8(%arg0: i32, %arg1: i32) -> (i32, i32) {
    %c0_i32 = arith.constant 0 : i32
    %c0_i32_0 = arith.constant 0 : i32
    %c0_i32_1 = arith.constant 0 : i32
    return %c0_i32, %c0_i32_0 : i32, i32
  }
  func.func @transform_9(%arg0: i32, %arg1: i32) -> (i32, i32) {
    %c0_i32 = arith.constant 0 : i32
    %c0_i32_0 = arith.constant 0 : i32
    %c0_i32_1 = arith.constant 0 : i32
    return %c0_i32, %c0_i32_0 : i32, i32
  }
  func.func @transform_10(%arg0: i32, %arg1: i32) -> (i32, i32) {
    %c0_i32 = arith.constant 0 : i32
    %c0_i32_0 = arith.constant 0 : i32
    %c0_i32_1 = arith.constant 0 : i32
    return %c0_i32, %c0_i32_0 : i32, i32
  }
  func.func @transform_11(%arg0: i32, %arg1: i32) -> (i32, i32) {
    %c0_i32 = arith.constant 0 : i32
    %c0_i32_0 = arith.constant 0 : i32
    %c0_i32_1 = arith.constant 0 : i32
    return %c0_i32, %c0_i32_0 : i32, i32
  }
  func.func @transform_12(%arg0: i32, %arg1: i32) -> (i32, i32, i32) {
    %c0_i32 = arith.constant 0 : i32
    %c0_i32_0 = arith.constant 0 : i32
    return %arg0, %arg1, %c0_i32 : i32, i32, i32
  }
  func.func @transform_13(%arg0: i32, %arg1: i32) -> (i32, i32, i32, i32) {
    %c0_i32 = arith.constant 0 : i32
    %c0_i32_0 = arith.constant 0 : i32
    %c0_i32_1 = arith.constant 0 : i32
    return %arg0, %arg1, %c0_i32, %c0_i32_0 : i32, i32, i32, i32
  }
}

module attributes {stable_mosaic.version = 11 : i64} {
  func.func @_residual_block_kernel(%arg0: i32, %arg1: i32, %arg2: memref<1x8x128xf32, #tpu.memory_space<vmem>>, %arg3: memref<1x128xf32, #tpu.memory_space<vmem>>, %arg4: memref<128x64xbf16, #tpu.memory_space<vmem>>, %arg5: memref<128x64xbf16, #tpu.memory_space<vmem>>, %arg6: memref<4x64xf32, #tpu.memory_space<vmem>>, %arg7: memref<1x64xf32, #tpu.memory_space<vmem>>, %arg8: memref<64x34xbf16, #tpu.memory_space<vmem>>, %arg9: memref<2x64xf32, #tpu.memory_space<vmem>>, %arg10: memref<1x64xf32, #tpu.memory_space<vmem>>, %arg11: memref<16x64xf32, #tpu.memory_space<vmem>>, %arg12: memref<1x64xf32, #tpu.memory_space<vmem>>, %arg13: memref<64x128xbf16, #tpu.memory_space<vmem>>, %arg14: memref<1x8x128xf32, #tpu.memory_space<vmem>>, %arg15: memref<1x8x16x64xf32, #tpu.memory_space<vmem>>, %arg16: memref<16x64xf32, #tpu.memory_space<vmem>>, %arg17: memref<3x64xf32, #tpu.memory_space<vmem>>, %arg18: memref<8x64xf32, #tpu.memory_space<vmem>>, %arg19: memref<8x64xf32, #tpu.memory_space<vmem>>, %arg20: memref<8x16xf32, #tpu.memory_space<vmem>>, %arg21: memref<8x16xf32, #tpu.memory_space<vmem>>, %arg22: memref<8x64xf32, #tpu.memory_space<vmem>>) attributes {dimension_semantics = [#tpu.dimension_semantics<parallel>, #tpu.dimension_semantics<arbitrary>], iteration_bounds = array<i64: 2, 1>, scalar_prefetch = 0 : i64, scratch_operands = 7 : i64, tpu.core_type = #tpu.core_type<tc>, window_params = [{transform_indices = @transform_0, window_bounds = array<i64: 1, 8, 128>}, {pipeline_mode = #tpu.pipeline_mode<synchronous>, transform_indices = @transform_1, window_bounds = array<i64: 1, 128>}, {pipeline_mode = #tpu.pipeline_mode<synchronous>, transform_indices = @transform_2, window_bounds = array<i64: 128, 64>}, {pipeline_mode = #tpu.pipeline_mode<synchronous>, transform_indices = @transform_3, window_bounds = array<i64: 128, 64>}, {pipeline_mode = #tpu.pipeline_mode<synchronous>, transform_indices = @transform_4, window_bounds = array<i64: 4, 64>}, {pipeline_mode = #tpu.pipeline_mode<synchronous>, transform_indices = @transform_5, window_bounds = array<i64: 1, 64>}, {pipeline_mode = #tpu.pipeline_mode<synchronous>, transform_indices = @transform_6, window_bounds = array<i64: 64, 34>}, {pipeline_mode = #tpu.pipeline_mode<synchronous>, transform_indices = @transform_7, window_bounds = array<i64: 2, 64>}, {pipeline_mode = #tpu.pipeline_mode<synchronous>, transform_indices = @transform_8, window_bounds = array<i64: 1, 64>}, {pipeline_mode = #tpu.pipeline_mode<synchronous>, transform_indices = @transform_9, window_bounds = array<i64: 16, 64>}, {pipeline_mode = #tpu.pipeline_mode<synchronous>, transform_indices = @transform_10, window_bounds = array<i64: 1, 64>}, {pipeline_mode = #tpu.pipeline_mode<synchronous>, transform_indices = @transform_11, window_bounds = array<i64: 64, 128>}, {transform_indices = @transform_12, window_bounds = array<i64: 1, 8, 128>}, {transform_indices = @transform_13, window_bounds = array<i64: 1, 8, 16, 64>}]} {
    %c0_i32 = arith.constant 0 : i32
    %0 = arith.cmpi eq, %arg1, %c0_i32 : i32
    %1 = arith.extui %0 : i1 to i32
    %c0_i32_0 = arith.constant 0 : i32
    %2 = arith.cmpi ne, %1, %c0_i32_0 : i32
    scf.if %2 {
      %cst_72 = arith.constant 0.000000e+00 : f32
      %195 = vector.broadcast %cst_72 : f32 to vector<16x64xf32>
      %c0_73 = arith.constant 0 : index
      %c0_74 = arith.constant 0 : index
      %196 = vector.load %arg16[%c0_73, %c0_74] : memref<16x64xf32, #tpu.memory_space<vmem>>, vector<16x64xf32>
      tpu.vector_store %arg16[%c0_73, %c0_74], %195 {strides = array<i32>} : memref<16x64xf32, #tpu.memory_space<vmem>>, vector<16x64xf32>,
      %cst_75 = arith.constant 0.000000e+00 : f32
      %197 = vector.broadcast %cst_75 : f32 to vector<3x64xf32>
      %c0_76 = arith.constant 0 : index
      %c0_77 = arith.constant 0 : index
      %198 = vector.load %arg17[%c0_76, %c0_77] : memref<3x64xf32, #tpu.memory_space<vmem>>, vector<3x64xf32>
      tpu.vector_store %arg17[%c0_76, %c0_77], %197 {strides = array<i32>} : memref<3x64xf32, #tpu.memory_space<vmem>>, vector<3x64xf32>,
    } else {
    }
    %c0 = arith.constant 0 : index
    %c0_1 = arith.constant 0 : index
    %c0_2 = arith.constant 0 : index
    %3 = vector.load %arg2[%c0, %c0_1, %c0_2] : memref<1x8x128xf32, #tpu.memory_space<vmem>>, vector<1x8x128xf32>
    %4 = vector.shape_cast %3 : vector<1x8x128xf32> to vector<8x128xf32>
    %5 = arith.mulf %4, %4 : vector<8x128xf32>
    %cst = arith.constant dense<0.000000e+00> : vector<8xf32>
    %6 = vector.multi_reduction <add>, %5, %cst [1] : vector<8x128xf32> to vector<8xf32>
    %7 = vector.shape_cast %6 : vector<8xf32> to vector<8x1xf32>
    %cst_3 = arith.constant 3.125000e-02 : f32
    %8 = vector.broadcast %cst_3 : f32 to vector<8x1xf32>
    %9 = arith.mulf %7, %8 : vector<8x1xf32>
    %cst_4 = arith.constant 9.99999974E-6 : f32
    %10 = vector.broadcast %cst_4 : f32 to vector<8x1xf32>
    %11 = arith.addf %9, %10 : vector<8x1xf32>
    %12 = math.rsqrt %11 : vector<8x1xf32>
    %13 = vector.broadcast %12 : vector<8x1xf32> to vector<8x128xf32>
    %14 = arith.mulf %4, %13 : vector<8x128xf32>
    %c0_5 = arith.constant 0 : index
    %c0_6 = arith.constant 0 : index
    %15 = vector.load %arg3[%c0_5, %c0_6] : memref<1x128xf32, #tpu.memory_space<vmem>>, vector<1x128xf32>
    %16 = vector.broadcast %15 : vector<1x128xf32> to vector<8x128xf32>
    %17 = arith.mulf %14, %16 : vector<8x128xf32>
    %18 = arith.truncf %17 : vector<8x128xf32> to vector<8x128xbf16>
    %c0_7 = arith.constant 0 : index
    %c0_8 = arith.constant 0 : index
    %19 = vector.load %arg4[%c0_7, %c0_8] : memref<128x64xbf16, #tpu.memory_space<vmem>>, vector<128x64xbf16>
    %cst_9 = arith.constant dense<0.000000e+00> : vector<8x64xf32>
    %20 = tpu.matmul %18, %19, %cst_9 {dimension_numbers = #tpu.dot_dimension_numbers<[1], [0], [0], [1], [0, 0, 1, 1], [], []>} : vector<8x128xbf16>, vector<128x64xbf16>, vector<8x64xf32> -> vector<8x64xf32>
    %c0_10 = arith.constant 0 : index
    %c0_11 = arith.constant 0 : index
    %21 = vector.load %arg5[%c0_10, %c0_11] : memref<128x64xbf16, #tpu.memory_space<vmem>>, vector<128x64xbf16>
    %cst_12 = arith.constant dense<0.000000e+00> : vector<8x64xf32>
    %22 = tpu.matmul %18, %21, %cst_12 {dimension_numbers = #tpu.dot_dimension_numbers<[1], [0], [0], [1], [0, 0, 1, 1], [], []>} : vector<8x128xbf16>, vector<128x64xbf16>, vector<8x64xf32> -> vector<8x64xf32>
    %c0_13 = arith.constant 0 : index
    %c0_14 = arith.constant 0 : index
    %23 = vector.load %arg17[%c0_13, %c0_14] : memref<3x64xf32, #tpu.memory_space<vmem>>, vector<3x64xf32>
    %24 = tpu.concatenate %23, %20 in 0 : vector<3x64xf32>, vector<8x64xf32> -> vector<11x64xf32>
    %c0_15 = arith.constant 0 : index
    %c0_16 = arith.constant 0 : index
    %25 = vector.load %arg6[%c0_15, %c0_16] : memref<4x64xf32, #tpu.memory_space<vmem>>, vector<4x64xf32>
    %c0_17 = arith.constant 0 : index
    %c0_18 = arith.constant 0 : index
    %26 = vector.load %arg7[%c0_17, %c0_18] : memref<1x64xf32, #tpu.memory_space<vmem>>, vector<1x64xf32>
    %27 = vector.extract_strided_slice %25 {offsets = [0, 0], sizes = [1, 64], strides = [1, 1]} : vector<4x64xf32> to vector<1x64xf32>
    %28 = vector.extract_strided_slice %24 {offsets = [0, 0], sizes = [8, 64], strides = [1, 1]} : vector<11x64xf32> to vector<8x64xf32>
    %29 = vector.broadcast %27 : vector<1x64xf32> to vector<8x64xf32>
    %30 = arith.mulf %29, %28 : vector<8x64xf32>
    %31 = vector.broadcast %26 : vector<1x64xf32> to vector<8x64xf32>
    %32 = arith.addf %31, %30 : vector<8x64xf32>
    %33 = vector.extract_strided_slice %25 {offsets = [1, 0], sizes = [1, 64], strides = [1, 1]} : vector<4x64xf32> to vector<1x64xf32>
    %34 = vector.extract_strided_slice %24 {offsets = [1, 0], sizes = [8, 64], strides = [1, 1]} : vector<11x64xf32> to vector<8x64xf32>
    %35 = vector.broadcast %33 : vector<1x64xf32> to vector<8x64xf32>
    %36 = arith.mulf %35, %34 : vector<8x64xf32>
    %37 = arith.addf %32, %36 : vector<8x64xf32>
    %38 = vector.extract_strided_slice %25 {offsets = [2, 0], sizes = [1, 64], strides = [1, 1]} : vector<4x64xf32> to vector<1x64xf32>
    %39 = vector.extract_strided_slice %24 {offsets = [2, 0], sizes = [8, 64], strides = [1, 1]} : vector<11x64xf32> to vector<8x64xf32>
    %40 = vector.broadcast %38 : vector<1x64xf32> to vector<8x64xf32>
    %41 = arith.mulf %40, %39 : vector<8x64xf32>
    %42 = arith.addf %37, %41 : vector<8x64xf32>
    %43 = vector.extract_strided_slice %25 {offsets = [3, 0], sizes = [1, 64], strides = [1, 1]} : vector<4x64xf32> to vector<1x64xf32>
    %44 = vector.extract_strided_slice %24 {offsets = [3, 0], sizes = [8, 64], strides = [1, 1]} : vector<11x64xf32> to vector<8x64xf32>
    %45 = vector.broadcast %43 : vector<1x64xf32> to vector<8x64xf32>
    %46 = arith.mulf %45, %44 : vector<8x64xf32>
    %47 = arith.addf %42, %46 : vector<8x64xf32>
    %cst_19 = arith.constant 0.000000e+00 : f32
    %48 = vector.broadcast %cst_19 : f32 to vector<8x64xf32>
    %49 = arith.subf %48, %47 : vector<8x64xf32>
    %50 = math.exp %49 : vector<8x64xf32>
    %cst_20 = arith.constant 1.000000e+00 : f32
    %51 = vector.broadcast %cst_20 : f32 to vector<8x64xf32>
    %52 = arith.addf %51, %50 : vector<8x64xf32>
    %53 = tpu.reciprocal %52 {approx = true} : vector<8x64xf32> -> vector<8x64xf32>
    %54 = arith.mulf %47, %53 : vector<8x64xf32>
    %55 = vector.extract_strided_slice %24 {offsets = [8, 0], sizes = [3, 64], strides = [1, 1]} : vector<11x64xf32> to vector<3x64xf32>
    %c0_21 = arith.constant 0 : index
    %c0_22 = arith.constant 0 : index
    %56 = vector.load %arg17[%c0_21, %c0_22] : memref<3x64xf32, #tpu.memory_space<vmem>>, vector<3x64xf32>
    tpu.vector_store %arg17[%c0_21, %c0_22], %55 {strides = array<i32>} : memref<3x64xf32, #tpu.memory_space<vmem>>, vector<3x64xf32>,
    %c0_23 = arith.constant 0 : index
    %c0_24 = arith.constant 0 : index
    %57 = vector.load %arg19[%c0_23, %c0_24] : memref<8x64xf32, #tpu.memory_space<vmem>>, vector<8x64xf32>
    tpu.vector_store %arg19[%c0_23, %c0_24], %54 {strides = array<i32>} : memref<8x64xf32, #tpu.memory_space<vmem>>, vector<8x64xf32>,
    %58 = arith.truncf %54 : vector<8x64xf32> to vector<8x64xbf16>
    %c0_25 = arith.constant 0 : index
    %c0_26 = arith.constant 0 : index
    %59 = vector.load %arg8[%c0_25, %c0_26] : memref<64x34xbf16, #tpu.memory_space<vmem>>, vector<64x34xbf16>
    %cst_27 = arith.constant dense<0.000000e+00> : vector<8x34xf32>
    %60 = tpu.matmul %58, %59, %cst_27 {dimension_numbers = #tpu.dot_dimension_numbers<[1], [0], [0], [1], [0, 0, 1, 1], [], []>} : vector<8x64xbf16>, vector<64x34xbf16>, vector<8x34xf32> -> vector<8x34xf32>
    %61 = vector.extract_strided_slice %60 {offsets = [0, 2], sizes = [8, 16], strides = [1, 1]} : vector<8x34xf32> to vector<8x16xf32>
    %c0_28 = arith.constant 0 : index
    %c0_29 = arith.constant 0 : index
    %62 = vector.load %arg20[%c0_28, %c0_29] : memref<8x16xf32, #tpu.memory_space<vmem>>, vector<8x16xf32>
    tpu.vector_store %arg20[%c0_28, %c0_29], %61 {strides = array<i32>} : memref<8x16xf32, #tpu.memory_space<vmem>>, vector<8x16xf32>,
    %63 = vector.extract_strided_slice %60 {offsets = [0, 18], sizes = [8, 16], strides = [1, 1]} : vector<8x34xf32> to vector<8x16xf32>
    %c0_30 = arith.constant 0 : index
    %c0_31 = arith.constant 0 : index
    %64 = vector.load %arg21[%c0_30, %c0_31] : memref<8x16xf32, #tpu.memory_space<vmem>>, vector<8x16xf32>
    tpu.vector_store %arg21[%c0_30, %c0_31], %63 {strides = array<i32>} : memref<8x16xf32, #tpu.memory_space<vmem>>, vector<8x16xf32>,
    %65 = vector.extract_strided_slice %60 {offsets = [0, 0], sizes = [8, 2], strides = [1, 1]} : vector<8x34xf32> to vector<8x2xf32>
    %c0_32 = arith.constant 0 : index
    %c0_33 = arith.constant 0 : index
    %66 = vector.load %arg9[%c0_32, %c0_33] : memref<2x64xf32, #tpu.memory_space<vmem>>, vector<2x64xf32>
    %cst_34 = arith.constant dense<0.000000e+00> : vector<8x64xf32>
    %67 = tpu.matmul %65, %66, %cst_34 {dimension_numbers = #tpu.dot_dimension_numbers<[1], [0], [0], [1], [0, 0, 1, 1], [], []>} : vector<8x2xf32>, vector<2x64xf32>, vector<8x64xf32> -> vector<8x64xf32>
    %c0_35 = arith.constant 0 : index
    %c0_36 = arith.constant 0 : index
    %68 = vector.load %arg10[%c0_35, %c0_36] : memref<1x64xf32, #tpu.memory_space<vmem>>, vector<1x64xf32>
    %69 = vector.broadcast %68 : vector<1x64xf32> to vector<8x64xf32>
    %70 = arith.addf %67, %69 : vector<8x64xf32>
    %cst_37 = arith.constant 0.000000e+00 : f32
    %71 = vector.broadcast %cst_37 : f32 to vector<8x64xf32>
    %72 = arith.maximumf %70, %71 : vector<8x64xf32>
    %73 = math.absf %70 : vector<8x64xf32>
    %cst_38 = arith.constant 0.000000e+00 : f32
    %74 = vector.broadcast %cst_38 : f32 to vector<8x64xf32>
    %75 = arith.subf %74, %73 : vector<8x64xf32>
    %76 = math.exp %75 : vector<8x64xf32>
    %cst_39 = arith.constant 1.000000e+00 : f32
    %77 = vector.broadcast %cst_39 : f32 to vector<8x64xf32>
    %78 = arith.addf %77, %76 : vector<8x64xf32>
    %79 = math.log %78 : vector<8x64xf32>
    %80 = arith.addf %72, %79 : vector<8x64xf32>
    %c0_40 = arith.constant 0 : index
    %c0_41 = arith.constant 0 : index
    %81 = vector.load %arg18[%c0_40, %c0_41] : memref<8x64xf32, #tpu.memory_space<vmem>>, vector<8x64xf32>
    tpu.vector_store %arg18[%c0_40, %c0_41], %80 {strides = array<i32>} : memref<8x64xf32, #tpu.memory_space<vmem>>, vector<8x64xf32>,
    %c0_42 = arith.constant 0 : index
    %c0_43 = arith.constant 0 : index
    %82 = vector.load %arg11[%c0_42, %c0_43] : memref<16x64xf32, #tpu.memory_space<vmem>>, vector<16x64xf32>
    %c0_44 = arith.constant 0 : index
    %c0_45 = arith.constant 0 : index
    %83 = vector.load %arg16[%c0_44, %c0_45] : memref<16x64xf32, #tpu.memory_space<vmem>>, vector<16x64xf32>
    %c0_i32_46 = arith.constant 0 : i32
    %c8_i32 = arith.constant 8 : i32
    %84 = arith.muli %c0_i32_46, %c8_i32 : i32
    %85 = tpu.assume_multiple %84, 8 : i32
    %86 = arith.index_cast %85 : i32 to index
    %c0_47 = arith.constant 0 : index
    %87 = vector.load %arg18[%86, %c0_47] : memref<8x64xf32, #tpu.memory_space<vmem>>, vector<8x64xf32>
    %88 = arith.index_cast %85 : i32 to index
    %c0_48 = arith.constant 0 : index
    %89 = vector.load %arg19[%88, %c0_48] : memref<8x64xf32, #tpu.memory_space<vmem>>, vector<8x64xf32>
    %90 = arith.index_cast %85 : i32 to index
    %c0_49 = arith.constant 0 : index
    %91 = vector.load %arg20[%90, %c0_49] : memref<8x16xf32, #tpu.memory_space<vmem>>, vector<8x16xf32>
    %92 = arith.index_cast %85 : i32 to index
    %c0_50 = arith.constant 0 : index
    %93 = vector.load %arg21[%92, %c0_50] : memref<8x16xf32, #tpu.memory_space<vmem>>, vector<8x16xf32>
    %94 = vector.shape_cast %87 : vector<8x64xf32> to vector<8x1x64xf32>
    %95 = vector.shape_cast %82 : vector<16x64xf32> to vector<1x16x64xf32>
    %96 = vector.broadcast %94 : vector<8x1x64xf32> to vector<8x16x64xf32>
    %97 = vector.broadcast %95 : vector<1x16x64xf32> to vector<8x16x64xf32>
    %98 = arith.mulf %96, %97 : vector<8x16x64xf32>
    %99 = math.exp %98 : vector<8x16x64xf32>
    %100 = arith.mulf %87, %89 : vector<8x64xf32>
    %101 = vector.shape_cast %100 : vector<8x64xf32> to vector<8x1x64xf32>
    %102 = vector.shape_cast %91 : vector<8x16xf32> to vector<8x16x1xf32>
    %103 = vector.broadcast %101 : vector<8x1x64xf32> to vector<8x16x64xf32>
    %104 = vector.broadcast %102 : vector<8x16x1xf32> to vector<8x16x64xf32>
    %105 = arith.mulf %103, %104 : vector<8x16x64xf32>
    %106 = vector.extract_strided_slice %99 {offsets = [0, 0, 0], sizes = [1, 16, 64], strides = [1, 1, 1]} : vector<8x16x64xf32> to vector<1x16x64xf32>
    %107 = vector.shape_cast %106 : vector<1x16x64xf32> to vector<16x64xf32>
    %108 = arith.mulf %107, %83 : vector<16x64xf32>
    %109 = vector.extract_strided_slice %105 {offsets = [0, 0, 0], sizes = [1, 16, 64], strides = [1, 1, 1]} : vector<8x16x64xf32> to vector<1x16x64xf32>
    %110 = vector.shape_cast %109 : vector<1x16x64xf32> to vector<16x64xf32>
    %111 = arith.addf %108, %110 : vector<16x64xf32>
    %112 = vector.extract_strided_slice %99 {offsets = [1, 0, 0], sizes = [1, 16, 64], strides = [1, 1, 1]} : vector<8x16x64xf32> to vector<1x16x64xf32>
    %113 = vector.shape_cast %112 : vector<1x16x64xf32> to vector<16x64xf32>
    %114 = arith.mulf %113, %111 : vector<16x64xf32>
    %115 = vector.extract_strided_slice %105 {offsets = [1, 0, 0], sizes = [1, 16, 64], strides = [1, 1, 1]} : vector<8x16x64xf32> to vector<1x16x64xf32>
    %116 = vector.shape_cast %115 : vector<1x16x64xf32> to vector<16x64xf32>
    %117 = arith.addf %114, %116 : vector<16x64xf32>
    %118 = vector.extract_strided_slice %99 {offsets = [2, 0, 0], sizes = [1, 16, 64], strides = [1, 1, 1]} : vector<8x16x64xf32> to vector<1x16x64xf32>
    %119 = vector.shape_cast %118 : vector<1x16x64xf32> to vector<16x64xf32>
    %120 = arith.mulf %119, %117 : vector<16x64xf32>
    %121 = vector.extract_strided_slice %105 {offsets = [2, 0, 0], sizes = [1, 16, 64], strides = [1, 1, 1]} : vector<8x16x64xf32> to vector<1x16x64xf32>
    %122 = vector.shape_cast %121 : vector<1x16x64xf32> to vector<16x64xf32>
    %123 = arith.addf %120, %122 : vector<16x64xf32>
    %124 = vector.extract_strided_slice %99 {offsets = [3, 0, 0], sizes = [1, 16, 64], strides = [1, 1, 1]} : vector<8x16x64xf32> to vector<1x16x64xf32>
    %125 = vector.shape_cast %124 : vector<1x16x64xf32> to vector<16x64xf32>
    %126 = arith.mulf %125, %123 : vector<16x64xf32>
    %127 = vector.extract_strided_slice %105 {offsets = [3, 0, 0], sizes = [1, 16, 64], strides = [1, 1, 1]} : vector<8x16x64xf32> to vector<1x16x64xf32>
    %128 = vector.shape_cast %127 : vector<1x16x64xf32> to vector<16x64xf32>
    %129 = arith.addf %126, %128 : vector<16x64xf32>
    %130 = vector.extract_strided_slice %99 {offsets = [4, 0, 0], sizes = [1, 16, 64], strides = [1, 1, 1]} : vector<8x16x64xf32> to vector<1x16x64xf32>
    %131 = vector.shape_cast %130 : vector<1x16x64xf32> to vector<16x64xf32>
    %132 = arith.mulf %131, %129 : vector<16x64xf32>
    %133 = vector.extract_strided_slice %105 {offsets = [4, 0, 0], sizes = [1, 16, 64], strides = [1, 1, 1]} : vector<8x16x64xf32> to vector<1x16x64xf32>
    %134 = vector.shape_cast %133 : vector<1x16x64xf32> to vector<16x64xf32>
    %135 = arith.addf %132, %134 : vector<16x64xf32>
    %136 = vector.extract_strided_slice %99 {offsets = [5, 0, 0], sizes = [1, 16, 64], strides = [1, 1, 1]} : vector<8x16x64xf32> to vector<1x16x64xf32>
    %137 = vector.shape_cast %136 : vector<1x16x64xf32> to vector<16x64xf32>
    %138 = arith.mulf %137, %135 : vector<16x64xf32>
    %139 = vector.extract_strided_slice %105 {offsets = [5, 0, 0], sizes = [1, 16, 64], strides = [1, 1, 1]} : vector<8x16x64xf32> to vector<1x16x64xf32>
    %140 = vector.shape_cast %139 : vector<1x16x64xf32> to vector<16x64xf32>
    %141 = arith.addf %138, %140 : vector<16x64xf32>
    %142 = vector.extract_strided_slice %99 {offsets = [6, 0, 0], sizes = [1, 16, 64], strides = [1, 1, 1]} : vector<8x16x64xf32> to vector<1x16x64xf32>
    %143 = vector.shape_cast %142 : vector<1x16x64xf32> to vector<16x64xf32>
    %144 = arith.mulf %143, %141 : vector<16x64xf32>
    %145 = vector.extract_strided_slice %105 {offsets = [6, 0, 0], sizes = [1, 16, 64], strides = [1, 1, 1]} : vector<8x16x64xf32> to vector<1x16x64xf32>
    %146 = vector.shape_cast %145 : vector<1x16x64xf32> to vector<16x64xf32>
    %147 = arith.addf %144, %146 : vector<16x64xf32>
    %148 = vector.extract_strided_slice %99 {offsets = [7, 0, 0], sizes = [1, 16, 64], strides = [1, 1, 1]} : vector<8x16x64xf32> to vector<1x16x64xf32>
    %149 = vector.shape_cast %148 : vector<1x16x64xf32> to vector<16x64xf32>
    %150 = arith.mulf %149, %147 : vector<16x64xf32>
    %151 = vector.extract_strided_slice %105 {offsets = [7, 0, 0], sizes = [1, 16, 64], strides = [1, 1, 1]} : vector<8x16x64xf32> to vector<1x16x64xf32>
    %152 = vector.shape_cast %151 : vector<1x16x64xf32> to vector<16x64xf32>
    %153 = arith.addf %150, %152 : vector<16x64xf32>
    %154 = vector.shape_cast %111 : vector<16x64xf32> to vector<1x16x64xf32>
    %155 = vector.shape_cast %117 : vector<16x64xf32> to vector<1x16x64xf32>
    %156 = vector.shape_cast %123 : vector<16x64xf32> to vector<1x16x64xf32>
    %157 = vector.shape_cast %129 : vector<16x64xf32> to vector<1x16x64xf32>
    %158 = vector.shape_cast %135 : vector<16x64xf32> to vector<1x16x64xf32>
    %159 = vector.shape_cast %141 : vector<16x64xf32> to vector<1x16x64xf32>
    %160 = vector.shape_cast %147 : vector<16x64xf32> to vector<1x16x64xf32>
    %161 = vector.shape_cast %153 : vector<16x64xf32> to vector<1x16x64xf32>
    %162 = tpu.concatenate %154, %155, %156, %157, %158, %159, %160, %161 in 0 : vector<1x16x64xf32>, vector<1x16x64xf32>, vector<1x16x64xf32>, vector<1x16x64xf32>, vector<1x16x64xf32>, vector<1x16x64xf32>, vector<1x16x64xf32>, vector<1x16x64xf32> -> vector<8x16x64xf32>
    %c0_51 = arith.constant 0 : index
    %163 = arith.index_cast %85 : i32 to index
    %c0_52 = arith.constant 0 : index
    %c0_53 = arith.constant 0 : index
    %164 = vector.load %arg15[%c0_51, %163, %c0_52, %c0_53] : memref<1x8x16x64xf32, #tpu.memory_space<vmem>>, vector<1x8x16x64xf32>
    %165 = vector.shape_cast %164 : vector<1x8x16x64xf32> to vector<8x16x64xf32>
    %166 = vector.shape_cast %162 : vector<8x16x64xf32> to vector<1x8x16x64xf32>
    tpu.vector_store %arg15[%c0_51, %163, %c0_52, %c0_53], %166 {strides = array<i32>} : memref<1x8x16x64xf32, #tpu.memory_space<vmem>>, vector<1x8x16x64xf32>,
    %167 = vector.shape_cast %93 : vector<8x16xf32> to vector<8x16x1xf32>
    %168 = vector.broadcast %167 : vector<8x16x1xf32> to vector<8x16x64xf32>
    %169 = arith.mulf %162, %168 : vector<8x16x64xf32>
    %cst_54 = arith.constant dense<0.000000e+00> : vector<8x64xf32>
    %170 = vector.multi_reduction <add>, %169, %cst_54 [1] : vector<8x16x64xf32> to vector<8x64xf32>
    %171 = arith.index_cast %85 : i32 to index
    %c0_55 = arith.constant 0 : index
    %172 = vector.load %arg22[%171, %c0_55] : memref<8x64xf32, #tpu.memory_space<vmem>>, vector<8x64xf32>
    tpu.vector_store %arg22[%171, %c0_55], %170 {strides = array<i32>} : memref<8x64xf32, #tpu.memory_space<vmem>>, vector<8x64xf32>,
    %c1_i32 = arith.constant 1 : i32
    %c0_56 = arith.constant 0 : index
    %c0_57 = arith.constant 0 : index
    %173 = vector.load %arg16[%c0_56, %c0_57] : memref<16x64xf32, #tpu.memory_space<vmem>>, vector<16x64xf32>
    tpu.vector_store %arg16[%c0_56, %c0_57], %153 {strides = array<i32>} : memref<16x64xf32, #tpu.memory_space<vmem>>, vector<16x64xf32>,
    %c0_58 = arith.constant 0 : index
    %c0_59 = arith.constant 0 : index
    %174 = vector.load %arg22[%c0_58, %c0_59] : memref<8x64xf32, #tpu.memory_space<vmem>>, vector<8x64xf32>
    %c0_60 = arith.constant 0 : index
    %c0_61 = arith.constant 0 : index
    %175 = vector.load %arg12[%c0_60, %c0_61] : memref<1x64xf32, #tpu.memory_space<vmem>>, vector<1x64xf32>
    %c0_62 = arith.constant 0 : index
    %c0_63 = arith.constant 0 : index
    %176 = vector.load %arg19[%c0_62, %c0_63] : memref<8x64xf32, #tpu.memory_space<vmem>>, vector<8x64xf32>
    %177 = vector.broadcast %175 : vector<1x64xf32> to vector<8x64xf32>
    %178 = arith.mulf %177, %176 : vector<8x64xf32>
    %179 = arith.addf %174, %178 : vector<8x64xf32>
    %cst_64 = arith.constant 0.000000e+00 : f32
    %180 = vector.broadcast %cst_64 : f32 to vector<8x64xf32>
    %181 = arith.subf %180, %22 : vector<8x64xf32>
    %182 = math.exp %181 : vector<8x64xf32>
    %cst_65 = arith.constant 1.000000e+00 : f32
    %183 = vector.broadcast %cst_65 : f32 to vector<8x64xf32>
    %184 = arith.addf %183, %182 : vector<8x64xf32>
    %185 = tpu.reciprocal %184 {approx = true} : vector<8x64xf32> -> vector<8x64xf32>
    %186 = arith.mulf %22, %185 : vector<8x64xf32>
    %187 = arith.mulf %179, %186 : vector<8x64xf32>
    %188 = arith.truncf %187 : vector<8x64xf32> to vector<8x64xbf16>
    %c0_66 = arith.constant 0 : index
    %c0_67 = arith.constant 0 : index
    %189 = vector.load %arg13[%c0_66, %c0_67] : memref<64x128xbf16, #tpu.memory_space<vmem>>, vector<64x128xbf16>
    %cst_68 = arith.constant dense<0.000000e+00> : vector<8x128xf32>
    %190 = tpu.matmul %188, %189, %cst_68 {dimension_numbers = #tpu.dot_dimension_numbers<[1], [0], [0], [1], [0, 0, 1, 1], [], []>} : vector<8x64xbf16>, vector<64x128xbf16>, vector<8x128xf32> -> vector<8x128xf32>
    %191 = arith.addf %190, %4 : vector<8x128xf32>
    %c0_69 = arith.constant 0 : index
    %c0_70 = arith.constant 0 : index
    %c0_71 = arith.constant 0 : index
    %192 = vector.load %arg14[%c0_69, %c0_70, %c0_71] : memref<1x8x128xf32, #tpu.memory_space<vmem>>, vector<1x8x128xf32>
    %193 = vector.shape_cast %192 : vector<1x8x128xf32> to vector<8x128xf32>
    %194 = vector.shape_cast %191 : vector<8x128xf32> to vector<1x8x128xf32>
    tpu.vector_store %arg14[%c0_69, %c0_70, %c0_71], %194 {strides = array<i32>} : memref<1x8x128xf32, #tpu.memory_space<vmem>>, vector<1x8x128xf32>,
    return
  }
  func.func @transform_0(%arg0: i32, %arg1: i32) -> (i32, i32, i32) {
    %c0_i32 = arith.constant 0 : i32
    %c0_i32_0 = arith.constant 0 : i32
    return %arg0, %arg1, %c0_i32 : i32, i32, i32
  }
  func.func @transform_1(%arg0: i32, %arg1: i32) -> (i32, i32) {
    %c0_i32 = arith.constant 0 : i32
    %c0_i32_0 = arith.constant 0 : i32
    %c0_i32_1 = arith.constant 0 : i32
    return %c0_i32, %c0_i32_0 : i32, i32
  }
  func.func @transform_2(%arg0: i32, %arg1: i32) -> (i32, i32) {
    %c0_i32 = arith.constant 0 : i32
    %c0_i32_0 = arith.constant 0 : i32
    %c0_i32_1 = arith.constant 0 : i32
    return %c0_i32, %c0_i32_0 : i32, i32
  }
  func.func @transform_3(%arg0: i32, %arg1: i32) -> (i32, i32) {
    %c0_i32 = arith.constant 0 : i32
    %c0_i32_0 = arith.constant 0 : i32
    %c0_i32_1 = arith.constant 0 : i32
    return %c0_i32, %c0_i32_0 : i32, i32
  }
  func.func @transform_4(%arg0: i32, %arg1: i32) -> (i32, i32) {
    %c0_i32 = arith.constant 0 : i32
    %c0_i32_0 = arith.constant 0 : i32
    %c0_i32_1 = arith.constant 0 : i32
    return %c0_i32, %c0_i32_0 : i32, i32
  }
  func.func @transform_5(%arg0: i32, %arg1: i32) -> (i32, i32) {
    %c0_i32 = arith.constant 0 : i32
    %c0_i32_0 = arith.constant 0 : i32
    %c0_i32_1 = arith.constant 0 : i32
    return %c0_i32, %c0_i32_0 : i32, i32
  }
  func.func @transform_6(%arg0: i32, %arg1: i32) -> (i32, i32) {
    %c0_i32 = arith.constant 0 : i32
    %c0_i32_0 = arith.constant 0 : i32
    %c0_i32_1 = arith.constant 0 : i32
    return %c0_i32, %c0_i32_0 : i32, i32
  }
  func.func @transform_7(%arg0: i32, %arg1: i32) -> (i32, i32) {
    %c0_i32 = arith.constant 0 : i32
    %c0_i32_0 = arith.constant 0 : i32
    %c0_i32_1 = arith.constant 0 : i32
    return %c0_i32, %c0_i32_0 : i32, i32
  }
  func.func @transform_8(%arg0: i32, %arg1: i32) -> (i32, i32) {
    %c0_i32 = arith.constant 0 : i32
    %c0_i32_0 = arith.constant 0 : i32
    %c0_i32_1 = arith.constant 0 : i32
    return %c0_i32, %c0_i32_0 : i32, i32
  }
  func.func @transform_9(%arg0: i32, %arg1: i32) -> (i32, i32) {
    %c0_i32 = arith.constant 0 : i32
    %c0_i32_0 = arith.constant 0 : i32
    %c0_i32_1 = arith.constant 0 : i32
    return %c0_i32, %c0_i32_0 : i32, i32
  }
  func.func @transform_10(%arg0: i32, %arg1: i32) -> (i32, i32) {
    %c0_i32 = arith.constant 0 : i32
    %c0_i32_0 = arith.constant 0 : i32
    %c0_i32_1 = arith.constant 0 : i32
    return %c0_i32, %c0_i32_0 : i32, i32
  }
  func.func @transform_11(%arg0: i32, %arg1: i32) -> (i32, i32) {
    %c0_i32 = arith.constant 0 : i32
    %c0_i32_0 = arith.constant 0 : i32
    %c0_i32_1 = arith.constant 0 : i32
    return %c0_i32, %c0_i32_0 : i32, i32
  }
  func.func @transform_12(%arg0: i32, %arg1: i32) -> (i32, i32, i32) {
    %c0_i32 = arith.constant 0 : i32
    %c0_i32_0 = arith.constant 0 : i32
    return %arg0, %arg1, %c0_i32 : i32, i32, i32
  }
  func.func @transform_13(%arg0: i32, %arg1: i32) -> (i32, i32, i32, i32) {
    %c0_i32 = arith.constant 0 : i32
    %c0_i32_0 = arith.constant 0 : i32
    %c0_i32_1 = arith.constant 0 : i32
    return %arg0, %arg1, %c0_i32, %c0_i32_0 : i32, i32, i32, i32
  }
}

</mosaic_0001>

<bundles_post_ra>
// kernel: tpu_custom_call.1
= control target key start
LH: loop header
LB: loop body
LE: loop exit
PB: predicated region body
PF: predicated region fallthrough
CT: control target
= control target key end

     0   :  { %s2785_s0 = inlined_call_operand.vmem [shape: f32[2,8,128], index: 0, kind: input, shape index: {}]   ;;  %s2786_s1 = inlined_call_operand.vmem [shape: f32[1,128], index: 1, kind: input, shape index: {}]   ;;  %s2787_s2 = inlined_call_operand.vmem [shape: bf16[128,64], index: 2, kind: input, shape index: {}]   ;;  %s2788_s3 = inlined_call_operand.vmem [shape: bf16[128,64], index: 3, kind: input, shape index: {}]   ;;  %s2789_s4 = inlined_call_operand.vmem [shape: f32[4,64], index: 4, kind: input, shape index: {}]   ;;  %s2790_s5 = inlined_call_operand.vmem [shape: f32[1,64], index: 5, kind: input, shape index: {}]   ;;  %s2791_s6 = inlined_call_operand.vmem [shape: bf16[64,34], index: 6, kind: input, shape index: {}]   ;;  %s2792_s7 = inlined_call_operand.vmem [shape: f32[2,64], index: 7, kind: input, shape index: {}]   ;;  %s2793_s8 = inlined_call_operand.vmem [shape: f32[1,64], index: 8, kind: input, shape index: {}]   ;;  %s2794_s9 = inlined_call_operand.vmem [shape: f32[16,64], index: 9, kind: input, shape index: {}]   ;;  %s2795_s10 = inlined_call_operand.vmem [shape: f32[1,64], index: 10, kind: input, shape index: {}]   ;;  %s2796_s11 = inlined_call_operand.vmem [shape: bf16[64,128], index: 11, kind: input, shape index: {}]   ;;  %s2797_s12 = inlined_call_operand.hbm [shape: f32[2,8,128], index: 12, kind: output, shape index: {0}]   ;;  %s2798_s13 = inlined_call_operand.hbm [shape: f32[2,8,16,64], index: 13, kind: output, shape index: {1}]  }
   0x1   :  { %2802 = sst [smem:[#allocation19_spill]] %s2785_s0 }
   0x2   :  { %2803 = sst [smem:[#allocation20_spill]] %s2786_s1 }
   0x3   :  { %2804 = sst [smem:[#allocation21_spill]] %s2787_s2 }
   0x4   :  { %19 = vsyncpa [#allocation10], 0 }
   0x5   :  { %21 = vsyncpa [#allocation10 + $0x1], 0 }
   0x6   :  { %22 = vsyncpa [#allocation12], 0 }
   0x7   :  { %24 = vsyncpa [#allocation12 + $0x1], 0  ;;  %s2268_s25 = smov 0   ;;  %s2270_s26 = smov 0  }
   0x8   :  { %s2272_s27 = smov 0   ;;  %s2274_s28 = smov 0  }
   0x9   :  { %s2276_s29 = smov 0   ;;  %s2278_s30 = smov 0  }
   0xa LB: > { %2805 = sst [smem:[#allocation15_spill]] %s2175_s27  ;;  %s1796_s14 = sadd.s32 4294967295, %s2187_s30   ;;  %s2187_s30 = sphi %s2278_s30, %s30_s30   ;;  %s2183_s29 = sphi %s2276_s29, %s2818_s29   ;;  %s2179_s28 = sphi %s2274_s28, %s2817_s28   ;;  %s2175_s27 = sphi %s2272_s27, %s2816_s27   ;;  %s2171_s26 = sphi %s2270_s26, %s2820_s26   ;;  %s2167_s25 = sphi %s2268_s25, %s2819_s25  }
   0xb   : > { %2806 = sst [smem:[#allocation16_spill]] %s2183_s29  ;;  %s1797_s15 = sadd.s32 4294967294, %s2187_s30  }
   0xc   : > { %s42_s16 = sadd.s32 1, %s2183_s29  ;;  %s310_s17 = sadd.s32 1, %s2175_s27 }
   0xd   : > { %p44_p0 = scmp.ge.s32.totalorder %s42_s16, 2  ;;  %p320_p1 = scmp.ne.s32.totalorder %s2175_s27, %s2171_s26 }
   0xe   : > { %p321_p2 = scmp.eq.s32.totalorder %s1796_s14, 1  ;;  %p326_p3 = scmp.ne.s32.totalorder %s2171_s26, %s2167_s25 }
   0xf   : > { %s2822_s16 = smov (%p44_p0, %s42_s16), 0  ;;  %p327_p5 = scmp.eq.s32.totalorder %s1797_s15, 1 }
  0x10   : > { %2807 = sst [smem:[#allocation17_spill]] %s2822_s16  ;;  %p2308_p4 = por %p321_p2, %p320_p1 }
  0x11   : > { %s305_s19 = ssub.s32 %s2183_s29, %s2822_s16  ;;  %p1800_p6 = scmp.ge.s32.totalorder %s2187_s30, 1 }
  0x12   : > { %p308_p7 = scmp.eq.s32.totalorder %s305_s19, 0  ;;  %p2315_p8 = por %p327_p5, %p326_p3 }
  0x13   : > { %p416_p9 = scmp.lt.s32.totalorder %s2187_s30, 3 }
  0x14   : > { %s2321_s21 = scalar_select %p308_p7, %s2175_s27, %s310_s17  }
  0x15   : > { %p417_p10 = pnand %p1800_p6, %p416_p9 }
  0x16   : > { %2810 = sst [smem:[#allocation18_spill]] %s2321_s21  ;;  %p467_p11 = scmp.lt.s32.totalorder (!%p417_p10), %s2179_s28, 1 }
  0x17   : > { %420 = sbr.rel (%p417_p10) target bundleno = 1188 (0x4a4), region = 68  ;;  %s2811_s2 = sld [smem:[#allocation21_spill]] (!%p417_p10) }
  0x18   : > { %s2812_s0 = sld [smem:[#allocation19_spill]] (!%p417_p10)  ;;  %s2192_s29 = smov (!%p417_p10), 126  }
  0x19   : > { %s2813_s1 = sld [smem:[#allocation20_spill]] (!%p417_p10)  ;;  %s2561_s17 = sand.u32 (!%p417_p10), 1, %s2171_s26  }
  0x1a   : > { %s1802_s19 = sshll.u32 (!%p417_p10), %s2561_s17, 7 }
  0x1b   : > { %s2595_s22 = scalar_lea.vmem (!%p417_p10), [#allocation11], %s1802_s19 }
  0x1c   : > { %v2189_v0 = vmov 0.0   ;;  %s468_s24 = scalar_select %p467_p11, %s2179_s28, 1  ;;  %v2011_v2 = vld [vmem:[%s2788_s3 + $0x38] sm:$0xff]   ;;  %v2013_v4 = vld [vmem:[%s2788_s3 + $0x30] sm:$0xff]   ;;  %v2015_v8 = vld [vmem:[%s2788_s3 + $0x28] sm:$0xff]   ;;  %vm2190_vm0 = vmmov 0   ;;  %v718_v31 = vlaneseq }
  0x1d   : > { %1874 = vmatprep.subr.bf16.mxu0 %v2189_v0  ;;  %1894 = vmatprep.subr.bf16.mxu1 %v2189_v0  ;;  %v2010_v1 = vld [vmem:[%s2811_s2 + $0x38] sm:$0xff]   ;;  %v2012_v3 = vld [vmem:[%s2811_s2 + $0x30] sm:$0xff]   ;;  %v2014_v7 = vld [vmem:[%s2811_s2 + $0x28] sm:$0xff]   ;;  %vm483_vm1 = vcmask 518144   ;;  %vm480_vm2 = vcmask 523264   ;;  %vm714_vm3 = vcmask 1042432  }
  0x1e   : > { %1875 = vmatpush3.bf16.msra.mxu0 %v2010_v1  ;;  %s1803_s16 = sshll.u32 %s468_s24, 3  ;;  %1895 = vmatpush3.bf16.msra.mxu1 %v2011_v2  ;;  %v2016_v9 = vld [vmem:[%s2811_s2 + $0x20] sm:$0xff]   ;;  %v2018_v11 = vld [vmem:[%s2811_s2 + $0x18] sm:$0xff]   ;;  %v2020_v13 = vld [vmem:[%s2811_s2 + $0x10] sm:$0xff]   ;;  %484 = vst.msk [vmem:[#allocation3] sm:$0x7] %vm483_vm1, %v2189_v0 }
  0x1f   : > { %1876 = vmatprep.subr.bf16.mxu0 %v2189_v0  ;;  %s2343_s27 = scalar_lea.vmem %s2812_s0, %s1803_s16  ;;  %1896 = vmatprep.subr.bf16.mxu1 %v2189_v0  ;;  %v2017_v10 = vld [vmem:[%s2788_s3 + $0x20] sm:$0xff]   ;;  %v2019_v12 = vld [vmem:[%s2788_s3 + $0x18] sm:$0xff]   ;;  %v2021_v14 = vld [vmem:[%s2788_s3 + $0x10] sm:$0xff]   ;;  %481 = vst.msk [vmem:[#allocation2] sm:$0xff] %vm480_vm2, %v2189_v0  ;;  %v2430_v32 = vshrl.u32 %v718_v31, 7  ;;  %vm738_vm4 = vcmask 1046528  }
  0x20   : > { %v485_v5 = vld [vmem:[%s2343_s27] sm:$0xff]  ;;  %1890 = vmatprep.mubr.msk.bf16.mxu0 %vm2190_vm0, %v2189_v0  ;;  %1910 = vmatprep.mubr.msk.bf16.mxu1 %vm2190_vm0, %v2189_v0  ;;  %v2022_v15 = vld [vmem:[%s2811_s2 + $0x8] sm:$0xff]   ;;  %v2026_v27 = vld [vmem:[%s2791_s6 + $0x18] sm:$0xff]   ;;  %482 = vst.msk [vmem:[#allocation2 + $0x8] sm:$0xff] %vm480_vm2, %v2189_v0  ;;  %vm752_vm5 = vcmask 1045504   ;;  %vm766_vm6 = vcmask 1044480  }
  0x21   : > { %v486_v6 = vmul.f32 %v485_v5, %v485_v5  ;;  %v2023_v16 = vld [vmem:[%s2788_s3 + $0x8] sm:$0xff]   ;;  %v2024_v17 = vld [vmem:[%s2811_s2] sm:$0xff]   ;;  %v2027_v28 = vld [vmem:[%s2791_s6 + $0x10] sm:$0xff]   ;;  %v2433_v33 = vsub.s32 1, %v2430_v32  ;;  %v2436_v34 = vsub.s32 2, %v2430_v32  ;;  %v2439_v35 = vsub.s32 3, %v2430_v32 }
  0x22   : > { %1877 = vmatpush3.bf16.msra.mxu0 %v2012_v3  ;;  %1897 = vmatpush3.bf16.msra.mxu1 %v2013_v4  ;;  %v2025_v18 = vld [vmem:[%s2788_s3] sm:$0xff]   ;;  %v2028_v29 = vld [vmem:[%s2791_s6 + $0x8] sm:$0xff]   ;;  %v2445_v37 = vsub.s32 0, %v2430_v32  ;;  %vm879_vm7 = vcmask 1041408   ;;  %vm876_vm8 = vcmask 15360   ;;  %s2191_s24 = smov 110  }
  0x23   : > { %1878 = vmatprep.subr.bf16.mxu0 %v2189_v0  ;;  %487 = vadd.xlane.f32.xlu0 %v486_v6  ;;  %v1804_v23 = vld [vmem:[%s2813_s1] ss:$0 sm:$0xff]  ;;  %vm862_vm9 = vcmask 130048   ;;  %vm1538_vm10 = vcmask 1041409   ;;  %vm1540_vm11 = vcmask 1042434   ;;  %vm1542_vm12 = vcmask 1043459  }
  0x24   : > { %1898 = vmatprep.subr.bf16.mxu1 %v2189_v0  ;;  %v2029_v30 = vld [vmem:[%s2791_s6] sm:$0xff]   ;;  %vm1544_vm13 = vcmask 1044484   ;;  %vm1546_vm14 = vcmask 1045509   ;;  %vm1548_vm15 = vcmask 1046534   ;;  %s1687_s15 = sshll.u32 %s2595_s22, 4  ;;  %s2707_s15 = int_to_ptr.vmem [resolvable:$true] %s1687_s15 }
  0x25   : > { %v716_v36 = vld [vmem:[%s2789_s4] sm:$0xf]  ;;  %v710_v42 = vld [vmem:[#allocation3] sm:$0x7]  ;;  %s2081_s23 = scalar_lea.vmem %s2707_s15, 2048 }
  0x26   : > { %1879 = vmatpush3.bf16.msra.mxu0 %v2014_v7  ;;  %1899 = vmatpush3.bf16.msra.mxu1 %v2015_v8  ;;  %v733_v38 = vrot.slane %v716_v36, %v2433_v33  ;;  %v747_v39 = vrot.slane %v716_v36, %v2436_v34  ;;  %v761_v40 = vrot.slane %v716_v36, %v2439_v35  ;;  %v1821_v49 = vld [vmem:[%s2790_s5] ss:$0 sm:$0xff]  ;;  %p2082_p12 = scmp.ne.s32.totalorder %s2707_s15, %s2081_s23 }
  0x27   : > { %1880 = vmatprep.subr.bf16.mxu0 %v2189_v0  ;;  %1900 = vmatprep.subr.bf16.mxu1 %v2189_v0  ;;  %v721_v43 = vrot.slane %v716_v36, %v2445_v37 }
  0x28   : > { %p2083_p13 = pnand %p2082_p12, %p2308_p4 }
  0x2a   : > { %1881 = vmatpush3.bf16.msra.mxu0 %v2016_v9  ;;  %1901 = vmatpush3.bf16.msra.mxu1 %v2017_v10  ;;  %p2084_p0 = pneg %p2083_p13 }
  0x2b   : > { %1882 = vmatprep.subr.bf16.mxu0 %v2189_v0  ;;  %1902 = vmatprep.subr.bf16.mxu1 %v2189_v0 }
  0x2e   : > { %1883 = vmatpush3.bf16.msra.mxu0 %v2018_v11  ;;  %1903 = vmatpush3.bf16.msra.mxu1 %v2019_v12 }
  0x2f   : > { %1884 = vmatprep.subr.bf16.mxu0 %v2189_v0  ;;  %1904 = vmatprep.subr.bf16.mxu1 %v2189_v0 }
  0x32   : > { %1885 = vmatpush3.bf16.msra.mxu0 %v2020_v13  ;;  %1905 = vmatpush3.bf16.msra.mxu1 %v2021_v14 }
  0x33   : > { %1886 = vmatprep.subr.bf16.mxu0 %v2189_v0  ;;  %1906 = vmatprep.subr.bf16.mxu1 %v2189_v0 }
  0x36   : > { %1887 = vmatpush3.bf16.msra.mxu0 %v2022_v15  ;;  %1907 = vmatpush3.bf16.msra.mxu1 %v2023_v16 }
  0x37   : > { %1888 = vmatprep.subr.bf16.mxu0 %v2189_v0  ;;  %1908 = vmatprep.subr.bf16.mxu1 %v2189_v0 }
  0x3a   : > { %1889 = vmatpush3.bf16.msra.mxu0 %v2024_v17  ;;  %1909 = vmatpush3.bf16.msra.mxu1 %v2025_v18  ;;  %v868_v18 = vld [vmem:[%s2792_s7] sm:$0x3] }
  0x3b   : > { %1914 = vmatprep.subr.bf16.mxu0 %v2189_v0  ;;  %1931 = vmatprep.subr.bf16.mxu1 %v2189_v0 }
  0xac   : > { %v488_v19 = vpop.xlane.xlu0 %487 }
  0xad   : > { %v489_v20 = vmul.f32 0.03125, %v488_v19 }
  0xaf   : > { %v490_v21 = vadd.f32 1e-05, %v489_v20 }
  0xb1   : > { %2034 = vrsqrt.f32 %v490_v21 }
  0xbe   : > { %v2035_v22 = vpop.eup %2034 }
  0xbf   : > { %v492_v24 = vmul.f32 %v2035_v22, %v485_v5 }
  0xc1   : > { %v500_v25 = vmul.f32 %v1804_v23, %v492_v24 }
  0xc3   : > { %v501_v26 = vpack.c.bf16 %v500_v25, %v500_v25 }
  0xc5   : > { %1891 = vmatmul.mubr.bf16.vlgmr.msra.gmra.mxu0 %v501_v26  ;;  %1911 = vmatmul.mubr.bf16.vlgmr.msra.gmra.mxu1 %v501_v26 }
  0xc6   : > { %1922 = vmatprep.mubr.msk.bf16.mxu0 %vm2190_vm0, %v2189_v0  ;;  %1939 = vmatprep.mubr.msk.bf16.mxu1 %vm2190_vm0, %v2189_v0 }
  0xc7   : > { %1915 = vmatpush3.bf16.msra.mxu0 %v2026_v27 }
  0xc8   : > { %1916 = vmatprep.subr.bf16.mxu0 %v2189_v0 }
  0xcb   : > { %1917 = vmatpush3.bf16.msra.mxu0 %v2027_v28  ;;  %v1206_v28 = vsub.s32 4, %v2430_v32 }
  0xcc   : > { %1918 = vmatprep.subr.bf16.mxu0 %v2189_v0 }
  0xcf   : > { %1919 = vmatpush3.bf16.msra.mxu0 %v2028_v29 }
  0xd0   : > { %1920 = vmatprep.subr.bf16.mxu0 %v2189_v0 }
  0xd3   : > { %1921 = vmatpush3.bf16.msra.mxu0 %v2029_v30  ;;  %v1217_v30 = vsub.s32 5, %v2430_v32 }
  0xd4   : > { %1926 = vmatprep.subr.mxu0 %v2189_v0 }
 0x185   : > { %v600_v41 = vpop.f32.mrf.mxu0  ;;  %v2451_v44 = vpop.f32.mrf.mxu1 }
 0x186   : > { %v712_v45 = vrot.slane %v600_v41, 5 }
 0x187   : > { %v1892_v46 = vpop.f32.mrf.mxu0  ;;  %v1912_v47 = vpop.f32.mrf.mxu1 }
 0x188   : > { %v715_v48 = vsel %vm714_vm3, %v710_v42, %v712_v45  ;;  %v735_v50 = vmul.f32 %v733_v38, %v712_v45  ;;  %v749_v51 = vmul.f32 %v747_v39, %v712_v45  ;;  %v763_v52 = vmul.f32 %v761_v40, %v712_v45  ;;  %779 = vst.msk [vmem:[#allocation3] sm:$0x7] %vm483_vm1, %v712_v45 }
 0x189   : > { %v722_v53 = vmul.f32 %v721_v43, %v715_v48  ;;  %v734_v54 = vmul.f32 %v733_v38, %v715_v48  ;;  %v748_v55 = vmul.f32 %v747_v39, %v715_v48  ;;  %v762_v56 = vmul.f32 %v761_v40, %v715_v48  ;;  %v603_v57 = vpop.f32.mrf.mxu0  ;;  %v707_v58 = vpop.f32.mrf.mxu1 }
 0x18a   : > { %v740_v59 = vrot.slane %v735_v50, 1  ;;  %v754_v63 = vrot.slane %v749_v51, 2  ;;  %v768_v5 = vrot.slane %v763_v52, 3  ;;  %v1228_v38 = vsub.s32 6, %v2430_v32  ;;  %v2030_v57 = vld [vmem:[%s2796_s11 + $0x18] sm:$0xff]   ;;  %v2031_v58 = vld [vmem:[%s2796_s11 + $0x10] sm:$0xff]  }
 0x18b   : > { %v729_v60 = vadd.f32 %v1821_v49, %v722_v53  ;;  %v739_v61 = vrot.slane %v734_v54, 1  ;;  %v753_v62 = vrot.slane %v748_v55, 2  ;;  %v1893_v1 = vpop.f32.mrf.mxu0  ;;  %v1913_v2 = vpop.f32.mrf.mxu1  ;;  %v767_v4 = vrot.slane %v762_v56, 3  ;;  %1932 = vmatpush3.bf16.msra.mxu1 %v2030_v57 }
 0x18c   : > { %v1239_v46 = vsub.s32 7, %v2430_v32  ;;  %1933 = vmatprep.subr.bf16.mxu1 %v2189_v0 }
 0x18d   : > { %v741_v3 = vsel %vm738_vm4, %v739_v61, %v740_v59  ;;  %v755_v7 = vsel %vm752_vm5, %v753_v62, %v754_v63  ;;  %v769_v9 = vsel %vm766_vm6, %v767_v4, %v768_v5  ;;  %v2032_v59 = vld [vmem:[%s2796_s11 + $0x8] sm:$0xff]  }
 0x18e   : > { %v743_v6 = vadd.f32 %v741_v3, %v729_v60  ;;  %v2033_v60 = vld [vmem:[%s2796_s11] sm:$0xff]   ;;  %v2193_v3 = vmov 1966171168  }
 0x18f   : > { %1934 = vmatpush3.bf16.msra.mxu1 %v2031_v58  ;;  %v974_v4 = vunpack.c.l.s4 %v2193_v3 }
 0x190   : > { %v757_v8 = vadd.f32 %v755_v7, %v743_v6  ;;  %1935 = vmatprep.subr.bf16.mxu1 %v2189_v0 }
 0x191   : > { %v975_v6 = vunpack.c.0.s8 %v974_v4  ;;  %v966_v4 = vld [vmem:[#allocation2 + $0x8] sm:$0xff] }
 0x192   : > { %v771_v10 = vadd.f32 %v769_v9, %v757_v8 }
 0x193   : > { %1936 = vmatpush3.bf16.msra.mxu1 %v2032_v59  ;;  %v2500_v9 = vsub.s32 %v975_v6, %v2430_v32 }
 0x194   : > { %v772_v11 = vsub.f32 0.0, %v771_v10  ;;  %1937 = vmatprep.subr.bf16.mxu1 %v2189_v0 }
 0x196   : > { %v773_v12 = vmul.f32 1.442695, %v772_v11 }
 0x197   : > { %1938 = vmatpush3.bf16.msra.mxu1 %v2033_v60 }
 0x198   : > { %2036 = vpow2.f32 %v773_v12 }
 0x1a5   : > { %v2037_v13 = vpop.eup %2036 }
 0x1a6   : > { %v775_v14 = vadd.f32 1.0, %v2037_v13 }
 0x1a8   : > { %2038 = vrcp.f32 %v775_v14 }
 0x1b5   : > { %v2039_v15 = vpop.eup %2038 }
 0x1b6   : > { %v777_v16 = vmul.f32 %v2039_v15, %v771_v10 }
 0x1b8   : > { %781 = vst.msk [vmem:[#allocation5] sm:$0xff] %vm480_vm2, %v777_v16  ;;  %v782_v17 = vpack.c.bf16 %v777_v16, %v777_v16  ;;  %v2511_v16 = vld [vmem:[%s2794_s9] sm:$0xff] }
 0x1ba   : > { %1923 = vmatmul.mubr.msk.bf16.vlgmr.msra.gmra.mxu0 %vm480_vm2, %v782_v17 }
 0x1bb   : > { %1928 = vmatprep.mubr.msk.f32.mxu0 %vm2190_vm0, %v2189_v0  ;;  %1927 = vmatpush3.msk.msra.mxu0 %vm879_vm7, %v868_v18  ;;  %v2519_v18 = vld [vmem:[%s2794_s9 + $0x8] sm:$0xff]  ;;  %vm1550_vm0 = vcmask 1047559  }
 0x27a   : > { %v852_v19 = vpop.f32.mrf.mxu0 }
 0x27b   : > { %864 = vrot.lane.b32.xlu1 %v852_v19, %s2191_s24  ;;  %859 = vrot.lane.b32.xlu0 %v852_v19, %s2192_s29  ;;  %s1843_s29 = sshll.u32 %s2179_s28, 11  ;;  %s2194_s24 = smov [#allocation11]  }
 0x27c   : > { %1929 = vmatmul.mubr.msk.f32.vlgmr.msra.gmra.mxu0 %vm876_vm8, %v852_v19  ;;  %v1924_v20 = vpop.f32.mrf.mxu0  ;;  %s2704_s16 = scalar_lea.hbm %s2798_s13, %s1843_s29  ;;  %s2085_s0 = sshll.u32 %s2194_s24, 4  ;;  %s2086_s0 = int_to_ptr.vmem [resolvable:$false] %s2085_s0 }
 0x27d   : > { %s2087_s1 = scalar_lea.vmem %s2086_s0, 4096  ;;  %p2088_p1 = scmp.lt.s32.totalorder %s2707_s15, %s2086_s0 }
 0x27e   : > { %v855_v21 = vpop.f32.mrf.mxu0  ;;  %p2089_p2 = scmp.lt.s32.totalorder %s2087_s1, %s2081_s23 }
 0x280   : > { %v1925_v22 = vpop.f32.mrf.mxu0  ;;  %p2090_p3 = por %p2089_p2, %p2088_p1 }
 0x282   : > { %p2091_p5 = pnand %p2090_p3, %p2084_p0 }
 0x2ed   : > { %v865_v23 = vpop.permute.xlu1 %864  ;;  %v860_v24 = vpop.permute.xlu0 %859 }
 0x2ee   : > { %867 = vst.msk [vmem:[#allocation7] sm:$0xff] %vm862_vm9, %v865_v23  ;;  %863 = vst.msk [vmem:[#allocation6] sm:$0xff] %vm862_vm9, %v860_v24  ;;  %v2526_v23 = vld [vmem:[#allocation5] sm:$0xff] }
 0x2f5   : > { %v969_v25 = vld [vmem:[#allocation6] sm:$0xff]  ;;  %v970_v40 = vld [vmem:[#allocation7] sm:$0xff] }
 0x2f6   : > { %v1196_v26 = vrot.slane %v969_v25, %v2439_v35  ;;  %v1163_v27 = vrot.slane %v969_v25, %v2445_v37  ;;  %v1207_v29 = vrot.slane %v969_v25, %v1206_v28  ;;  %v1218_v31 = vrot.slane %v969_v25, %v1217_v30 }
 0x2f7   : > { %v1174_v36 = vrot.slane %v969_v25, %v2433_v33  ;;  %v1229_v39 = vrot.slane %v969_v25, %v1228_v38  ;;  %v1357_v41 = vrot.slane %v970_v40, %v2445_v37  ;;  %v1185_v42 = vrot.slane %v969_v25, %v2436_v34 }
 0x2f8   : > { %1198 = vbcast.lane.b32.xlu0 %v1196_v26, 256  ;;  %1165 = vbcast.lane.b32.xlu1 %v1163_v27, 256  ;;  %v1368_v43 = vrot.slane %v970_v40, %v2433_v33  ;;  %v1379_v45 = vrot.slane %v970_v40, %v2436_v34  ;;  %v1240_v47 = vrot.slane %v969_v25, %v1239_v46 }
 0x2f9   : > { %v1390_v48 = vrot.slane %v970_v40, %v2439_v35  ;;  %v1401_v49 = vrot.slane %v970_v40, %v1206_v28  ;;  %v1412_v50 = vrot.slane %v970_v40, %v1217_v30  ;;  %v1423_v33 = vrot.slane %v970_v40, %v1228_v38  ;;  %v1827_v35 = vld [vmem:[%s2793_s8] ss:$0 sm:$0xff] }
 0x2fa   : > { %v1434_v34 = vrot.slane %v970_v40, %v1239_v46 }
 0x2fc   : > { %1209 = vbcast.lane.b32.xlu0 %v1207_v29, 256  ;;  %1169 = vbcast.lane.b32.xlu1 %v1163_v27, 264 }
 0x300   : > { %1220 = vbcast.lane.b32.xlu0 %v1218_v31, 256  ;;  %1176 = vbcast.lane.b32.xlu1 %v1174_v36, 256 }
 0x304   : > { %1231 = vbcast.lane.b32.xlu0 %v1229_v39, 256  ;;  %1180 = vbcast.lane.b32.xlu1 %v1174_v36, 264 }
 0x308   : > { %1359 = vbcast.lane.b32.xlu0 %v1357_v41, 256  ;;  %1187 = vbcast.lane.b32.xlu1 %v1185_v42, 256 }
 0x30c   : > { %1370 = vbcast.lane.b32.xlu0 %v1368_v43, 256  ;;  %1191 = vbcast.lane.b32.xlu1 %v1185_v42, 264 }
 0x310   : > { %1381 = vbcast.lane.b32.xlu0 %v1379_v45, 256  ;;  %1202 = vbcast.lane.b32.xlu1 %v1196_v26, 264 }
 0x314   : > { %1242 = vbcast.lane.b32.xlu0 %v1240_v47, 256  ;;  %1213 = vbcast.lane.b32.xlu1 %v1207_v29, 264 }
 0x318   : > { %1392 = vbcast.lane.b32.xlu0 %v1390_v48, 256  ;;  %1224 = vbcast.lane.b32.xlu1 %v1218_v31, 264 }
 0x31c   : > { %1403 = vbcast.lane.b32.xlu0 %v1401_v49, 256  ;;  %1235 = vbcast.lane.b32.xlu1 %v1229_v39, 264 }
 0x320   : > { %1414 = vbcast.lane.b32.xlu0 %v1412_v50, 256  ;;  %1363 = vbcast.lane.b32.xlu1 %v1357_v41, 264 }
 0x324   : > { %1425 = vbcast.lane.b32.xlu0 %v1423_v33, 256  ;;  %1374 = vbcast.lane.b32.xlu1 %v1368_v43, 264 }
 0x328   : > { %1436 = vbcast.lane.b32.xlu0 %v1434_v34, 256  ;;  %1385 = vbcast.lane.b32.xlu1 %v1379_v45, 264 }
 0x32c   : > { %1246 = vbcast.lane.b32.xlu1 %v1240_v47, 264 }
 0x330   : > { %1396 = vbcast.lane.b32.xlu1 %v1390_v48, 264 }
 0x334   : > { %1407 = vbcast.lane.b32.xlu1 %v1401_v49, 264 }
 0x338   : > { %1418 = vbcast.lane.b32.xlu1 %v1412_v50, 264 }
 0x33c   : > { %v949_v51 = vpop.f32.mrf.mxu0  ;;  %1429 = vbcast.lane.b32.xlu1 %v1423_v33, 264 }
 0x33d   : > { %v950_v52 = vadd.f32 %v1827_v35, %v949_v51 }
 0x33e   : > { %v1930_v53 = vpop.f32.mrf.mxu0 }
 0x33f   : > { %v954_v54 = vand.u32 2147483647, %v950_v52  ;;  %v953_v1 = vmax.f32 %v950_v52, 0.0 }
 0x340   : > { %1440 = vbcast.lane.b32.xlu1 %v1434_v34, 264 }
 0x341   : > { %v955_v55 = vsub.f32 0.0, %v954_v54 }
 0x343   : > { %v956_v56 = vmul.f32 1.442695, %v955_v55 }
 0x345   : > { %2040 = vpow2.f32 %v956_v56 }
 0x352   : > { %v2041_v61 = vpop.eup %2040 }
 0x353   : > { %v958_v62 = vadd.f32 1.0, %v2041_v61 }
 0x355   : > { %2042 = vlog2.f32 %v958_v62 }
 0x362   : > { %v2043_v63 = vpop.eup %2042 }
 0x363   : > { %v960_v2 = vmul.f32 0.6931472, %v2043_v63 }
 0x365   : > { %v961_v5 = vadd.f32 %v960_v2, %v953_v1  ;;  %v965_v2 = vld [vmem:[#allocation2] sm:$0xff] }
 0x367   : > { %962 = vst.msk [vmem:[#allocation4] sm:$0xff] %vm480_vm2, %v961_v5 }
 0x36a   : > { %v2495_v7 = vpop.permute.xlu0 %1198  ;;  %v2497_v8 = vpop.permute.xlu1 %1165 }
 0x36e   : > { %v967_v0 = vld [vmem:[#allocation4] sm:$0xff]  ;;  %v2502_v10 = vpop.permute.xlu0 %1209  ;;  %v2504_v11 = vpop.permute.xlu1 %1169 }
 0x36f   : > { %v979_v12 = vrot.slane %v967_v0, %v2500_v9  ;;  %v972_v15 = vcombine.high %v967_v0, %v967_v0  ;;  %v2533_v27 = vmul.f32 %v2526_v23, %v967_v0 }
 0x371   : > { %v995_v13 = vrot.slane %v979_v12, %v2500_v9  ;;  %v987_v14 = vcombine.high %v979_v12, %v979_v12  ;;  %v986_v22 = vrot.slane %v972_v15, %v2500_v9  ;;  %v1118_v43 = vrot.slane %v2533_v27, %v2500_v9 }
 0x372   : > { %v2513_v17 = vpop.permute.xlu1 %1176  ;;  %v2521_v19 = vpop.permute.xlu0 %1220 }
 0x373   : > { %v1024_v32 = vrot.slane %v995_v13, %v2445_v37  ;;  %v1009_v20 = vrot.slane %v987_v14, %v2500_v9  ;;  %v1017_v31 = vcombine.high %v995_v13, %v995_v13  ;;  %v1002_v36 = vrot.slane %v986_v22, %v2500_v9 }
 0x374   : > { %v988_v42 = vcombine.high %v986_v22, %v986_v22  ;;  %v1126_v51 = vcombine.high %v1118_v43, %v1118_v43  ;;  %v2553_v52 = vrot.slane %v1118_v43, %v2500_v9 }
 0x375   : > { %v1061_v21 = vmul.f32 %v1024_v32, %v2511_v16  ;;  %v1062_v24 = vmul.f32 %v1024_v32, %v2519_v18  ;;  %v1028_v25 = vrot.slane %v1009_v20, %v2445_v37  ;;  %v1019_v38 = vcombine.high %v1009_v20, %v1009_v20 }
 0x376   : > { %v2530_v26 = vpop.permute.xlu1 %1180  ;;  %v2537_v40 = vpop.permute.xlu0 %1231  ;;  %v1032_v46 = vrot.slane %v1017_v31, %v2445_v37  ;;  %v1040_v49 = vrot.slane %v1002_v36, %v2445_v37  ;;  %v1016_v35 = vrot.slane %v988_v42, %v2500_v9  ;;  %v1018_v61 = vcombine.high %v1002_v36, %v1002_v36 }
 0x377   : > { %v1077_v28 = vmul.f32 1.442695, %v1061_v21  ;;  %v1079_v29 = vmul.f32 1.442695, %v1062_v24  ;;  %v1063_v30 = vmul.f32 %v1028_v25, %v2511_v16  ;;  %v1064_v45 = vmul.f32 %v1028_v25, %v2519_v18 }
 0x378   : > { %v1036_v48 = vrot.slane %v1019_v38, %v2445_v37  ;;  %v1065_v50 = vmul.f32 %v1032_v46, %v2511_v16  ;;  %v1066_v34 = vmul.f32 %v1032_v46, %v2519_v18  ;;  %v1069_v55 = vmul.f32 %v1040_v49, %v2511_v16 }
 0x379   : > { %2044 = vpow2.f32 %v1077_v28  ;;  %v1081_v39 = vmul.f32 1.442695, %v1063_v30  ;;  %v1083_v47 = vmul.f32 1.442695, %v1064_v45  ;;  %v1044_v62 = vrot.slane %v1016_v35, %v2445_v37 }
 0x37a   : > { %2046 = vpow2.f32 %v1079_v29  ;;  %v2539_v41 = vpop.permute.xlu1 %1187  ;;  %v1067_v53 = vmul.f32 %v1036_v48, %v2511_v16  ;;  %v2556_v54 = vpop.permute.xlu0 %1359  ;;  %v1085_v56 = vmul.f32 1.442695, %v1065_v50  ;;  %v1087_v57 = vmul.f32 1.442695, %v1066_v34 }
 0x37b   : > { %2048 = vpow2.f32 %v1081_v39  ;;  %v1068_v58 = vmul.f32 %v1036_v48, %v2519_v18  ;;  %v1148_v63 = vrot.slane %v1126_v51, %v2500_v9  ;;  %v1251_v1 = vrot.slane %v2553_v52, %v2445_v37 }
 0x37c   : > { %2050 = vpow2.f32 %v1083_v47  ;;  %v1089_v59 = vmul.f32 1.442695, %v1067_v53  ;;  %v1093_v3 = vmul.f32 1.442695, %v1069_v55  ;;  %v1070_v6 = vmul.f32 %v1040_v49, %v2519_v18 }
 0x37d   : > { %2052 = vpow2.f32 %v1085_v56  ;;  %v1091_v5 = vmul.f32 1.442695, %v1068_v58  ;;  %v1020_v13 = vcombine.high %v1016_v35, %v1016_v35  ;;  %v1048_v14 = vrot.slane %v1018_v61, %v2445_v37 }
 0x37e   : > { %v2548_v33 = vpop.permute.xlu1 %1191  ;;  %2054 = vpow2.f32 %v1087_v57  ;;  %v2571_v12 = vpop.permute.xlu0 %1370  ;;  %v1071_v15 = vmul.f32 %v1044_v62, %v2511_v16  ;;  %v1288_v21 = vmul.f32 %v1251_v1, %v2497_v8  ;;  %v1111_v24 = vcombine.high %v2533_v27, %v2533_v27 }
 0x37f   : > { %2056 = vpow2.f32 %v1089_v59  ;;  %v1255_v25 = vrot.slane %v1148_v63, %v2445_v37  ;;  %v1289_v28 = vmul.f32 %v1251_v1, %v2504_v11  ;;  %v1072_v30 = vmul.f32 %v1044_v62, %v2519_v18 }
 0x380   : > { %2058 = vpow2.f32 %v1093_v3  ;;  %v1156_v36 = vcombine.high %v2553_v52, %v2553_v52  ;;  %v1095_v8 = vmul.f32 1.442695, %v1070_v6  ;;  %v1052_v27 = vrot.slane %v1020_v13, %v2445_v37 }
 0x381   : > { %2060 = vpow2.f32 %v1091_v5  ;;  %v1073_v42 = vmul.f32 %v1048_v14, %v2511_v16  ;;  %v1097_v43 = vmul.f32 1.442695, %v1071_v15  ;;  %v1125_v45 = vrot.slane %v1111_v24, %v2500_v9 }
 0x382   : > { %v2563_v60 = vpop.permute.xlu1 %1202  ;;  %v1290_v46 = vmul.f32 %v1255_v25, %v2513_v17  ;;  %v1158_v49 = vcombine.high %v1148_v63, %v1148_v63  ;;  %v1291_v50 = vmul.f32 %v1255_v25, %v2530_v26  ;;  %v2607_v34 = vpop.permute.xlu0 %1381  ;;  %v1099_v35 = vmul.f32 1.442695, %v1072_v30 }
 0x383   : > { %2062 = vpow2.f32 %v1095_v8  ;;  %v1074_v17 = vmul.f32 %v1048_v14, %v2519_v18  ;;  %v1259_v53 = vrot.slane %v1156_v36, %v2445_v37  ;;  %v1075_v55 = vmul.f32 %v1052_v27, %v2511_v16 }
 0x384   : > { %2064 = vpow2.f32 %v1097_v43  ;;  %v1101_v56 = vmul.f32 1.442695, %v1073_v42  ;;  %v1127_v58 = vcombine.high %v1125_v45, %v1125_v45  ;;  %v1263_v61 = vrot.slane %v1158_v49, %v2445_v37 }
 0x385   : > { %v1141_v62 = vrot.slane %v1125_v45, %v2500_v9  ;;  %v1292_v63 = vmul.f32 %v1259_v53, %v2539_v41  ;;  %2066 = vpow2.f32 %v1099_v35  ;;  %v1103_v16 = vmul.f32 1.442695, %v1074_v17 }
 0x386   : > { %v2045_v0 = vpop.eup %2044  ;;  %v2575_v32 = vpop.permute.xlu1 %1213  ;;  %2068 = vpow2.f32 %v1101_v56  ;;  %v1105_v6 = vmul.f32 1.442695, %v1075_v55  ;;  %v1155_v14 = vrot.slane %v1127_v58, %v2500_v9  ;;  %v1293_v41 = vmul.f32 %v1259_v53, %v2548_v33 }
 0x387   : > { %v2047_v20 = vpop.eup %2046  ;;  %v1304_v22 = vmul.f32 %v2045_v0, %v965_v2  ;;  %v1076_v2 = vmul.f32 %v1052_v27, %v2519_v18  ;;  %v2627_v5 = vpop.permute.xlu0 %1242  ;;  %2070 = vpow2.f32 %v1103_v16  ;;  %v1157_v8 = vcombine.high %v1141_v62, %v1141_v62 }
 0x388   : > { %v1305_v29 = vmul.f32 %v2047_v20, %v966_v4  ;;  %v2049_v38 = vpop.eup %2048  ;;  %v1294_v20 = vmul.f32 %v1263_v61, %v2495_v7  ;;  %2072 = vpow2.f32 %v1105_v6  ;;  %v1271_v30 = vrot.slane %v1155_v14, %v2445_v37 }
 0x389   : > { %v2583_v31 = vadd.f32 %v1304_v22, %v1288_v21  ;;  %v2051_v48 = vpop.eup %2050  ;;  %v1267_v21 = vrot.slane %v1141_v62, %v2445_v37  ;;  %v1107_v25 = vmul.f32 1.442695, %v1076_v2  ;;  %v1295_v7 = vmul.f32 %v1263_v61, %v2563_v60 }
 0x38a   : > { %v2587_v39 = vadd.f32 %v1305_v29, %v1289_v28  ;;  %v2591_v11 = vpop.permute.xlu1 %1224  ;;  %v2053_v26 = vpop.eup %2052  ;;  %v1159_v35 = vcombine.high %v1155_v14, %v1155_v14 }
 0x38b   : > { %1338 = vst.msk [vmem:[%s2595_s22] sm:$0xff] %vm480_vm2, %v2583_v31  ;;  %v1308_v47 = vmul.f32 %v2049_v38, %v2583_v31  ;;  %v2055_v3 = vpop.eup %2054  ;;  %v1296_v36 = vmul.f32 %v1267_v21, %v2502_v10  ;;  %v1393_v27 = vpop.permute.xlu0 %1392  ;;  %2074 = vpow2.f32 %v1107_v25  ;;  %v1297_v60 = vmul.f32 %v1267_v21, %v2575_v32 }
 0x38c   : > { %1339 = vst.msk [vmem:[%s2595_s22 + $0x8] sm:$0xff] %vm480_vm2, %v2587_v39  ;;  %v1309_v52 = vmul.f32 %v2051_v48, %v2587_v39  ;;  %v2057_v13 = vpop.eup %2056  ;;  %v1298_v48 = vmul.f32 %v1271_v30, %v2521_v19  ;;  %v1442_v32 = vmul.f32 %v2556_v54, %v2583_v31  ;;  %v1279_v54 = vrot.slane %v1159_v35, %v2445_v37 }
 0x38d   : > { %v2609_v51 = vadd.f32 %v1308_v47, %v1290_v46  ;;  %v2059_v18 = vpop.eup %2058 }
 0x38e   : > { %v2615_v57 = vpop.permute.xlu1 %1235  ;;  %v1311_v59 = vadd.f32 %v1309_v52, %v1291_v50  ;;  %v2061_v28 = vpop.eup %2060  ;;  %v1275_v50 = vrot.slane %v1157_v8, %v2445_v37  ;;  %v1458_v6 = vsel %vm480_vm2, %v1442_v32, 0.0 }
 0x38f   : > { %1340 = vst.msk [vmem:[%s2595_s22 + $0x10] sm:$0xff] %vm480_vm2, %v2609_v51  ;;  %v1312_v1 = vmul.f32 %v2053_v26, %v2609_v51  ;;  %v1444_v53 = vmul.f32 %v2571_v12, %v2609_v51  ;;  %v1299_v12 = vmul.f32 %v1271_v30, %v2591_v11 }
 0x390   : > { %1341 = vst.msk [vmem:[%s2595_s22 + $0x18] sm:$0xff] %vm480_vm2, %v1311_v59  ;;  %v1313_v15 = vmul.f32 %v2055_v3, %v1311_v59  ;;  %v2063_v43 = vpop.eup %2062 }
 0x391   : > { %v1314_v4 = vadd.f32 %v1312_v1, %v1292_v63  ;;  %v2065_v47 = vpop.eup %2064  ;;  %v1567_v63 = vsub.f32 0.0, %v2451_v44  ;;  %v1300_v1 = vmul.f32 %v1275_v50, %v2537_v40  ;;  %v1467_v16 = vsel %vm480_vm2, %v1444_v53, 0.0 }
 0x392   : > { %v1364_v0 = vpop.permute.xlu1 %1363  ;;  %v1315_v24 = vadd.f32 %v1313_v15, %v1293_v41  ;;  %v2067_v56 = vpop.eup %2066  ;;  %v1301_v41 = vmul.f32 %v1275_v50, %v2615_v57 }
 0x393   : > { %v1316_v22 = vmul.f32 %v2057_v13, %v1314_v4  ;;  %1342 = vst.msk [vmem:[%s2595_s22 + $0x20] sm:$0xff] %vm480_vm2, %v1314_v4  ;;  %v1443_v19 = vmul.f32 %v1364_v0, %v2587_v39  ;;  %v1446_v26 = vmul.f32 %v2607_v34, %v1314_v4  ;;  %v2069_v62 = vpop.eup %2068 }
 0x394   : > { %1343 = vst.msk [vmem:[%s2595_s22 + $0x28] sm:$0xff] %vm480_vm2, %v1315_v24  ;;  %v1317_v33 = vmul.f32 %v2061_v28, %v1315_v24  ;;  %v2071_v11 = vpop.eup %2070 }
 0x395   : > { %v1318_v29 = vadd.f32 %v1316_v22, %v1294_v20  ;;  %v1459_v4 = vsel %vm480_vm2, %v1443_v19, 0.0  ;;  %v1476_v40 = vsel %vm480_vm2, %v1446_v26, 0.0  ;;  %v2073_v14 = vpop.eup %2072  ;;  %v1568_v22 = vmul.f32 1.442695, %v1567_v63 }
 0x396   : > { %v1375_v9 = vpop.permute.xlu1 %1374  ;;  %v1319_v42 = vadd.f32 %v1317_v33, %v1295_v7  ;;  %v1460_v28 = vadd.f32 %v1459_v4, %v1458_v6 }
 0x397   : > { %v1320_v38 = vmul.f32 %v2059_v18, %v1318_v29  ;;  %1344 = vst.msk [vmem:[%s2595_s22 + $0x30] sm:$0xff] %vm480_vm2, %v1318_v29  ;;  %v1445_v10 = vmul.f32 %v1375_v9, %v1311_v59  ;;  %v1404_v59 = vpop.permute.xlu0 %1403  ;;  %v1448_v2 = vmul.f32 %v1393_v27, %v1318_v29  ;;  %v1302_v18 = vmul.f32 %v1279_v54, %v2627_v5 }
 0x398   : > { %1345 = vst.msk [vmem:[%s2595_s22 + $0x38] sm:$0xff] %vm480_vm2, %v1319_v42  ;;  %v1321_v49 = vmul.f32 %v2063_v43, %v1319_v42  ;;  %v2075_v57 = vpop.eup %2074  ;;  %2076 = vpow2.f32 %v1568_v22 }
 0x399   : > { %v1322_v45 = vadd.f32 %v1320_v38, %v1296_v36  ;;  %v1468_v39 = vsel %vm480_vm2, %v1445_v10, 0.0  ;;  %v1485_v29 = vsel %vm480_vm2, %v1448_v2, 0.0 }
 0x39a   : > { %v1386_v46 = vpop.permute.xlu1 %1385  ;;  %v1323_v55 = vadd.f32 %v1321_v49, %v1297_v60  ;;  %v1469_v13 = vadd.f32 %v1468_v39, %v1467_v16 }
 0x39b   : > { %1346 = vst.msk [vmem:[%s2595_s22 + $0x40] sm:$0xff] %vm480_vm2, %v1322_v45  ;;  %v1324_v52 = vmul.f32 %v2065_v47, %v1322_v45  ;;  %v1447_v17 = vmul.f32 %v1386_v46, %v1315_v24  ;;  %v1415_v25 = vpop.permute.xlu0 %1414  ;;  %v1450_v9 = vmul.f32 %v1404_v59, %v1322_v45  ;;  %v1461_v45 = vrot.slane %v1460_v28, 4 }
 0x39c   : > { %1347 = vst.msk [vmem:[%s2595_s22 + $0x48] sm:$0xff] %vm480_vm2, %v1323_v55  ;;  %v1325_v51 = vmul.f32 %v2067_v56, %v1323_v55  ;;  %v1470_v36 = vrot.slane %v1469_v13, 4 }
 0x39d   : > { %v1326_v58 = vadd.f32 %v1324_v52, %v1298_v48  ;;  %v1477_v34 = vsel %vm480_vm2, %v1447_v17, 0.0  ;;  %v1494_v47 = vsel %vm480_vm2, %v1450_v9, 0.0 }
 0x39e   : > { %v1247_v61 = vpop.permute.xlu1 %1246  ;;  %v1327_v3 = vadd.f32 %v1325_v51, %v1299_v12  ;;  %v1478_v20 = vadd.f32 %v1477_v34, %v1476_v40  ;;  %v1471_v50 = vadd.f32 %v1470_v36, %v1469_v13 }
 0x39f   : > { %v1328_v31 = vmul.f32 %v2069_v62, %v1326_v58  ;;  %1348 = vst.msk [vmem:[%s2595_s22 + $0x50] sm:$0xff] %vm480_vm2, %v1326_v58  ;;  %v1303_v27 = vmul.f32 %v1279_v54, %v1247_v61  ;;  %v1452_v48 = vmul.f32 %v1415_v25, %v1326_v58  ;;  %v1426_v10 = vpop.permute.xlu0 %1425 }
 0x3a0   : > { %1349 = vst.msk [vmem:[%s2595_s22 + $0x58] sm:$0xff] %vm480_vm2, %v1327_v3  ;;  %v1329_v15 = vmul.f32 %v2071_v11, %v1327_v3  ;;  %v1479_v5 = vrot.slane %v1478_v20, 4  ;;  %v1472_v59 = vrot.slane %v1471_v50, 2 }
 0x3a1   : > { %v1330_v0 = vadd.f32 %v1328_v31, %v1300_v1  ;;  %v1503_v32 = vsel %vm480_vm2, %v1452_v48, 0.0 }
 0x3a2   : > { %v1397_v37 = vpop.permute.xlu1 %1396  ;;  %v1331_v30 = vadd.f32 %v1329_v15, %v1301_v41  ;;  %v1480_v17 = vadd.f32 %v1479_v5, %v1478_v20  ;;  %v1473_v4 = vadd.f32 %v1472_v59, %v1471_v50 }
 0x3a3   : > { %v1449_v21 = vmul.f32 %v1397_v37, %v1319_v42  ;;  %v1332_v24 = vmul.f32 %v2073_v14, %v1330_v0  ;;  %1350 = vst.msk [vmem:[%s2595_s22 + $0x60] sm:$0xff] %vm480_vm2, %v1330_v0  ;;  %v1454_v26 = vmul.f32 %v1426_v10, %v1330_v0  ;;  %v1437_v1 = vpop.permute.xlu0 %1436 }
 0x3a4   : > { %1351 = vst.msk [vmem:[%s2595_s22 + $0x68] sm:$0xff] %vm480_vm2, %v1331_v30  ;;  %v1333_v42 = vmul.f32 %v2075_v57, %v1331_v30  ;;  %v1481_v12 = vrot.slane %v1480_v17, 2 }
 0x3a5   : > { %v1486_v7 = vsel %vm480_vm2, %v1449_v21, 0.0  ;;  %v1334_v33 = vadd.f32 %v1332_v24, %v1302_v18  ;;  %v1512_v34 = vsel %vm480_vm2, %v1454_v26, 0.0  ;;  %v2077_v20 = vpop.eup %2076  ;;  %v1474_v24 = vrot.slane %v1473_v4, 1 }
 0x3a6   : > { %v1487_v8 = vadd.f32 %v1486_v7, %v1485_v29  ;;  %v1408_v38 = vpop.permute.xlu1 %1407  ;;  %v1335_v60 = vadd.f32 %v1333_v42, %v1303_v27  ;;  %v1482_v0 = vadd.f32 %v1481_v12, %v1480_v17  ;;  %v1570_v36 = vadd.f32 1.0, %v2077_v20 }
 0x3a7   : > { %v1451_v43 = vmul.f32 %v1408_v38, %v1323_v55  ;;  %1352 = vst.msk [vmem:[%s2595_s22 + $0x70] sm:$0xff] %vm480_vm2, %v1334_v33  ;;  %1554 = vst.msk [vmem:[#allocation2] sm:$0xff] %vm480_vm2, %v1334_v33  ;;  %v1462_v55 = vadd.f32 %v1461_v45, %v1460_v28  ;;  %v1456_v16 = vmul.f32 %v1437_v1, %v1334_v33 }
 0x3a8   : > { %v1488_v46 = vrot.slane %v1487_v8, 4  ;;  %1353 = vst.msk [vmem:[%s2595_s22 + $0x78] sm:$0xff] %vm480_vm2, %v1335_v60  ;;  %1555 = vst.msk [vmem:[#allocation2 + $0x8] sm:$0xff] %vm480_vm2, %v1335_v60  ;;  %v1483_v9 = vrot.slane %v1482_v0, 1  ;;  %v1475_v38 = vadd.f32 %v1474_v24, %v1473_v4  ;;  %2078 = vrcp.f32 %v1570_v36 }
 0x3a9   : > { %v1495_v49 = vsel %vm480_vm2, %v1451_v43, 0.0  ;;  %v1463_v39 = vrot.slane %v1462_v55, 2  ;;  %v1521_v21 = vsel %vm480_vm2, %v1456_v16, 0.0 }
 0x3aa   : > { %v1496_v35 = vadd.f32 %v1495_v49, %v1494_v47  ;;  %v1419_v52 = vpop.permute.xlu1 %1418  ;;  %v1489_v19 = vadd.f32 %v1488_v46, %v1487_v8  ;;  %v1484_v43 = vadd.f32 %v1483_v9, %v1482_v0 }
 0x3ab   : > { %v1453_v53 = vmul.f32 %v1419_v52, %v1327_v3  ;;  %v1464_v37 = vadd.f32 %v1463_v39, %v1462_v55 }
 0x3ac   : > { %v1497_v56 = vrot.slane %v1496_v35, 4  ;;  %v1490_v54 = vrot.slane %v1489_v19, 2 }
 0x3ad   : > { %v1504_v58 = vsel %vm480_vm2, %v1453_v53, 0.0 }
 0x3ae   : > { %v1498_v61 = vadd.f32 %v1497_v56, %v1496_v35  ;;  %v1505_v62 = vadd.f32 %v1504_v58, %v1503_v32  ;;  %v1430_v63 = vpop.permute.xlu1 %1429  ;;  %v1491_v14 = vadd.f32 %v1490_v54, %v1489_v19  ;;  %v1830_v58 = vld [vmem:[%s2795_s10] ss:$0 sm:$0xff] }
 0x3af   : > { %v1455_v51 = vmul.f32 %v1430_v63, %v1331_v30  ;;  %v1465_v30 = vrot.slane %v1464_v37, 1 }
 0x3b0   : > { %v1506_v31 = vrot.slane %v1505_v62, 4  ;;  %v1499_v2 = vrot.slane %v1498_v61, 2  ;;  %v1492_v7 = vrot.slane %v1491_v14, 1 }
 0x3b1   : > { %v1513_v3 = vsel %vm480_vm2, %v1455_v51, 0.0  ;;  %v1466_v45 = vadd.f32 %v1465_v30, %v1464_v37 }
 0x3b2   : > { %v1507_v11 = vadd.f32 %v1506_v31, %v1505_v62  ;;  %v1514_v6 = vadd.f32 %v1513_v3, %v1512_v34  ;;  %v1441_v40 = vpop.permute.xlu1 %1440  ;;  %v1500_v22 = vadd.f32 %v1499_v2, %v1498_v61  ;;  %v1493_v46 = vadd.f32 %v1492_v7, %v1491_v14 }
 0x3b3   : > { %v1457_v13 = vmul.f32 %v1441_v40, %v1335_v60  ;;  %v1539_v49 = vsel %vm1538_vm10, %v1475_v38, %v1466_v45  ;;  %v1565_v61 = vmul.f32 %v1830_v58, %v2526_v23 }
 0x3b4   : > { %v1508_v41 = vrot.slane %v1507_v11, 2  ;;  %v1515_v15 = vrot.slane %v1514_v6, 4  ;;  %v1501_v8 = vrot.slane %v1500_v22, 1  ;;  %v1541_v35 = vsel %vm1540_vm11, %v1484_v43, %v1539_v49 }
 0x3b5   : > { %v1522_v18 = vsel %vm480_vm2, %v1457_v13, 0.0  ;;  %v1543_v17 = vsel %vm1542_vm12, %v1493_v46, %v1541_v35  ;;  %v2079_v59 = vpop.eup %2078 }
 0x3b6   : > { %v1509_v25 = vadd.f32 %v1508_v41, %v1507_v11  ;;  %v1516_v28 = vadd.f32 %v1515_v15, %v1514_v6  ;;  %v1523_v29 = vadd.f32 %v1522_v18, %v1521_v21  ;;  %v1502_v60 = vadd.f32 %v1501_v8, %v1500_v22 }
 0x3b7   : > { %v1572_v63 = vmul.f32 %v2079_v59, %v2451_v44 }
 0x3b8   : > { %v1517_v57 = vrot.slane %v1516_v28, 2  ;;  %v1524_v33 = vrot.slane %v1523_v29, 4  ;;  %v1510_v5 = vrot.slane %v1509_v25, 1  ;;  %v1545_v55 = vsel %vm1544_vm13, %v1502_v60, %v1543_v17 }
 0x3ba   : > { %v1518_v27 = vadd.f32 %v1517_v57, %v1516_v28  ;;  %v1525_v42 = vadd.f32 %v1524_v33, %v1523_v29  ;;  %v1511_v10 = vadd.f32 %v1510_v5, %v1509_v25 }
 0x3bc   : > { %v1519_v47 = vrot.slane %v1518_v27, 1  ;;  %v1526_v48 = vrot.slane %v1525_v42, 2  ;;  %v1547_v19 = vsel %vm1546_vm14, %v1511_v10, %v1545_v55 }
 0x3be   : > { %v1527_v50 = vadd.f32 %v1526_v48, %v1525_v42  ;;  %v1520_v52 = vadd.f32 %v1519_v47, %v1518_v27 }
 0x3c0   : > { %v1528_v53 = vrot.slane %v1527_v50, 1  ;;  %v1549_v32 = vsel %vm1548_vm15, %v1520_v52, %v1547_v19 }
 0x3c2   : > { %v1529_v56 = vadd.f32 %v1528_v53, %v1527_v50 }
 0x3c4   : > { %v1551_v26 = vsel %vm1550_vm0, %v1529_v56, %v1549_v32 }
 0x3c5   : > { %1553 = vst.msk [vmem:[#allocation8] sm:$0xff] %vm480_vm2, %v1551_v26 }
 0x3cc   : > { %v1556_v62 = vld [vmem:[#allocation8] sm:$0xff] }
 0x3cd   : > { %v1566_v12 = vadd.f32 %v1565_v61, %v1556_v62 }
 0x3cf   : > { %v1573_v51 = vmul.f32 %v1572_v63, %v1566_v12 }
 0x3d1   : > { %v1574_v39 = vpack.c.bf16 %v1573_v51, %v1573_v51 }
 0x3d3   : > { %1940 = vmatmul.mubr.msk.bf16.vlgmr.msra.gmra.mxu1 %vm480_vm2, %v1574_v39 }
 0x3d4   : > { %2094 = shalt.err (!%p2091_p5)
}
 0x3d5   : > { %s2095_s22 = scalar_lea.hbm %s2704_s16, 2048  ;;  %s2099_s14 = scalar_lea.hbm %s2798_s13, 4096 }
 0x3d6   : > { %p2096_p6 = scmp.ne.s32.totalorder %s2704_s16, %s2095_s22  ;;  %p2100_p10 = scmp.lt.s32.totalorder %s2704_s16, %s2798_s13 }
 0x3d7   : > { %p2101_p11 = scmp.lt.s32.totalorder %s2099_s14, %s2095_s22 }
 0x3d8   : > { %p2097_p7 = pnand %p2096_p6, %p2308_p4 }
 0x3d9   : > { %p2102_p12 = por %p2101_p11, %p2100_p10 }
 0x3da   : > { %p2098_p9 = pneg %p2097_p7 }
 0x3dc   : > { %p2103_p13 = pnand %p2102_p12, %p2098_p9 }
 0x3de   : > { %2106 = shalt.err (!%p2103_p13)
}
 0x3df   : > { %s2195_s0 = smov 128   ;;  %s2196_s1 = smov 8   ;;  %v2080_v23 = vld [vmem:[%s2343_s27] sm:$0xff] }
 0x3e0   : > { %s2814_s23 = scalar_lea.sflag [#allocation12], %s2561_s17  ;;  %s1801_s19 = sshll.u32 %s2561_s17, 3 }
 0x3e1   : > { %1944 = dma.vmem_to_hbm [thread:$0]  (%p2308_p4), %s2707_s15, 2048, %s2704_s16, %s2814_s23, %s2195_s0, %s2195_s0, %s2196_s1  }
 0x3e2   : > { %s1838_s29 = sshll.u32 %s2179_s28, 7  ;;  %s459_s22 = scalar_lea.vmem [#allocation9], %s1801_s19 }
 0x3e3   : > { %s1671_s21 = sshll.u32 %s459_s22, 4  ;;  %s2738_s2 = scalar_lea.hbm %s2797_s12, %s1838_s29  ;;  %s2740_s21 = int_to_ptr.vmem [resolvable:$true] %s1671_s21 }
 0x3e4   : > { %s1652_s16 = scalar_lea.sflag [#allocation10], %s2561_s17  ;;  %s2107_s28 = scalar_lea.vmem %s2740_s21, 128 }
 0x3e5   : > { %p2108_p0 = scmp.ne.s32.totalorder %s2740_s21, %s2107_s28  ;;  %s2197_s27 = smov [#allocation9]  }
 0x3e6   : > { %s2111_s15 = sshll.u32 %s2197_s27, 4  ;;  %s2112_s15 = int_to_ptr.vmem [resolvable:$false] %s2111_s15 }
 0x3e7   : > { %p2109_p1 = pnand %p2108_p0, %p2308_p4  ;;  %s2113_s0 = scalar_lea.vmem %s2112_s15, 256 }
 0x3e8   : > { %p2114_p3 = scmp.lt.s32.totalorder %s2740_s21, %s2112_s15  ;;  %p2115_p5 = scmp.lt.s32.totalorder %s2113_s0, %s2107_s28 }
 0x3e9   : > { %p2110_p2 = pneg %p2109_p1 }
 0x3ea   : > { %p2116_p6 = por %p2115_p5, %p2114_p3 }
 0x3ec   : > { %p2117_p7 = pnand %p2116_p6, %p2110_p2 }
 0x493   : > { %v1644_v44 = vpop.f32.mrf.mxu1 }
 0x494   : > { %v1645_v1 = vadd.f32 %v2080_v23, %v1644_v44 }
 0x495   : > { %v1941_v54 = vpop.f32.mrf.mxu1 }
 0x496   : > { %1650 = vst [vmem:[%s459_s22] sm:$0xff] %v1645_v1 }
 0x497   : > { %v1647_v31 = vpop.f32.mrf.mxu1 }
 0x498   : > { %2120 = shalt.err (!%p2117_p7)
}
 0x499   : > { %s2121_s1 = scalar_lea.hbm %s2738_s2, 128  ;;  %s2125_s19 = scalar_lea.hbm %s2797_s12, 256 }
 0x49a   : > { %p2122_p9 = scmp.ne.s32.totalorder %s2738_s2, %s2121_s1  ;;  %p2126_p12 = scmp.lt.s32.totalorder %s2738_s2, %s2797_s12 }
 0x49b   : > { %p2127_p13 = scmp.lt.s32.totalorder %s2125_s19, %s2121_s1 }
 0x49c   : > { %p2123_p10 = pnand %p2122_p9, %p2308_p4 }
 0x49d   : > { %p2128_p0 = por %p2127_p13, %p2126_p12 }
 0x49e   : > { %p2124_p11 = pneg %p2123_p10 }
 0x4a0   : > { %p2129_p1 = pnand %p2128_p0, %p2124_p11 }
 0x4a2   : > { %2132 = shalt.err (!%p2129_p1)
}
 0x4a3   : > { %1943 = dma.vmem_to_hbm [thread:$0]  (%p2308_p4), %s2740_s21, 128, %s2738_s2, %s1652_s16   ;;  %v1942_v34 = vpop.f32.mrf.mxu1 }
 0x4a4 PF: > { %p1954_p2 = scmp.ge.s32.totalorder %s2187_s30, 2  ;;  %s1702_s14 = sand.u32 1, %s2167_s25  }
 0x4a5   : > { %s1703_s24 = scalar_lea.sflag [#allocation10], %s1702_s14 }
 0x4a6   : > { %p1948_p3 = pnand %p1954_p2, %p2315_p8 }
 0x4a8   : > { %p1949_p5 = pneg %p1948_p3 }
 0x4aa   : > { %2158 = dma.done.wait (%p1949_p5), %s1703_s24, 128  }
 0x4ab   : > { %2160 = vsyncadd (%p1949_p5), %s1703_s24, 4294967168  ;;  %s1712_s28 = scalar_lea.sflag [#allocation12], %s1702_s14 }
 0x4ac   : > { %2162 = dma.done.wait (%p1949_p5), %s1712_s28, 2048  }
 0x4ad   : > { %2164 = vsyncadd (%p1949_p5), %s1712_s28, 4294965248  ;;  %s30_s30 = sadd.s32 1, %s2187_s30   ;;  %s2815_s2 = sld [smem:[#allocation15_spill]] }
 0x4ae   : > { %p27_p6 = scmp.ge.s32.totalorder %s30_s30, 4   ;;  %s2816_s27 = sld [smem:[#allocation18_spill]] }
 0x4af   : > { %s2817_s28 = sld [smem:[#allocation16_spill]]  ;;  %s2819_s25 = smov %s2171_s26 }
 0x4b0   : > { %s2818_s29 = sld [smem:[#allocation17_spill]]  ;;  %29 = sbr.rel (!%p27_p6) target bundleno = 10 (0xa), region = 125 }
 0x4b3   : > { %s2820_s26 = smov %s2815_s2 }
 0x4b5   :  { %1717 = vsyncpa [#allocation10], 1 }
 0x4b6   :  { %1719 = vsyncpa [#allocation10 + $0x1], 1 }
 0x4b7   :  { %1720 = vsyncpa [#allocation12], 1 }
 0x4b8   :  { %1722 = vsyncpa [#allocation12 + $0x1], 1 }

// kernel: tpu_custom_call.1
= control target key start
LH: loop header
LB: loop body
LE: loop exit
PB: predicated region body
PF: predicated region fallthrough
CT: control target
= control target key end

     0   :  { %s2785_s0 = inlined_call_operand.vmem [shape: f32[2,8,128], index: 0, kind: input, shape index: {}]   ;;  %s2786_s1 = inlined_call_operand.vmem [shape: f32[1,128], index: 1, kind: input, shape index: {}]   ;;  %s2787_s2 = inlined_call_operand.vmem [shape: bf16[128,64], index: 2, kind: input, shape index: {}]   ;;  %s2788_s3 = inlined_call_operand.vmem [shape: bf16[128,64], index: 3, kind: input, shape index: {}]   ;;  %s2789_s4 = inlined_call_operand.vmem [shape: f32[4,64], index: 4, kind: input, shape index: {}]   ;;  %s2790_s5 = inlined_call_operand.vmem [shape: f32[1,64], index: 5, kind: input, shape index: {}]   ;;  %s2791_s6 = inlined_call_operand.vmem [shape: bf16[64,34], index: 6, kind: input, shape index: {}]   ;;  %s2792_s7 = inlined_call_operand.vmem [shape: f32[2,64], index: 7, kind: input, shape index: {}]   ;;  %s2793_s8 = inlined_call_operand.vmem [shape: f32[1,64], index: 8, kind: input, shape index: {}]   ;;  %s2794_s9 = inlined_call_operand.vmem [shape: f32[16,64], index: 9, kind: input, shape index: {}]   ;;  %s2795_s10 = inlined_call_operand.vmem [shape: f32[1,64], index: 10, kind: input, shape index: {}]   ;;  %s2796_s11 = inlined_call_operand.vmem [shape: bf16[64,128], index: 11, kind: input, shape index: {}]   ;;  %s2797_s12 = inlined_call_operand.hbm [shape: f32[2,8,128], index: 12, kind: output, shape index: {0}]   ;;  %s2798_s13 = inlined_call_operand.hbm [shape: f32[2,8,16,64], index: 13, kind: output, shape index: {1}]  }
   0x1   :  { %2802 = sst [smem:[#allocation19_spill]] %s2785_s0 }
   0x2   :  { %2803 = sst [smem:[#allocation20_spill]] %s2786_s1 }
   0x3   :  { %2804 = sst [smem:[#allocation21_spill]] %s2787_s2 }
   0x4   :  { %19 = vsyncpa [#allocation10], 0 }
   0x5   :  { %21 = vsyncpa [#allocation10 + $0x1], 0 }
   0x6   :  { %22 = vsyncpa [#allocation12], 0 }
   0x7   :  { %24 = vsyncpa [#allocation12 + $0x1], 0  ;;  %s2268_s25 = smov 0   ;;  %s2270_s26 = smov 0  }
   0x8   :  { %s2272_s27 = smov 0   ;;  %s2274_s28 = smov 0  }
   0x9   :  { %s2276_s29 = smov 0   ;;  %s2278_s30 = smov 0  }
   0xa LB: > { %2805 = sst [smem:[#allocation15_spill]] %s2175_s27  ;;  %s1796_s14 = sadd.s32 4294967295, %s2187_s30   ;;  %s2187_s30 = sphi %s2278_s30, %s30_s30   ;;  %s2183_s29 = sphi %s2276_s29, %s2818_s29   ;;  %s2179_s28 = sphi %s2274_s28, %s2817_s28   ;;  %s2175_s27 = sphi %s2272_s27, %s2816_s27   ;;  %s2171_s26 = sphi %s2270_s26, %s2820_s26   ;;  %s2167_s25 = sphi %s2268_s25, %s2819_s25  }
   0xb   : > { %2806 = sst [smem:[#allocation16_spill]] %s2183_s29  ;;  %s1797_s15 = sadd.s32 4294967294, %s2187_s30  }
   0xc   : > { %s42_s16 = sadd.s32 1, %s2183_s29  ;;  %s310_s17 = sadd.s32 1, %s2175_s27 }
   0xd   : > { %p44_p0 = scmp.ge.s32.totalorder %s42_s16, 2  ;;  %p320_p1 = scmp.ne.s32.totalorder %s2175_s27, %s2171_s26 }
   0xe   : > { %p321_p2 = scmp.eq.s32.totalorder %s1796_s14, 1  ;;  %p326_p3 = scmp.ne.s32.totalorder %s2171_s26, %s2167_s25 }
   0xf   : > { %s2822_s16 = smov (%p44_p0, %s42_s16), 0  ;;  %p327_p5 = scmp.eq.s32.totalorder %s1797_s15, 1 }
  0x10   : > { %2807 = sst [smem:[#allocation17_spill]] %s2822_s16  ;;  %p2308_p4 = por %p321_p2, %p320_p1 }
  0x11   : > { %s305_s19 = ssub.s32 %s2183_s29, %s2822_s16  ;;  %p1800_p6 = scmp.ge.s32.totalorder %s2187_s30, 1 }
  0x12   : > { %p308_p7 = scmp.eq.s32.totalorder %s305_s19, 0  ;;  %p2315_p8 = por %p327_p5, %p326_p3 }
  0x13   : > { %p416_p9 = scmp.lt.s32.totalorder %s2187_s30, 3 }
  0x14   : > { %s2321_s21 = scalar_select %p308_p7, %s2175_s27, %s310_s17  }
  0x15   : > { %p417_p10 = pnand %p1800_p6, %p416_p9 }
  0x16   : > { %2810 = sst [smem:[#allocation18_spill]] %s2321_s21  ;;  %p467_p11 = scmp.lt.s32.totalorder (!%p417_p10), %s2179_s28, 1 }
  0x17   : > { %420 = sbr.rel (%p417_p10) target bundleno = 1188 (0x4a4), region = 68  ;;  %s2811_s2 = sld [smem:[#allocation21_spill]] (!%p417_p10) }
  0x18   : > { %s2812_s0 = sld [smem:[#allocation19_spill]] (!%p417_p10)  ;;  %s2192_s29 = smov (!%p417_p10), 126  }
  0x19   : > { %s2813_s1 = sld [smem:[#allocation20_spill]] (!%p417_p10)  ;;  %s2561_s17 = sand.u32 (!%p417_p10), 1, %s2171_s26  }
  0x1a   : > { %s1802_s19 = sshll.u32 (!%p417_p10), %s2561_s17, 7 }
  0x1b   : > { %s2595_s22 = scalar_lea.vmem (!%p417_p10), [#allocation11], %s1802_s19 }
  0x1c   : > { %v2189_v0 = vmov 0.0   ;;  %s468_s24 = scalar_select %p467_p11, %s2179_s28, 1  ;;  %v2011_v2 = vld [vmem:[%s2788_s3 + $0x38] sm:$0xff]   ;;  %v2013_v4 = vld [vmem:[%s2788_s3 + $0x30] sm:$0xff]   ;;  %v2015_v8 = vld [vmem:[%s2788_s3 + $0x28] sm:$0xff]   ;;  %vm2190_vm0 = vmmov 0   ;;  %v718_v31 = vlaneseq }
  0x1d   : > { %1874 = vmatprep.subr.bf16.mxu0 %v2189_v0  ;;  %1894 = vmatprep.subr.bf16.mxu1 %v2189_v0  ;;  %v2010_v1 = vld [vmem:[%s2811_s2 + $0x38] sm:$0xff]   ;;  %v2012_v3 = vld [vmem:[%s2811_s2 + $0x30] sm:$0xff]   ;;  %v2014_v7 = vld [vmem:[%s2811_s2 + $0x28] sm:$0xff]   ;;  %vm483_vm1 = vcmask 518144   ;;  %vm480_vm2 = vcmask 523264   ;;  %vm714_vm3 = vcmask 1042432  }
  0x1e   : > { %1875 = vmatpush3.bf16.msra.mxu0 %v2010_v1  ;;  %s1803_s16 = sshll.u32 %s468_s24, 3  ;;  %1895 = vmatpush3.bf16.msra.mxu1 %v2011_v2  ;;  %v2016_v9 = vld [vmem:[%s2811_s2 + $0x20] sm:$0xff]   ;;  %v2018_v11 = vld [vmem:[%s2811_s2 + $0x18] sm:$0xff]   ;;  %v2020_v13 = vld [vmem:[%s2811_s2 + $0x10] sm:$0xff]   ;;  %484 = vst.msk [vmem:[#allocation3] sm:$0x7] %vm483_vm1, %v2189_v0 }
  0x1f   : > { %1876 = vmatprep.subr.bf16.mxu0 %v2189_v0  ;;  %s2343_s27 = scalar_lea.vmem %s2812_s0, %s1803_s16  ;;  %1896 = vmatprep.subr.bf16.mxu1 %v2189_v0  ;;  %v2017_v10 = vld [vmem:[%s2788_s3 + $0x20] sm:$0xff]   ;;  %v2019_v12 = vld [vmem:[%s2788_s3 + $0x18] sm:$0xff]   ;;  %v2021_v14 = vld [vmem:[%s2788_s3 + $0x10] sm:$0xff]   ;;  %481 = vst.msk [vmem:[#allocation2] sm:$0xff] %vm480_vm2, %v2189_v0  ;;  %v2430_v32 = vshrl.u32 %v718_v31, 7  ;;  %vm738_vm4 = vcmask 1046528  }
  0x20   : > { %v485_v5 = vld [vmem:[%s2343_s27] sm:$0xff]  ;;  %1890 = vmatprep.mubr.msk.bf16.mxu0 %vm2190_vm0, %v2189_v0  ;;  %1910 = vmatprep.mubr.msk.bf16.mxu1 %vm2190_vm0, %v2189_v0  ;;  %v2022_v15 = vld [vmem:[%s2811_s2 + $0x8] sm:$0xff]   ;;  %v2026_v27 = vld [vmem:[%s2791_s6 + $0x18] sm:$0xff]   ;;  %482 = vst.msk [vmem:[#allocation2 + $0x8] sm:$0xff] %vm480_vm2, %v2189_v0  ;;  %vm752_vm5 = vcmask 1045504   ;;  %vm766_vm6 = vcmask 1044480  }
  0x21   : > { %v486_v6 = vmul.f32 %v485_v5, %v485_v5  ;;  %v2023_v16 = vld [vmem:[%s2788_s3 + $0x8] sm:$0xff]   ;;  %v2024_v17 = vld [vmem:[%s2811_s2] sm:$0xff]   ;;  %v2027_v28 = vld [vmem:[%s2791_s6 + $0x10] sm:$0xff]   ;;  %v2433_v33 = vsub.s32 1, %v2430_v32  ;;  %v2436_v34 = vsub.s32 2, %v2430_v32  ;;  %v2439_v35 = vsub.s32 3, %v2430_v32 }
  0x22   : > { %1877 = vmatpush3.bf16.msra.mxu0 %v2012_v3  ;;  %1897 = vmatpush3.bf16.msra.mxu1 %v2013_v4  ;;  %v2025_v18 = vld [vmem:[%s2788_s3] sm:$0xff]   ;;  %v2028_v29 = vld [vmem:[%s2791_s6 + $0x8] sm:$0xff]   ;;  %v2445_v37 = vsub.s32 0, %v2430_v32  ;;  %vm879_vm7 = vcmask 1041408   ;;  %vm876_vm8 = vcmask 15360   ;;  %s2191_s24 = smov 110  }
  0x23   : > { %1878 = vmatprep.subr.bf16.mxu0 %v2189_v0  ;;  %487 = vadd.xlane.f32.xlu0 %v486_v6  ;;  %v1804_v23 = vld [vmem:[%s2813_s1] ss:$0 sm:$0xff]  ;;  %vm862_vm9 = vcmask 130048   ;;  %vm1538_vm10 = vcmask 1041409   ;;  %vm1540_vm11 = vcmask 1042434   ;;  %vm1542_vm12 = vcmask 1043459  }
  0x24   : > { %1898 = vmatprep.subr.bf16.mxu1 %v2189_v0  ;;  %v2029_v30 = vld [vmem:[%s2791_s6] sm:$0xff]   ;;  %vm1544_vm13 = vcmask 1044484   ;;  %vm1546_vm14 = vcmask 1045509   ;;  %vm1548_vm15 = vcmask 1046534   ;;  %s1687_s15 = sshll.u32 %s2595_s22, 4  ;;  %s2707_s15 = int_to_ptr.vmem [resolvable:$true] %s1687_s15 }
  0x25   : > { %v716_v36 = vld [vmem:[%s2789_s4] sm:$0xf]  ;;  %v710_v42 = vld [vmem:[#allocation3] sm:$0x7]  ;;  %s2081_s23 = scalar_lea.vmem %s2707_s15, 2048 }
  0x26   : > { %1879 = vmatpush3.bf16.msra.mxu0 %v2014_v7  ;;  %1899 = vmatpush3.bf16.msra.mxu1 %v2015_v8  ;;  %v733_v38 = vrot.slane %v716_v36, %v2433_v33  ;;  %v747_v39 = vrot.slane %v716_v36, %v2436_v34  ;;  %v761_v40 = vrot.slane %v716_v36, %v2439_v35  ;;  %v1821_v49 = vld [vmem:[%s2790_s5] ss:$0 sm:$0xff]  ;;  %p2082_p12 = scmp.ne.s32.totalorder %s2707_s15, %s2081_s23 }
  0x27   : > { %1880 = vmatprep.subr.bf16.mxu0 %v2189_v0  ;;  %1900 = vmatprep.subr.bf16.mxu1 %v2189_v0  ;;  %v721_v43 = vrot.slane %v716_v36, %v2445_v37 }
  0x28   : > { %p2083_p13 = pnand %p2082_p12, %p2308_p4 }
  0x2a   : > { %1881 = vmatpush3.bf16.msra.mxu0 %v2016_v9  ;;  %1901 = vmatpush3.bf16.msra.mxu1 %v2017_v10  ;;  %p2084_p0 = pneg %p2083_p13 }
  0x2b   : > { %1882 = vmatprep.subr.bf16.mxu0 %v2189_v0  ;;  %1902 = vmatprep.subr.bf16.mxu1 %v2189_v0 }
  0x2e   : > { %1883 = vmatpush3.bf16.msra.mxu0 %v2018_v11  ;;  %1903 = vmatpush3.bf16.msra.mxu1 %v2019_v12 }
  0x2f   : > { %1884 = vmatprep.subr.bf16.mxu0 %v2189_v0  ;;  %1904 = vmatprep.subr.bf16.mxu1 %v2189_v0 }
  0x32   : > { %1885 = vmatpush3.bf16.msra.mxu0 %v2020_v13  ;;  %1905 = vmatpush3.bf16.msra.mxu1 %v2021_v14 }
  0x33   : > { %1886 = vmatprep.subr.bf16.mxu0 %v2189_v0  ;;  %1906 = vmatprep.subr.bf16.mxu1 %v2189_v0 }
  0x36   : > { %1887 = vmatpush3.bf16.msra.mxu0 %v2022_v15  ;;  %1907 = vmatpush3.bf16.msra.mxu1 %v2023_v16 }
  0x37   : > { %1888 = vmatprep.subr.bf16.mxu0 %v2189_v0  ;;  %1908 = vmatprep.subr.bf16.mxu1 %v2189_v0 }
  0x3a   : > { %1889 = vmatpush3.bf16.msra.mxu0 %v2024_v17  ;;  %1909 = vmatpush3.bf16.msra.mxu1 %v2025_v18  ;;  %v868_v18 = vld [vmem:[%s2792_s7] sm:$0x3] }
  0x3b   : > { %1914 = vmatprep.subr.bf16.mxu0 %v2189_v0  ;;  %1931 = vmatprep.subr.bf16.mxu1 %v2189_v0 }
  0xac   : > { %v488_v19 = vpop.xlane.xlu0 %487 }
  0xad   : > { %v489_v20 = vmul.f32 0.03125, %v488_v19 }
  0xaf   : > { %v490_v21 = vadd.f32 1e-05, %v489_v20 }
  0xb1   : > { %2034 = vrsqrt.f32 %v490_v21 }
  0xbe   : > { %v2035_v22 = vpop.eup %2034 }
  0xbf   : > { %v492_v24 = vmul.f32 %v2035_v22, %v485_v5 }
  0xc1   : > { %v500_v25 = vmul.f32 %v1804_v23, %v492_v24 }
  0xc3   : > { %v501_v26 = vpack.c.bf16 %v500_v25, %v500_v25 }
  0xc5   : > { %1891 = vmatmul.mubr.bf16.vlgmr.msra.gmra.mxu0 %v501_v26  ;;  %1911 = vmatmul.mubr.bf16.vlgmr.msra.gmra.mxu1 %v501_v26 }
  0xc6   : > { %1922 = vmatprep.mubr.msk.bf16.mxu0 %vm2190_vm0, %v2189_v0  ;;  %1939 = vmatprep.mubr.msk.bf16.mxu1 %vm2190_vm0, %v2189_v0 }
  0xc7   : > { %1915 = vmatpush3.bf16.msra.mxu0 %v2026_v27 }
  0xc8   : > { %1916 = vmatprep.subr.bf16.mxu0 %v2189_v0 }
  0xcb   : > { %1917 = vmatpush3.bf16.msra.mxu0 %v2027_v28  ;;  %v1206_v28 = vsub.s32 4, %v2430_v32 }
  0xcc   : > { %1918 = vmatprep.subr.bf16.mxu0 %v2189_v0 }
  0xcf   : > { %1919 = vmatpush3.bf16.msra.mxu0 %v2028_v29 }
  0xd0   : > { %1920 = vmatprep.subr.bf16.mxu0 %v2189_v0 }
  0xd3   : > { %1921 = vmatpush3.bf16.msra.mxu0 %v2029_v30  ;;  %v1217_v30 = vsub.s32 5, %v2430_v32 }
  0xd4   : > { %1926 = vmatprep.subr.mxu0 %v2189_v0 }
 0x185   : > { %v600_v41 = vpop.f32.mrf.mxu0  ;;  %v2451_v44 = vpop.f32.mrf.mxu1 }
 0x186   : > { %v712_v45 = vrot.slane %v600_v41, 5 }
 0x187   : > { %v1892_v46 = vpop.f32.mrf.mxu0  ;;  %v1912_v47 = vpop.f32.mrf.mxu1 }
 0x188   : > { %v715_v48 = vsel %vm714_vm3, %v710_v42, %v712_v45  ;;  %v735_v50 = vmul.f32 %v733_v38, %v712_v45  ;;  %v749_v51 = vmul.f32 %v747_v39, %v712_v45  ;;  %v763_v52 = vmul.f32 %v761_v40, %v712_v45  ;;  %779 = vst.msk [vmem:[#allocation3] sm:$0x7] %vm483_vm1, %v712_v45 }
 0x189   : > { %v722_v53 = vmul.f32 %v721_v43, %v715_v48  ;;  %v734_v54 = vmul.f32 %v733_v38, %v715_v48  ;;  %v748_v55 = vmul.f32 %v747_v39, %v715_v48  ;;  %v762_v56 = vmul.f32 %v761_v40, %v715_v48  ;;  %v603_v57 = vpop.f32.mrf.mxu0  ;;  %v707_v58 = vpop.f32.mrf.mxu1 }
 0x18a   : > { %v740_v59 = vrot.slane %v735_v50, 1  ;;  %v754_v63 = vrot.slane %v749_v51, 2  ;;  %v768_v5 = vrot.slane %v763_v52, 3  ;;  %v1228_v38 = vsub.s32 6, %v2430_v32  ;;  %v2030_v57 = vld [vmem:[%s2796_s11 + $0x18] sm:$0xff]   ;;  %v2031_v58 = vld [vmem:[%s2796_s11 + $0x10] sm:$0xff]  }
 0x18b   : > { %v729_v60 = vadd.f32 %v1821_v49, %v722_v53  ;;  %v739_v61 = vrot.slane %v734_v54, 1  ;;  %v753_v62 = vrot.slane %v748_v55, 2  ;;  %v1893_v1 = vpop.f32.mrf.mxu0  ;;  %v1913_v2 = vpop.f32.mrf.mxu1  ;;  %v767_v4 = vrot.slane %v762_v56, 3  ;;  %1932 = vmatpush3.bf16.msra.mxu1 %v2030_v57 }
 0x18c   : > { %v1239_v46 = vsub.s32 7, %v2430_v32  ;;  %1933 = vmatprep.subr.bf16.mxu1 %v2189_v0 }
 0x18d   : > { %v741_v3 = vsel %vm738_vm4, %v739_v61, %v740_v59  ;;  %v755_v7 = vsel %vm752_vm5, %v753_v62, %v754_v63  ;;  %v769_v9 = vsel %vm766_vm6, %v767_v4, %v768_v5  ;;  %v2032_v59 = vld [vmem:[%s2796_s11 + $0x8] sm:$0xff]  }
 0x18e   : > { %v743_v6 = vadd.f32 %v741_v3, %v729_v60  ;;  %v2033_v60 = vld [vmem:[%s2796_s11] sm:$0xff]   ;;  %v2193_v3 = vmov 1966171168  }
 0x18f   : > { %1934 = vmatpush3.bf16.msra.mxu1 %v2031_v58  ;;  %v974_v4 = vunpack.c.l.s4 %v2193_v3 }
 0x190   : > { %v757_v8 = vadd.f32 %v755_v7, %v743_v6  ;;  %1935 = vmatprep.subr.bf16.mxu1 %v2189_v0 }
 0x191   : > { %v975_v6 = vunpack.c.0.s8 %v974_v4  ;;  %v966_v4 = vld [vmem:[#allocation2 + $0x8] sm:$0xff] }
 0x192   : > { %v771_v10 = vadd.f32 %v769_v9, %v757_v8 }
 0x193   : > { %1936 = vmatpush3.bf16.msra.mxu1 %v2032_v59  ;;  %v2500_v9 = vsub.s32 %v975_v6, %v2430_v32 }
 0x194   : > { %v772_v11 = vsub.f32 0.0, %v771_v10  ;;  %1937 = vmatprep.subr.bf16.mxu1 %v2189_v0 }
 0x196   : > { %v773_v12 = vmul.f32 1.442695, %v772_v11 }
 0x197   : > { %1938 = vmatpush3.bf16.msra.mxu1 %v2033_v60 }
 0x198   : > { %2036 = vpow2.f32 %v773_v12 }
 0x1a5   : > { %v2037_v13 = vpop.eup %2036 }
 0x1a6   : > { %v775_v14 = vadd.f32 1.0, %v2037_v13 }
 0x1a8   : > { %2038 = vrcp.f32 %v775_v14 }
 0x1b5   : > { %v2039_v15 = vpop.eup %2038 }
 0x1b6   : > { %v777_v16 = vmul.f32 %v2039_v15, %v771_v10 }
 0x1b8   : > { %781 = vst.msk [vmem:[#allocation5] sm:$0xff] %vm480_vm2, %v777_v16  ;;  %v782_v17 = vpack.c.bf16 %v777_v16, %v777_v16  ;;  %v2511_v16 = vld [vmem:[%s2794_s9] sm:$0xff] }
 0x1ba   : > { %1923 = vmatmul.mubr.msk.bf16.vlgmr.msra.gmra.mxu0 %vm480_vm2, %v782_v17 }
 0x1bb   : > { %1928 = vmatprep.mubr.msk.f32.mxu0 %vm2190_vm0, %v2189_v0  ;;  %1927 = vmatpush3.msk.msra.mxu0 %vm879_vm7, %v868_v18  ;;  %v2519_v18 = vld [vmem:[%s2794_s9 + $0x8] sm:$0xff]  ;;  %vm1550_vm0 = vcmask 1047559  }
 0x27a   : > { %v852_v19 = vpop.f32.mrf.mxu0 }
 0x27b   : > { %864 = vrot.lane.b32.xlu1 %v852_v19, %s2191_s24  ;;  %859 = vrot.lane.b32.xlu0 %v852_v19, %s2192_s29  ;;  %s1843_s29 = sshll.u32 %s2179_s28, 11  ;;  %s2194_s24 = smov [#allocation11]  }
 0x27c   : > { %1929 = vmatmul.mubr.msk.f32.vlgmr.msra.gmra.mxu0 %vm876_vm8, %v852_v19  ;;  %v1924_v20 = vpop.f32.mrf.mxu0  ;;  %s2704_s16 = scalar_lea.hbm %s2798_s13, %s1843_s29  ;;  %s2085_s0 = sshll.u32 %s2194_s24, 4  ;;  %s2086_s0 = int_to_ptr.vmem [resolvable:$false] %s2085_s0 }
 0x27d   : > { %s2087_s1 = scalar_lea.vmem %s2086_s0, 4096  ;;  %p2088_p1 = scmp.lt.s32.totalorder %s2707_s15, %s2086_s0 }
 0x27e   : > { %v855_v21 = vpop.f32.mrf.mxu0  ;;  %p2089_p2 = scmp.lt.s32.totalorder %s2087_s1, %s2081_s23 }
 0x280   : > { %v1925_v22 = vpop.f32.mrf.mxu0  ;;  %p2090_p3 = por %p2089_p2, %p2088_p1 }
 0x282   : > { %p2091_p5 = pnand %p2090_p3, %p2084_p0 }
 0x2ed   : > { %v865_v23 = vpop.permute.xlu1 %864  ;;  %v860_v24 = vpop.permute.xlu0 %859 }
 0x2ee   : > { %867 = vst.msk [vmem:[#allocation7] sm:$0xff] %vm862_vm9, %v865_v23  ;;  %863 = vst.msk [vmem:[#allocation6] sm:$0xff] %vm862_vm9, %v860_v24  ;;  %v2526_v23 = vld [vmem:[#allocation5] sm:$0xff] }
 0x2f5   : > { %v969_v25 = vld [vmem:[#allocation6] sm:$0xff]  ;;  %v970_v40 = vld [vmem:[#allocation7] sm:$0xff] }
 0x2f6   : > { %v1196_v26 = vrot.slane %v969_v25, %v2439_v35  ;;  %v1163_v27 = vrot.slane %v969_v25, %v2445_v37  ;;  %v1207_v29 = vrot.slane %v969_v25, %v1206_v28  ;;  %v1218_v31 = vrot.slane %v969_v25, %v1217_v30 }
 0x2f7   : > { %v1174_v36 = vrot.slane %v969_v25, %v2433_v33  ;;  %v1229_v39 = vrot.slane %v969_v25, %v1228_v38  ;;  %v1357_v41 = vrot.slane %v970_v40, %v2445_v37  ;;  %v1185_v42 = vrot.slane %v969_v25, %v2436_v34 }
 0x2f8   : > { %1198 = vbcast.lane.b32.xlu0 %v1196_v26, 256  ;;  %1165 = vbcast.lane.b32.xlu1 %v1163_v27, 256  ;;  %v1368_v43 = vrot.slane %v970_v40, %v2433_v33  ;;  %v1379_v45 = vrot.slane %v970_v40, %v2436_v34  ;;  %v1240_v47 = vrot.slane %v969_v25, %v1239_v46 }
 0x2f9   : > { %v1390_v48 = vrot.slane %v970_v40, %v2439_v35  ;;  %v1401_v49 = vrot.slane %v970_v40, %v1206_v28  ;;  %v1412_v50 = vrot.slane %v970_v40, %v1217_v30  ;;  %v1423_v33 = vrot.slane %v970_v40, %v1228_v38  ;;  %v1827_v35 = vld [vmem:[%s2793_s8] ss:$0 sm:$0xff] }
 0x2fa   : > { %v1434_v34 = vrot.slane %v970_v40, %v1239_v46 }
 0x2fc   : > { %1209 = vbcast.lane.b32.xlu0 %v1207_v29, 256  ;;  %1169 = vbcast.lane.b32.xlu1 %v1163_v27, 264 }
 0x300   : > { %1220 = vbcast.lane.b32.xlu0 %v1218_v31, 256  ;;  %1176 = vbcast.lane.b32.xlu1 %v1174_v36, 256 }
 0x304   : > { %1231 = vbcast.lane.b32.xlu0 %v1229_v39, 256  ;;  %1180 = vbcast.lane.b32.xlu1 %v1174_v36, 264 }
 0x308   : > { %1359 = vbcast.lane.b32.xlu0 %v1357_v41, 256  ;;  %1187 = vbcast.lane.b32.xlu1 %v1185_v42, 256 }
 0x30c   : > { %1370 = vbcast.lane.b32.xlu0 %v1368_v43, 256  ;;  %1191 = vbcast.lane.b32.xlu1 %v1185_v42, 264 }
 0x310   : > { %1381 = vbcast.lane.b32.xlu0 %v1379_v45, 256  ;;  %1202 = vbcast.lane.b32.xlu1 %v1196_v26, 264 }
 0x314   : > { %1242 = vbcast.lane.b32.xlu0 %v1240_v47, 256  ;;  %1213 = vbcast.lane.b32.xlu1 %v1207_v29, 264 }
 0x318   : > { %1392 = vbcast.lane.b32.xlu0 %v1390_v48, 256  ;;  %1224 = vbcast.lane.b32.xlu1 %v1218_v31, 264 }
 0x31c   : > { %1403 = vbcast.lane.b32.xlu0 %v1401_v49, 256  ;;  %1235 = vbcast.lane.b32.xlu1 %v1229_v39, 264 }
 0x320   : > { %1414 = vbcast.lane.b32.xlu0 %v1412_v50, 256  ;;  %1363 = vbcast.lane.b32.xlu1 %v1357_v41, 264 }
 0x324   : > { %1425 = vbcast.lane.b32.xlu0 %v1423_v33, 256  ;;  %1374 = vbcast.lane.b32.xlu1 %v1368_v43, 264 }
 0x328   : > { %1436 = vbcast.lane.b32.xlu0 %v1434_v34, 256  ;;  %1385 = vbcast.lane.b32.xlu1 %v1379_v45, 264 }
 0x32c   : > { %1246 = vbcast.lane.b32.xlu1 %v1240_v47, 264 }
 0x330   : > { %1396 = vbcast.lane.b32.xlu1 %v1390_v48, 264 }
 0x334   : > { %1407 = vbcast.lane.b32.xlu1 %v1401_v49, 264 }
 0x338   : > { %1418 = vbcast.lane.b32.xlu1 %v1412_v50, 264 }
 0x33c   : > { %v949_v51 = vpop.f32.mrf.mxu0  ;;  %1429 = vbcast.lane.b32.xlu1 %v1423_v33, 264 }
 0x33d   : > { %v950_v52 = vadd.f32 %v1827_v35, %v949_v51 }
 0x33e   : > { %v1930_v53 = vpop.f32.mrf.mxu0 }
 0x33f   : > { %v954_v54 = vand.u32 2147483647, %v950_v52  ;;  %v953_v1 = vmax.f32 %v950_v52, 0.0 }
 0x340   : > { %1440 = vbcast.lane.b32.xlu1 %v1434_v34, 264 }
 0x341   : > { %v955_v55 = vsub.f32 0.0, %v954_v54 }
 0x343   : > { %v956_v56 = vmul.f32 1.442695, %v955_v55 }
 0x345   : > { %2040 = vpow2.f32 %v956_v56 }
 0x352   : > { %v2041_v61 = vpop.eup %2040 }
 0x353   : > { %v958_v62 = vadd.f32 1.0, %v2041_v61 }
 0x355   : > { %2042 = vlog2.f32 %v958_v62 }
 0x362   : > { %v2043_v63 = vpop.eup %2042 }
 0x363   : > { %v960_v2 = vmul.f32 0.6931472, %v2043_v63 }
 0x365   : > { %v961_v5 = vadd.f32 %v960_v2, %v953_v1  ;;  %v965_v2 = vld [vmem:[#allocation2] sm:$0xff] }
 0x367   : > { %962 = vst.msk [vmem:[#allocation4] sm:$0xff] %vm480_vm2, %v961_v5 }
 0x36a   : > { %v2495_v7 = vpop.permute.xlu0 %1198  ;;  %v2497_v8 = vpop.permute.xlu1 %1165 }
 0x36e   : > { %v967_v0 = vld [vmem:[#allocation4] sm:$0xff]  ;;  %v2502_v10 = vpop.permute.xlu0 %1209  ;;  %v2504_v11 = vpop.permute.xlu1 %1169 }
 0x36f   : > { %v979_v12 = vrot.slane %v967_v0, %v2500_v9  ;;  %v972_v15 = vcombine.high %v967_v0, %v967_v0  ;;  %v2533_v27 = vmul.f32 %v2526_v23, %v967_v0 }
 0x371   : > { %v995_v13 = vrot.slane %v979_v12, %v2500_v9  ;;  %v987_v14 = vcombine.high %v979_v12, %v979_v12  ;;  %v986_v22 = vrot.slane %v972_v15, %v2500_v9  ;;  %v1118_v43 = vrot.slane %v2533_v27, %v2500_v9 }
 0x372   : > { %v2513_v17 = vpop.permute.xlu1 %1176  ;;  %v2521_v19 = vpop.permute.xlu0 %1220 }
 0x373   : > { %v1024_v32 = vrot.slane %v995_v13, %v2445_v37  ;;  %v1009_v20 = vrot.slane %v987_v14, %v2500_v9  ;;  %v1017_v31 = vcombine.high %v995_v13, %v995_v13  ;;  %v1002_v36 = vrot.slane %v986_v22, %v2500_v9 }
 0x374   : > { %v988_v42 = vcombine.high %v986_v22, %v986_v22  ;;  %v1126_v51 = vcombine.high %v1118_v43, %v1118_v43  ;;  %v2553_v52 = vrot.slane %v1118_v43, %v2500_v9 }
 0x375   : > { %v1061_v21 = vmul.f32 %v1024_v32, %v2511_v16  ;;  %v1062_v24 = vmul.f32 %v1024_v32, %v2519_v18  ;;  %v1028_v25 = vrot.slane %v1009_v20, %v2445_v37  ;;  %v1019_v38 = vcombine.high %v1009_v20, %v1009_v20 }
 0x376   : > { %v2530_v26 = vpop.permute.xlu1 %1180  ;;  %v2537_v40 = vpop.permute.xlu0 %1231  ;;  %v1032_v46 = vrot.slane %v1017_v31, %v2445_v37  ;;  %v1040_v49 = vrot.slane %v1002_v36, %v2445_v37  ;;  %v1016_v35 = vrot.slane %v988_v42, %v2500_v9  ;;  %v1018_v61 = vcombine.high %v1002_v36, %v1002_v36 }
 0x377   : > { %v1077_v28 = vmul.f32 1.442695, %v1061_v21  ;;  %v1079_v29 = vmul.f32 1.442695, %v1062_v24  ;;  %v1063_v30 = vmul.f32 %v1028_v25, %v2511_v16  ;;  %v1064_v45 = vmul.f32 %v1028_v25, %v2519_v18 }
 0x378   : > { %v1036_v48 = vrot.slane %v1019_v38, %v2445_v37  ;;  %v1065_v50 = vmul.f32 %v1032_v46, %v2511_v16  ;;  %v1066_v34 = vmul.f32 %v1032_v46, %v2519_v18  ;;  %v1069_v55 = vmul.f32 %v1040_v49, %v2511_v16 }
 0x379   : > { %2044 = vpow2.f32 %v1077_v28  ;;  %v1081_v39 = vmul.f32 1.442695, %v1063_v30  ;;  %v1083_v47 = vmul.f32 1.442695, %v1064_v45  ;;  %v1044_v62 = vrot.slane %v1016_v35, %v2445_v37 }
 0x37a   : > { %2046 = vpow2.f32 %v1079_v29  ;;  %v2539_v41 = vpop.permute.xlu1 %1187  ;;  %v1067_v53 = vmul.f32 %v1036_v48, %v2511_v16  ;;  %v2556_v54 = vpop.permute.xlu0 %1359  ;;  %v1085_v56 = vmul.f32 1.442695, %v1065_v50  ;;  %v1087_v57 = vmul.f32 1.442695, %v1066_v34 }
 0x37b   : > { %2048 = vpow2.f32 %v1081_v39  ;;  %v1068_v58 = vmul.f32 %v1036_v48, %v2519_v18  ;;  %v1148_v63 = vrot.slane %v1126_v51, %v2500_v9  ;;  %v1251_v1 = vrot.slane %v2553_v52, %v2445_v37 }
 0x37c   : > { %2050 = vpow2.f32 %v1083_v47  ;;  %v1089_v59 = vmul.f32 1.442695, %v1067_v53  ;;  %v1093_v3 = vmul.f32 1.442695, %v1069_v55  ;;  %v1070_v6 = vmul.f32 %v1040_v49, %v2519_v18 }
 0x37d   : > { %2052 = vpow2.f32 %v1085_v56  ;;  %v1091_v5 = vmul.f32 1.442695, %v1068_v58  ;;  %v1020_v13 = vcombine.high %v1016_v35, %v1016_v35  ;;  %v1048_v14 = vrot.slane %v1018_v61, %v2445_v37 }
 0x37e   : > { %v2548_v33 = vpop.permute.xlu1 %1191  ;;  %2054 = vpow2.f32 %v1087_v57  ;;  %v2571_v12 = vpop.permute.xlu0 %1370  ;;  %v1071_v15 = vmul.f32 %v1044_v62, %v2511_v16  ;;  %v1288_v21 = vmul.f32 %v1251_v1, %v2497_v8  ;;  %v1111_v24 = vcombine.high %v2533_v27, %v2533_v27 }
 0x37f   : > { %2056 = vpow2.f32 %v1089_v59  ;;  %v1255_v25 = vrot.slane %v1148_v63, %v2445_v37  ;;  %v1289_v28 = vmul.f32 %v1251_v1, %v2504_v11  ;;  %v1072_v30 = vmul.f32 %v1044_v62, %v2519_v18 }
 0x380   : > { %2058 = vpow2.f32 %v1093_v3  ;;  %v1156_v36 = vcombine.high %v2553_v52, %v2553_v52  ;;  %v1095_v8 = vmul.f32 1.442695, %v1070_v6  ;;  %v1052_v27 = vrot.slane %v1020_v13, %v2445_v37 }
 0x381   : > { %2060 = vpow2.f32 %v1091_v5  ;;  %v1073_v42 = vmul.f32 %v1048_v14, %v2511_v16  ;;  %v1097_v43 = vmul.f32 1.442695, %v1071_v15  ;;  %v1125_v45 = vrot.slane %v1111_v24, %v2500_v9 }
 0x382   : > { %v2563_v60 = vpop.permute.xlu1 %1202  ;;  %v1290_v46 = vmul.f32 %v1255_v25, %v2513_v17  ;;  %v1158_v49 = vcombine.high %v1148_v63, %v1148_v63  ;;  %v1291_v50 = vmul.f32 %v1255_v25, %v2530_v26  ;;  %v2607_v34 = vpop.permute.xlu0 %1381  ;;  %v1099_v35 = vmul.f32 1.442695, %v1072_v30 }
 0x383   : > { %2062 = vpow2.f32 %v1095_v8  ;;  %v1074_v17 = vmul.f32 %v1048_v14, %v2519_v18  ;;  %v1259_v53 = vrot.slane %v1156_v36, %v2445_v37  ;;  %v1075_v55 = vmul.f32 %v1052_v27, %v2511_v16 }
 0x384   : > { %2064 = vpow2.f32 %v1097_v43  ;;  %v1101_v56 = vmul.f32 1.442695, %v1073_v42  ;;  %v1127_v58 = vcombine.high %v1125_v45, %v1125_v45  ;;  %v1263_v61 = vrot.slane %v1158_v49, %v2445_v37 }
 0x385   : > { %v1141_v62 = vrot.slane %v1125_v45, %v2500_v9  ;;  %v1292_v63 = vmul.f32 %v1259_v53, %v2539_v41  ;;  %2066 = vpow2.f32 %v1099_v35  ;;  %v1103_v16 = vmul.f32 1.442695, %v1074_v17 }
 0x386   : > { %v2045_v0 = vpop.eup %2044  ;;  %v2575_v32 = vpop.permute.xlu1 %1213  ;;  %2068 = vpow2.f32 %v1101_v56  ;;  %v1105_v6 = vmul.f32 1.442695, %v1075_v55  ;;  %v1155_v14 = vrot.slane %v1127_v58, %v2500_v9  ;;  %v1293_v41 = vmul.f32 %v1259_v53, %v2548_v33 }
 0x387   : > { %v2047_v20 = vpop.eup %2046  ;;  %v1304_v22 = vmul.f32 %v2045_v0, %v965_v2  ;;  %v1076_v2 = vmul.f32 %v1052_v27, %v2519_v18  ;;  %v2627_v5 = vpop.permute.xlu0 %1242  ;;  %2070 = vpow2.f32 %v1103_v16  ;;  %v1157_v8 = vcombine.high %v1141_v62, %v1141_v62 }
 0x388   : > { %v1305_v29 = vmul.f32 %v2047_v20, %v966_v4  ;;  %v2049_v38 = vpop.eup %2048  ;;  %v1294_v20 = vmul.f32 %v1263_v61, %v2495_v7  ;;  %2072 = vpow2.f32 %v1105_v6  ;;  %v1271_v30 = vrot.slane %v1155_v14, %v2445_v37 }
 0x389   : > { %v2583_v31 = vadd.f32 %v1304_v22, %v1288_v21  ;;  %v2051_v48 = vpop.eup %2050  ;;  %v1267_v21 = vrot.slane %v1141_v62, %v2445_v37  ;;  %v1107_v25 = vmul.f32 1.442695, %v1076_v2  ;;  %v1295_v7 = vmul.f32 %v1263_v61, %v2563_v60 }
 0x38a   : > { %v2587_v39 = vadd.f32 %v1305_v29, %v1289_v28  ;;  %v2591_v11 = vpop.permute.xlu1 %1224  ;;  %v2053_v26 = vpop.eup %2052  ;;  %v1159_v35 = vcombine.high %v1155_v14, %v1155_v14 }
 0x38b   : > { %1338 = vst.msk [vmem:[%s2595_s22] sm:$0xff] %vm480_vm2, %v2583_v31  ;;  %v1308_v47 = vmul.f32 %v2049_v38, %v2583_v31  ;;  %v2055_v3 = vpop.eup %2054  ;;  %v1296_v36 = vmul.f32 %v1267_v21, %v2502_v10  ;;  %v1393_v27 = vpop.permute.xlu0 %1392  ;;  %2074 = vpow2.f32 %v1107_v25  ;;  %v1297_v60 = vmul.f32 %v1267_v21, %v2575_v32 }
 0x38c   : > { %1339 = vst.msk [vmem:[%s2595_s22 + $0x8] sm:$0xff] %vm480_vm2, %v2587_v39  ;;  %v1309_v52 = vmul.f32 %v2051_v48, %v2587_v39  ;;  %v2057_v13 = vpop.eup %2056  ;;  %v1298_v48 = vmul.f32 %v1271_v30, %v2521_v19  ;;  %v1442_v32 = vmul.f32 %v2556_v54, %v2583_v31  ;;  %v1279_v54 = vrot.slane %v1159_v35, %v2445_v37 }
 0x38d   : > { %v2609_v51 = vadd.f32 %v1308_v47, %v1290_v46  ;;  %v2059_v18 = vpop.eup %2058 }
 0x38e   : > { %v2615_v57 = vpop.permute.xlu1 %1235  ;;  %v1311_v59 = vadd.f32 %v1309_v52, %v1291_v50  ;;  %v2061_v28 = vpop.eup %2060  ;;  %v1275_v50 = vrot.slane %v1157_v8, %v2445_v37  ;;  %v1458_v6 = vsel %vm480_vm2, %v1442_v32, 0.0 }
 0x38f   : > { %1340 = vst.msk [vmem:[%s2595_s22 + $0x10] sm:$0xff] %vm480_vm2, %v2609_v51  ;;  %v1312_v1 = vmul.f32 %v2053_v26, %v2609_v51  ;;  %v1444_v53 = vmul.f32 %v2571_v12, %v2609_v51  ;;  %v1299_v12 = vmul.f32 %v1271_v30, %v2591_v11 }
 0x390   : > { %1341 = vst.msk [vmem:[%s2595_s22 + $0x18] sm:$0xff] %vm480_vm2, %v1311_v59  ;;  %v1313_v15 = vmul.f32 %v2055_v3, %v1311_v59  ;;  %v2063_v43 = vpop.eup %2062 }
 0x391   : > { %v1314_v4 = vadd.f32 %v1312_v1, %v1292_v63  ;;  %v2065_v47 = vpop.eup %2064  ;;  %v1567_v63 = vsub.f32 0.0, %v2451_v44  ;;  %v1300_v1 = vmul.f32 %v1275_v50, %v2537_v40  ;;  %v1467_v16 = vsel %vm480_vm2, %v1444_v53, 0.0 }
 0x392   : > { %v1364_v0 = vpop.permute.xlu1 %1363  ;;  %v1315_v24 = vadd.f32 %v1313_v15, %v1293_v41  ;;  %v2067_v56 = vpop.eup %2066  ;;  %v1301_v41 = vmul.f32 %v1275_v50, %v2615_v57 }
 0x393   : > { %v1316_v22 = vmul.f32 %v2057_v13, %v1314_v4  ;;  %1342 = vst.msk [vmem:[%s2595_s22 + $0x20] sm:$0xff] %vm480_vm2, %v1314_v4  ;;  %v1443_v19 = vmul.f32 %v1364_v0, %v2587_v39  ;;  %v1446_v26 = vmul.f32 %v2607_v34, %v1314_v4  ;;  %v2069_v62 = vpop.eup %2068 }
 0x394   : > { %1343 = vst.msk [vmem:[%s2595_s22 + $0x28] sm:$0xff] %vm480_vm2, %v1315_v24  ;;  %v1317_v33 = vmul.f32 %v2061_v28, %v1315_v24  ;;  %v2071_v11 = vpop.eup %2070 }
 0x395   : > { %v1318_v29 = vadd.f32 %v1316_v22, %v1294_v20  ;;  %v1459_v4 = vsel %vm480_vm2, %v1443_v19, 0.0  ;;  %v1476_v40 = vsel %vm480_vm2, %v1446_v26, 0.0  ;;  %v2073_v14 = vpop.eup %2072  ;;  %v1568_v22 = vmul.f32 1.442695, %v1567_v63 }
 0x396   : > { %v1375_v9 = vpop.permute.xlu1 %1374  ;;  %v1319_v42 = vadd.f32 %v1317_v33, %v1295_v7  ;;  %v1460_v28 = vadd.f32 %v1459_v4, %v1458_v6 }
 0x397   : > { %v1320_v38 = vmul.f32 %v2059_v18, %v1318_v29  ;;  %1344 = vst.msk [vmem:[%s2595_s22 + $0x30] sm:$0xff] %vm480_vm2, %v1318_v29  ;;  %v1445_v10 = vmul.f32 %v1375_v9, %v1311_v59  ;;  %v1404_v59 = vpop.permute.xlu0 %1403  ;;  %v1448_v2 = vmul.f32 %v1393_v27, %v1318_v29  ;;  %v1302_v18 = vmul.f32 %v1279_v54, %v2627_v5 }
 0x398   : > { %1345 = vst.msk [vmem:[%s2595_s22 + $0x38] sm:$0xff] %vm480_vm2, %v1319_v42  ;;  %v1321_v49 = vmul.f32 %v2063_v43, %v1319_v42  ;;  %v2075_v57 = vpop.eup %2074  ;;  %2076 = vpow2.f32 %v1568_v22 }
 0x399   : > { %v1322_v45 = vadd.f32 %v1320_v38, %v1296_v36  ;;  %v1468_v39 = vsel %vm480_vm2, %v1445_v10, 0.0  ;;  %v1485_v29 = vsel %vm480_vm2, %v1448_v2, 0.0 }
 0x39a   : > { %v1386_v46 = vpop.permute.xlu1 %1385  ;;  %v1323_v55 = vadd.f32 %v1321_v49, %v1297_v60  ;;  %v1469_v13 = vadd.f32 %v1468_v39, %v1467_v16 }
 0x39b   : > { %1346 = vst.msk [vmem:[%s2595_s22 + $0x40] sm:$0xff] %vm480_vm2, %v1322_v45  ;;  %v1324_v52 = vmul.f32 %v2065_v47, %v1322_v45  ;;  %v1447_v17 = vmul.f32 %v1386_v46, %v1315_v24  ;;  %v1415_v25 = vpop.permute.xlu0 %1414  ;;  %v1450_v9 = vmul.f32 %v1404_v59, %v1322_v45  ;;  %v1461_v45 = vrot.slane %v1460_v28, 4 }
 0x39c   : > { %1347 = vst.msk [vmem:[%s2595_s22 + $0x48] sm:$0xff] %vm480_vm2, %v1323_v55  ;;  %v1325_v51 = vmul.f32 %v2067_v56, %v1323_v55  ;;  %v1470_v36 = vrot.slane %v1469_v13, 4 }
 0x39d   : > { %v1326_v58 = vadd.f32 %v1324_v52, %v1298_v48  ;;  %v1477_v34 = vsel %vm480_vm2, %v1447_v17, 0.0  ;;  %v1494_v47 = vsel %vm480_vm2, %v1450_v9, 0.0 }
 0x39e   : > { %v1247_v61 = vpop.permute.xlu1 %1246  ;;  %v1327_v3 = vadd.f32 %v1325_v51, %v1299_v12  ;;  %v1478_v20 = vadd.f32 %v1477_v34, %v1476_v40  ;;  %v1471_v50 = vadd.f32 %v1470_v36, %v1469_v13 }
 0x39f   : > { %v1328_v31 = vmul.f32 %v2069_v62, %v1326_v58  ;;  %1348 = vst.msk [vmem:[%s2595_s22 + $0x50] sm:$0xff] %vm480_vm2, %v1326_v58  ;;  %v1303_v27 = vmul.f32 %v1279_v54, %v1247_v61  ;;  %v1452_v48 = vmul.f32 %v1415_v25, %v1326_v58  ;;  %v1426_v10 = vpop.permute.xlu0 %1425 }
 0x3a0   : > { %1349 = vst.msk [vmem:[%s2595_s22 + $0x58] sm:$0xff] %vm480_vm2, %v1327_v3  ;;  %v1329_v15 = vmul.f32 %v2071_v11, %v1327_v3  ;;  %v1479_v5 = vrot.slane %v1478_v20, 4  ;;  %v1472_v59 = vrot.slane %v1471_v50, 2 }
 0x3a1   : > { %v1330_v0 = vadd.f32 %v1328_v31, %v1300_v1  ;;  %v1503_v32 = vsel %vm480_vm2, %v1452_v48, 0.0 }
 0x3a2   : > { %v1397_v37 = vpop.permute.xlu1 %1396  ;;  %v1331_v30 = vadd.f32 %v1329_v15, %v1301_v41  ;;  %v1480_v17 = vadd.f32 %v1479_v5, %v1478_v20  ;;  %v1473_v4 = vadd.f32 %v1472_v59, %v1471_v50 }
 0x3a3   : > { %v1449_v21 = vmul.f32 %v1397_v37, %v1319_v42  ;;  %v1332_v24 = vmul.f32 %v2073_v14, %v1330_v0  ;;  %1350 = vst.msk [vmem:[%s2595_s22 + $0x60] sm:$0xff] %vm480_vm2, %v1330_v0  ;;  %v1454_v26 = vmul.f32 %v1426_v10, %v1330_v0  ;;  %v1437_v1 = vpop.permute.xlu0 %1436 }
 0x3a4   : > { %1351 = vst.msk [vmem:[%s2595_s22 + $0x68] sm:$0xff] %vm480_vm2, %v1331_v30  ;;  %v1333_v42 = vmul.f32 %v2075_v57, %v1331_v30  ;;  %v1481_v12 = vrot.slane %v1480_v17, 2 }
 0x3a5   : > { %v1486_v7 = vsel %vm480_vm2, %v1449_v21, 0.0  ;;  %v1334_v33 = vadd.f32 %v1332_v24, %v1302_v18  ;;  %v1512_v34 = vsel %vm480_vm2, %v1454_v26, 0.0  ;;  %v2077_v20 = vpop.eup %2076  ;;  %v1474_v24 = vrot.slane %v1473_v4, 1 }
 0x3a6   : > { %v1487_v8 = vadd.f32 %v1486_v7, %v1485_v29  ;;  %v1408_v38 = vpop.permute.xlu1 %1407  ;;  %v1335_v60 = vadd.f32 %v1333_v42, %v1303_v27  ;;  %v1482_v0 = vadd.f32 %v1481_v12, %v1480_v17  ;;  %v1570_v36 = vadd.f32 1.0, %v2077_v20 }
 0x3a7   : > { %v1451_v43 = vmul.f32 %v1408_v38, %v1323_v55  ;;  %1352 = vst.msk [vmem:[%s2595_s22 + $0x70] sm:$0xff] %vm480_vm2, %v1334_v33  ;;  %1554 = vst.msk [vmem:[#allocation2] sm:$0xff] %vm480_vm2, %v1334_v33  ;;  %v1462_v55 = vadd.f32 %v1461_v45, %v1460_v28  ;;  %v1456_v16 = vmul.f32 %v1437_v1, %v1334_v33 }
 0x3a8   : > { %v1488_v46 = vrot.slane %v1487_v8, 4  ;;  %1353 = vst.msk [vmem:[%s2595_s22 + $0x78] sm:$0xff] %vm480_vm2, %v1335_v60  ;;  %1555 = vst.msk [vmem:[#allocation2 + $0x8] sm:$0xff] %vm480_vm2, %v1335_v60  ;;  %v1483_v9 = vrot.slane %v1482_v0, 1  ;;  %v1475_v38 = vadd.f32 %v1474_v24, %v1473_v4  ;;  %2078 = vrcp.f32 %v1570_v36 }
 0x3a9   : > { %v1495_v49 = vsel %vm480_vm2, %v1451_v43, 0.0  ;;  %v1463_v39 = vrot.slane %v1462_v55, 2  ;;  %v1521_v21 = vsel %vm480_vm2, %v1456_v16, 0.0 }
 0x3aa   : > { %v1496_v35 = vadd.f32 %v1495_v49, %v1494_v47  ;;  %v1419_v52 = vpop.permute.xlu1 %1418  ;;  %v1489_v19 = vadd.f32 %v1488_v46, %v1487_v8  ;;  %v1484_v43 = vadd.f32 %v1483_v9, %v1482_v0 }
 0x3ab   : > { %v1453_v53 = vmul.f32 %v1419_v52, %v1327_v3  ;;  %v1464_v37 = vadd.f32 %v1463_v39, %v1462_v55 }
 0x3ac   : > { %v1497_v56 = vrot.slane %v1496_v35, 4  ;;  %v1490_v54 = vrot.slane %v1489_v19, 2 }
 0x3ad   : > { %v1504_v58 = vsel %vm480_vm2, %v1453_v53, 0.0 }
 0x3ae   : > { %v1498_v61 = vadd.f32 %v1497_v56, %v1496_v35  ;;  %v1505_v62 = vadd.f32 %v1504_v58, %v1503_v32  ;;  %v1430_v63 = vpop.permute.xlu1 %1429  ;;  %v1491_v14 = vadd.f32 %v1490_v54, %v1489_v19  ;;  %v1830_v58 = vld [vmem:[%s2795_s10] ss:$0 sm:$0xff] }
 0x3af   : > { %v1455_v51 = vmul.f32 %v1430_v63, %v1331_v30  ;;  %v1465_v30 = vrot.slane %v1464_v37, 1 }
 0x3b0   : > { %v1506_v31 = vrot.slane %v1505_v62, 4  ;;  %v1499_v2 = vrot.slane %v1498_v61, 2  ;;  %v1492_v7 = vrot.slane %v1491_v14, 1 }
 0x3b1   : > { %v1513_v3 = vsel %vm480_vm2, %v1455_v51, 0.0  ;;  %v1466_v45 = vadd.f32 %v1465_v30, %v1464_v37 }
 0x3b2   : > { %v1507_v11 = vadd.f32 %v1506_v31, %v1505_v62  ;;  %v1514_v6 = vadd.f32 %v1513_v3, %v1512_v34  ;;  %v1441_v40 = vpop.permute.xlu1 %1440  ;;  %v1500_v22 = vadd.f32 %v1499_v2, %v1498_v61  ;;  %v1493_v46 = vadd.f32 %v1492_v7, %v1491_v14 }
 0x3b3   : > { %v1457_v13 = vmul.f32 %v1441_v40, %v1335_v60  ;;  %v1539_v49 = vsel %vm1538_vm10, %v1475_v38, %v1466_v45  ;;  %v1565_v61 = vmul.f32 %v1830_v58, %v2526_v23 }
 0x3b4   : > { %v1508_v41 = vrot.slane %v1507_v11, 2  ;;  %v1515_v15 = vrot.slane %v1514_v6, 4  ;;  %v1501_v8 = vrot.slane %v1500_v22, 1  ;;  %v1541_v35 = vsel %vm1540_vm11, %v1484_v43, %v1539_v49 }
 0x3b5   : > { %v1522_v18 = vsel %vm480_vm2, %v1457_v13, 0.0  ;;  %v1543_v17 = vsel %vm1542_vm12, %v1493_v46, %v1541_v35  ;;  %v2079_v59 = vpop.eup %2078 }
 0x3b6   : > { %v1509_v25 = vadd.f32 %v1508_v41, %v1507_v11  ;;  %v1516_v28 = vadd.f32 %v1515_v15, %v1514_v6  ;;  %v1523_v29 = vadd.f32 %v1522_v18, %v1521_v21  ;;  %v1502_v60 = vadd.f32 %v1501_v8, %v1500_v22 }
 0x3b7   : > { %v1572_v63 = vmul.f32 %v2079_v59, %v2451_v44 }
 0x3b8   : > { %v1517_v57 = vrot.slane %v1516_v28, 2  ;;  %v1524_v33 = vrot.slane %v1523_v29, 4  ;;  %v1510_v5 = vrot.slane %v1509_v25, 1  ;;  %v1545_v55 = vsel %vm1544_vm13, %v1502_v60, %v1543_v17 }
 0x3ba   : > { %v1518_v27 = vadd.f32 %v1517_v57, %v1516_v28  ;;  %v1525_v42 = vadd.f32 %v1524_v33, %v1523_v29  ;;  %v1511_v10 = vadd.f32 %v1510_v5, %v1509_v25 }
 0x3bc   : > { %v1519_v47 = vrot.slane %v1518_v27, 1  ;;  %v1526_v48 = vrot.slane %v1525_v42, 2  ;;  %v1547_v19 = vsel %vm1546_vm14, %v1511_v10, %v1545_v55 }
 0x3be   : > { %v1527_v50 = vadd.f32 %v1526_v48, %v1525_v42  ;;  %v1520_v52 = vadd.f32 %v1519_v47, %v1518_v27 }
 0x3c0   : > { %v1528_v53 = vrot.slane %v1527_v50, 1  ;;  %v1549_v32 = vsel %vm1548_vm15, %v1520_v52, %v1547_v19 }
 0x3c2   : > { %v1529_v56 = vadd.f32 %v1528_v53, %v1527_v50 }
 0x3c4   : > { %v1551_v26 = vsel %vm1550_vm0, %v1529_v56, %v1549_v32 }
 0x3c5   : > { %1553 = vst.msk [vmem:[#allocation8] sm:$0xff] %vm480_vm2, %v1551_v26 }
 0x3cc   : > { %v1556_v62 = vld [vmem:[#allocation8] sm:$0xff] }
 0x3cd   : > { %v1566_v12 = vadd.f32 %v1565_v61, %v1556_v62 }
 0x3cf   : > { %v1573_v51 = vmul.f32 %v1572_v63, %v1566_v12 }
 0x3d1   : > { %v1574_v39 = vpack.c.bf16 %v1573_v51, %v1573_v51 }
 0x3d3   : > { %1940 = vmatmul.mubr.msk.bf16.vlgmr.msra.gmra.mxu1 %vm480_vm2, %v1574_v39 }
 0x3d4   : > { %2094 = shalt.err (!%p2091_p5)
}
 0x3d5   : > { %s2095_s22 = scalar_lea.hbm %s2704_s16, 2048  ;;  %s2099_s14 = scalar_lea.hbm %s2798_s13, 4096 }
 0x3d6   : > { %p2096_p6 = scmp.ne.s32.totalorder %s2704_s16, %s2095_s22  ;;  %p2100_p10 = scmp.lt.s32.totalorder %s2704_s16, %s2798_s13 }
 0x3d7   : > { %p2101_p11 = scmp.lt.s32.totalorder %s2099_s14, %s2095_s22 }
 0x3d8   : > { %p2097_p7 = pnand %p2096_p6, %p2308_p4 }
 0x3d9   : > { %p2102_p12 = por %p2101_p11, %p2100_p10 }
 0x3da   : > { %p2098_p9 = pneg %p2097_p7 }
 0x3dc   : > { %p2103_p13 = pnand %p2102_p12, %p2098_p9 }
 0x3de   : > { %2106 = shalt.err (!%p2103_p13)
}
 0x3df   : > { %s2195_s0 = smov 128   ;;  %s2196_s1 = smov 8   ;;  %v2080_v23 = vld [vmem:[%s2343_s27] sm:$0xff] }
 0x3e0   : > { %s2814_s23 = scalar_lea.sflag [#allocation12], %s2561_s17  ;;  %s1801_s19 = sshll.u32 %s2561_s17, 3 }
 0x3e1   : > { %1944 = dma.vmem_to_hbm [thread:$0]  (%p2308_p4), %s2707_s15, 2048, %s2704_s16, %s2814_s23, %s2195_s0, %s2195_s0, %s2196_s1  }
 0x3e2   : > { %s1838_s29 = sshll.u32 %s2179_s28, 7  ;;  %s459_s22 = scalar_lea.vmem [#allocation9], %s1801_s19 }
 0x3e3   : > { %s1671_s21 = sshll.u32 %s459_s22, 4  ;;  %s2738_s2 = scalar_lea.hbm %s2797_s12, %s1838_s29  ;;  %s2740_s21 = int_to_ptr.vmem [resolvable:$true] %s1671_s21 }
 0x3e4   : > { %s1652_s16 = scalar_lea.sflag [#allocation10], %s2561_s17  ;;  %s2107_s28 = scalar_lea.vmem %s2740_s21, 128 }
 0x3e5   : > { %p2108_p0 = scmp.ne.s32.totalorder %s2740_s21, %s2107_s28  ;;  %s2197_s27 = smov [#allocation9]  }
 0x3e6   : > { %s2111_s15 = sshll.u32 %s2197_s27, 4  ;;  %s2112_s15 = int_to_ptr.vmem [resolvable:$false] %s2111_s15 }
 0x3e7   : > { %p2109_p1 = pnand %p2108_p0, %p2308_p4  ;;  %s2113_s0 = scalar_lea.vmem %s2112_s15, 256 }
 0x3e8   : > { %p2114_p3 = scmp.lt.s32.totalorder %s2740_s21, %s2112_s15  ;;  %p2115_p5 = scmp.lt.s32.totalorder %s2113_s0, %s2107_s28 }
 0x3e9   : > { %p2110_p2 = pneg %p2109_p1 }
 0x3ea   : > { %p2116_p6 = por %p2115_p5, %p2114_p3 }
 0x3ec   : > { %p2117_p7 = pnand %p2116_p6, %p2110_p2 }
 0x493   : > { %v1644_v44 = vpop.f32.mrf.mxu1 }
 0x494   : > { %v1645_v1 = vadd.f32 %v2080_v23, %v1644_v44 }
 0x495   : > { %v1941_v54 = vpop.f32.mrf.mxu1 }
 0x496   : > { %1650 = vst [vmem:[%s459_s22] sm:$0xff] %v1645_v1 }
 0x497   : > { %v1647_v31 = vpop.f32.mrf.mxu1 }
 0x498   : > { %2120 = shalt.err (!%p2117_p7)
}
 0x499   : > { %s2121_s1 = scalar_lea.hbm %s2738_s2, 128  ;;  %s2125_s19 = scalar_lea.hbm %s2797_s12, 256 }
 0x49a   : > { %p2122_p9 = scmp.ne.s32.totalorder %s2738_s2, %s2121_s1  ;;  %p2126_p12 = scmp.lt.s32.totalorder %s2738_s2, %s2797_s12 }
 0x49b   : > { %p2127_p13 = scmp.lt.s32.totalorder %s2125_s19, %s2121_s1 }
 0x49c   : > { %p2123_p10 = pnand %p2122_p9, %p2308_p4 }
 0x49d   : > { %p2128_p0 = por %p2127_p13, %p2126_p12 }
 0x49e   : > { %p2124_p11 = pneg %p2123_p10 }
 0x4a0   : > { %p2129_p1 = pnand %p2128_p0, %p2124_p11 }
 0x4a2   : > { %2132 = shalt.err (!%p2129_p1)
}
 0x4a3   : > { %1943 = dma.vmem_to_hbm [thread:$0]  (%p2308_p4), %s2740_s21, 128, %s2738_s2, %s1652_s16   ;;  %v1942_v34 = vpop.f32.mrf.mxu1 }
 0x4a4 PF: > { %p1954_p2 = scmp.ge.s32.totalorder %s2187_s30, 2  ;;  %s1702_s14 = sand.u32 1, %s2167_s25  }
 0x4a5   : > { %s1703_s24 = scalar_lea.sflag [#allocation10], %s1702_s14 }
 0x4a6   : > { %p1948_p3 = pnand %p1954_p2, %p2315_p8 }
 0x4a8   : > { %p1949_p5 = pneg %p1948_p3 }
 0x4aa   : > { %2158 = dma.done.wait (%p1949_p5), %s1703_s24, 128  }
 0x4ab   : > { %2160 = vsyncadd (%p1949_p5), %s1703_s24, 4294967168  ;;  %s1712_s28 = scalar_lea.sflag [#allocation12], %s1702_s14 }
 0x4ac   : > { %2162 = dma.done.wait (%p1949_p5), %s1712_s28, 2048  }
 0x4ad   : > { %2164 = vsyncadd (%p1949_p5), %s1712_s28, 4294965248  ;;  %s30_s30 = sadd.s32 1, %s2187_s30   ;;  %s2815_s2 = sld [smem:[#allocation15_spill]] }
 0x4ae   : > { %p27_p6 = scmp.ge.s32.totalorder %s30_s30, 4   ;;  %s2816_s27 = sld [smem:[#allocation18_spill]] }
 0x4af   : > { %s2817_s28 = sld [smem:[#allocation16_spill]]  ;;  %s2819_s25 = smov %s2171_s26 }
 0x4b0   : > { %s2818_s29 = sld [smem:[#allocation17_spill]]  ;;  %29 = sbr.rel (!%p27_p6) target bundleno = 10 (0xa), region = 125 }
 0x4b3   : > { %s2820_s26 = smov %s2815_s2 }
 0x4b5   :  { %1717 = vsyncpa [#allocation10], 1 }
 0x4b6   :  { %1719 = vsyncpa [#allocation10 + $0x1], 1 }
 0x4b7   :  { %1720 = vsyncpa [#allocation12], 1 }
 0x4b8   :  { %1722 = vsyncpa [#allocation12 + $0x1], 1 }

</bundles_post_ra>
